<compile_context>
chip_gen: v6e
topology: v6e:2x2x1
jax: 0.10.0
libtpu: 0.0.40
codegen_flags: <defaults>
</compile_context>

<pallas_src>
from functools import partial

import jax
import jax.numpy as jnp
from jax.experimental import pallas as pl
from jax.experimental.pallas import tpu as pltpu

LANE = 128  # feature padding target (lane width)


def _round_up(x, m):
    return ((x + m - 1) // m) * m


def _pad2(m, rows, cols, value=0.0):
    return jnp.pad(m, ((0, rows - m.shape[0]), (0, cols - m.shape[1])),
                   constant_values=value)


# ---------------------------------------------------------------------------
# Planning: tiles + VMEM budget per TPU generation
# ---------------------------------------------------------------------------
def _vmem_budget_bytes():
    """~75% of physical VMEM (v7x: 64 MiB -> 48 MiB; v5e/v6e: 128 MiB -> 96 MiB)."""
    cap = 64 * 1024 * 1024  # conservative (v7x) fallback if the query fails
    try:
        cap = int(pltpu.get_tpu_info().vmem_capacity_bytes)
    except Exception:
        pass
    return min((cap * 3) // 4, 100 * 1024 * 1024)


def _choose_tile_m(n):
    """Largest row tile keeping >=2 row tiles (megacore) and <~12% N padding."""
    n128 = _round_up(n, 128)
    for t in (512, 384, 256, 128):
        n_pad = _round_up(n128, t)
        if n_pad // t >= 2 and (n_pad - n) * 8 <= max(n, 1):
            return t, n_pad
    return n128, n128  # tiny graph: a single row tile


def _plan(n, f_cols):
    """Return (tile_m, tile_k, n_pad, vmem_limit) shared by both layers.

    tile_k == n_pad means the whole source axis (Z operand) is VMEM-resident and
    the K reduction grid axis is dropped (single-pass schedule).
    """
    budget = _vmem_budget_bytes()
    tile_m, n_pad = _choose_tile_m(n)
    # Per-row-tile footprint independent of the K tiling (double-buffered).
    fixed = (2 * tile_m * f_cols * 2          # dst-row self term (bf16)
             + 2 * tile_m * f_cols * 4        # output tile (f32 worst case)
             + 2 * f_cols * f_cols * 2        # fused projection weight (bf16)
             + 2 * (tile_m + f_cols) * 4      # inv_deg + bias
             + (2 << 20))                     # slack for compiler scratch
    single = 2 * tile_m * n_pad * 2 + 2 * n_pad * f_cols * 2 + fixed
    if single <= budget:
        return tile_m, n_pad, n_pad, budget
    # K-tiled fallback: largest tile_k that divides n_pad, is a multiple of
    # tile_m, and fits alongside the f32 accumulator scratch.
    acc = tile_m * f_cols * 4
    max_k = max(tile_m, (budget - fixed - acc) // (4 * tile_m + 4 * f_cols))
    steps = n_pad // tile_m
    d = max(1, min(steps, max_k // tile_m))
    while steps % d:
        d -= 1
    return tile_m, d * tile_m, n_pad, budget


# ---------------------------------------------------------------------------
# Kernel bodies
# ---------------------------------------------------------------------------
def _epilogue(acc, zself_ref, invdeg_ref, b_ref, w_ref, o_ref, *, apply_relu):
    """(acc + self)/ (deg+1) + bias [-> relu] [-> @ W_post (bf16)] -> store."""
    h = (acc + zself_ref[...].astype(jnp.float32)) * invdeg_ref[...] + b_ref[...]
    if apply_relu:
        h = jnp.maximum(h, 0.0)
    if w_ref is not None:
        # Fused next-layer projection: bf16 x bf16 on the MXU, f32 accumulate.
        h = jnp.dot(h.astype(w_ref.dtype), w_ref[...],
                    preferred_element_type=jnp.float32)
    o_ref[...] = h.astype(o_ref.dtype)


def _agg_kernel_single(a_ref, z_ref, zself_ref, invdeg_ref, b_ref, *rest,
                       apply_relu, has_wpost):
    """grid=(row_tiles,): whole source axis resident in VMEM, no K loop/acc."""
    if has_wpost:
        w_ref, o_ref = rest
    else:
        w_ref = None
        (o_ref,) = rest
    acc = jnp.dot(a_ref[...], z_ref[...], preferred_element_type=jnp.float32)
    _epilogue(acc, zself_ref, invdeg_ref, b_ref, w_ref, o_ref,
              apply_relu=apply_relu)


def _agg_kernel_ktiled(a_ref, z_ref, zself_ref, invdeg_ref, b_ref, *rest,
                       apply_relu, has_wpost):
    """grid=(row_tiles, k_tiles): f32 VMEM accumulator over the source axis."""
    if has_wpost:
        w_ref, o_ref, acc_ref = rest
    else:
        w_ref = None
        o_ref, acc_ref = rest
    k = pl.program_id(1)

    @pl.when(k == 0)
    def _init():
        acc_ref[...] = jnp.zeros_like(acc_ref)

    acc_ref[...] += jnp.dot(a_ref[...], z_ref[...],
                            preferred_element_type=jnp.float32)

    @pl.when(k == pl.num_programs(1) - 1)
    def _finalize():
        _epilogue(acc_ref[...], zself_ref, invdeg_ref, b_ref, w_ref, o_ref,
                  apply_relu=apply_relu)


# ---------------------------------------------------------------------------
# One normalized aggregation (+ optional fused bf16 projection) via pallas_call
# ---------------------------------------------------------------------------
def _agg_layer(a_p, z, inv_deg, b, w_post, *, apply_relu, out_dtype,
               tile_m, tile_k, vmem_limit):
    """out = [relu]((A_pad @ z + z_dst_rows) * inv_deg + b) [@ w_post]."""
    n_pad = a_p.shape[0]
    f_in = z.shape[1]
    has_wpost = w_post is not None
    f_out = w_post.shape[1] if has_wpost else f_in
    nm = n_pad // tile_m
    single = tile_k >= n_pad

    if single:
        grid = (nm,)
        dims = ("parallel",)
        in_specs = [
            pl.BlockSpec((tile_m, n_pad), lambda i: (i, 0)),   # A row stripe
            pl.BlockSpec((n_pad, f_in), lambda i: (0, 0)),     # Z resident in VMEM
            pl.BlockSpec((tile_m, f_in), lambda i: (i, 0)),    # dst-row self term
            pl.BlockSpec((tile_m, 1), lambda i: (i, 0)),       # 1/(deg+1)
            pl.BlockSpec((1, f_in), lambda i: (0, 0)),         # bias
        ]
        if has_wpost:
            in_specs.append(pl.BlockSpec((f_in, f_out), lambda i: (0, 0)))
        out_spec = pl.BlockSpec((tile_m, f_out), lambda i: (i, 0))
        scratch = []
        kernel = partial(_agg_kernel_single, apply_relu=apply_relu,
                         has_wpost=has_wpost)
    else:
        nk = n_pad // tile_k
        grid = (nm, nk)
        dims = ("parallel", "arbitrary")
        in_specs = [
            # Triple-buffer the dominant (adjacency) HBM stream.
            pl.BlockSpec((tile_m, tile_k), lambda i, k: (i, k),
                         pipeline_mode=pl.Buffered(3)),
            pl.BlockSpec((tile_k, f_in), lambda i, k: (k, 0)),
            pl.BlockSpec((tile_m, f_in), lambda i, k: (i, 0)),
            pl.BlockSpec((tile_m, 1), lambda i, k: (i, 0)),
            pl.BlockSpec((1, f_in), lambda i, k: (0, 0)),
        ]
        if has_wpost:
            in_specs.append(pl.BlockSpec((f_in, f_out), lambda i, k: (0, 0)))
        out_spec = pl.BlockSpec((tile_m, f_out), lambda i, k: (i, 0))
        scratch = [pltpu.VMEM((tile_m, f_in), jnp.float32)]
        kernel = partial(_agg_kernel_ktiled, apply_relu=apply_relu,
                         has_wpost=has_wpost)

    inputs = [a_p, z, z, inv_deg, b]   # z passed twice: streamed + self rows (+I fold)
    if has_wpost:
        inputs.append(w_post)

    return pl.pallas_call(
        kernel,
        out_shape=jax.ShapeDtypeStruct((n_pad, f_out), out_dtype),
        grid_spec=pltpu.PrefetchScalarGridSpec(
            num_scalar_prefetch=0,
            grid=grid,
            in_specs=in_specs,
            out_specs=out_spec,
            scratch_shapes=scratch,
        ),
        compiler_params=pltpu.CompilerParams(
            dimension_semantics=dims,
            vmem_limit_bytes=vmem_limit,
        ),
    )(*inputs)


# ---------------------------------------------------------------------------
# Two-layer SAGE forward
# ---------------------------------------------------------------------------
def sage_forward(a, x, params):
    """Two-layer DGL-style SAGE('gcn') forward. Dropout is identity (eval mode)."""
    (w1, b1), (w2, b2) = params
    n = a.shape[0]
    out_size = w2.shape[1]
    hid_size = w1.shape[1]

    f_hid = _round_up(hid_size, LANE)
    f_out = _round_up(out_size, LANE)
    tile_m, tile_k, n_pad, vmem_limit = _plan(n, max(f_hid, f_out))

    # ---- XLA-side prep: one pad+cast pass over A; no A+I materialization -----
    a_p = _pad2(a, n_pad, n_pad).astype(jnp.bfloat16)              # 0/1 exact in bf16
    deg = jnp.sum(a_p, axis=1, keepdims=True, dtype=jnp.float32)   # exact in-degree
    inv_deg = 1.0 / (deg + 1.0)                                    # f32, both layers

    # Layer-1 projection hoisted out of the N^2 aggregation (exact: the per-row
    # 1/(deg+1) scaling commutes with right-multiplication by W1).
    z1 = jnp.dot(x, w1, preferred_element_type=jnp.float32)        # tiny [N,in]@[in,hid]
    z1_p = _pad2(z1, n_pad, f_hid).astype(jnp.bfloat16)
    b1_p = _pad2(b1, 1, f_hid)
    w2_p = _pad2(w2, f_hid, f_out).astype(jnp.bfloat16)
    b2_p = _pad2(b2, 1, f_out)

    # ---- Layer 1 (+ fused ReLU and bf16 W2 projection in the epilogue) -------
    #   z2 = relu((A@z1 + z1) * inv_deg + b1) @ W2
    z2 = _agg_layer(a_p, z1_p, inv_deg, b1_p, w2_p,
                    apply_relu=True, out_dtype=jnp.bfloat16,
                    tile_m=tile_m, tile_k=tile_k, vmem_limit=vmem_limit)
    # TODO(synk): training-mode Dropout(0.5) between layers not implemented.

    # ---- Layer 2 (aggregate-only): out = (A@z2 + z2) * inv_deg + b2 ----------
    out = _agg_layer(a_p, z2, inv_deg, b2_p, None,
                     apply_relu=False, out_dtype=jnp.float32,
                     tile_m=tile_m, tile_k=tile_k, vmem_limit=vmem_limit)

    return out[:n, :out_size]


def init_params(key, in_size, hid_size, out_size):
    k1, k2, k3, k4 = jax.random.split(key, 4)
    # torch Linear weight is [out, in] -> store transposed [in, out].
    w1 = (jax.random.normal(k1, (in_size, hid_size), jnp.float32)
          * jnp.sqrt(2.0 / (in_size + hid_size)))
    b1 = 0.1 * jax.random.normal(k2, (1, hid_size), jnp.float32)
    w2 = (jax.random.normal(k3, (hid_size, out_size), jnp.float32)
          * jnp.sqrt(2.0 / (hid_size + out_size)))
    b2 = 0.1 * jax.random.normal(k4, (1, out_size), jnp.float32)
    return ((w1, b1), (w2, b2))


def reference_forward(a, x, params):
    """Pure-JAX f32 reference of DGL SAGEConv('gcn') x2 (eval mode)."""
    (w1, b1), (w2, b2) = params
    deg = jnp.sum(a, axis=1, keepdims=True)

    def layer(h, w, b):
        neigh = a @ h
        h_neigh = (neigh + h) / (deg + 1.0)
        return h_neigh @ w + b

    h = jnp.maximum(layer(x, w1, b1), 0.0)
    return layer(h, w2, b2)


if __name__ == "__main__":
    N, IN, HID, OUT = 768, 8, 32, 4   # -> n_pad=768, tile_m=384 (2 row tiles), single-pass

    key = jax.random.PRNGKey(0)
    k_feat, k_adj, k_param = jax.random.split(key, 3)

    # Node features.
    x = jax.random.normal(k_feat, (N, IN), jnp.float32)

    # Random directed graph (~8 in-neighbors/node), dense A[dst, src] = 1, no self loops.
    a = (jax.random.uniform(k_adj, (N, N)) < (8.0 / N)).astype(jnp.float32)
    a = a * (1.0 - jnp.eye(N, dtype=jnp.float32))

    params = init_params(k_param, IN, HID, OUT)

    out = jax.block_until_ready(jax.jit(sage_forward)(a, x, params))
    ref = reference_forward(a, x, params)

    assert out.shape == (N, OUT)
    max_err = float(jnp.max(jnp.abs(out - ref)))
    # bf16 streaming of A / z1 / z2 introduces ~1e-2-scale error vs the f32 reference.
    assert jnp.allclose(out, ref, atol=5e-2, rtol=5e-2), f"max abs err {max_err}"

    print("KERNEL_OK")
</pallas_src>

<mosaic_0001>
module attributes {stable_mosaic.version = 11 : i64} {
  func.func @_agg_kernel_single(%arg0: i32, %arg1: memref<384x768xbf16, #tpu.memory_space<vmem>>, %arg2: memref<768x128xbf16, #tpu.memory_space<vmem>>, %arg3: memref<384x128xbf16, #tpu.memory_space<vmem>>, %arg4: memref<384x1xf32, #tpu.memory_space<vmem>>, %arg5: memref<1x128xf32, #tpu.memory_space<vmem>>, %arg6: memref<384x128xf32, #tpu.memory_space<vmem>>) attributes {dimension_semantics = [#tpu.dimension_semantics<parallel>], iteration_bounds = array<i64: 2>, scalar_prefetch = 0 : i64, scratch_operands = 0 : i64, tpu.core_type = #tpu.core_type<tc>, window_params = [{transform_indices = @transform_0, window_bounds = array<i64: 384, 768>}, {pipeline_mode = #tpu.pipeline_mode<synchronous>, transform_indices = @transform_1, window_bounds = array<i64: 768, 128>}, {transform_indices = @transform_2, window_bounds = array<i64: 384, 128>}, {transform_indices = @transform_3, window_bounds = array<i64: 384, 1>}, {pipeline_mode = #tpu.pipeline_mode<synchronous>, transform_indices = @transform_4, window_bounds = array<i64: 1, 128>}, {transform_indices = @transform_5, window_bounds = array<i64: 384, 128>}]} {
    %c0 = arith.constant 0 : index
    %c0_0 = arith.constant 0 : index
    %0 = vector.load %arg1[%c0, %c0_0] : memref<384x768xbf16, #tpu.memory_space<vmem>>, vector<384x768xbf16>
    %c0_1 = arith.constant 0 : index
    %c0_2 = arith.constant 0 : index
    %1 = vector.load %arg2[%c0_1, %c0_2] : memref<768x128xbf16, #tpu.memory_space<vmem>>, vector<768x128xbf16>
    %cst = arith.constant dense<0.000000e+00> : vector<384x128xf32>
    %2 = tpu.matmul %0, %1, %cst {dimension_numbers = #tpu.dot_dimension_numbers<[1], [0], [0], [1], [0, 0, 1, 1], [], []>} : vector<384x768xbf16>, vector<768x128xbf16>, vector<384x128xf32> -> vector<384x128xf32>
    %c0_3 = arith.constant 0 : index
    %c0_4 = arith.constant 0 : index
    %3 = vector.load %arg3[%c0_3, %c0_4] : memref<384x128xbf16, #tpu.memory_space<vmem>>, vector<384x128xbf16>
    %4 = arith.extf %3 : vector<384x128xbf16> to vector<384x128xf32>
    %5 = arith.addf %2, %4 : vector<384x128xf32>
    %c0_5 = arith.constant 0 : index
    %c0_6 = arith.constant 0 : index
    %6 = vector.load %arg4[%c0_5, %c0_6] : memref<384x1xf32, #tpu.memory_space<vmem>>, vector<384x1xf32>
    %7 = vector.broadcast %6 : vector<384x1xf32> to vector<384x128xf32>
    %8 = arith.mulf %5, %7 : vector<384x128xf32>
    %c0_7 = arith.constant 0 : index
    %c0_8 = arith.constant 0 : index
    %9 = vector.load %arg5[%c0_7, %c0_8] : memref<1x128xf32, #tpu.memory_space<vmem>>, vector<1x128xf32>
    %10 = vector.broadcast %9 : vector<1x128xf32> to vector<384x128xf32>
    %11 = arith.addf %8, %10 : vector<384x128xf32>
    %c0_9 = arith.constant 0 : index
    %c0_10 = arith.constant 0 : index
    %12 = vector.load %arg6[%c0_9, %c0_10] : memref<384x128xf32, #tpu.memory_space<vmem>>, vector<384x128xf32>
    tpu.vector_store %arg6[%c0_9, %c0_10], %11 {strides = array<i32>} : memref<384x128xf32, #tpu.memory_space<vmem>>, vector<384x128xf32>,
    return
  }
  func.func @transform_0(%arg0: i32) -> (i32, i32) {
    %c0_i32 = arith.constant 0 : i32
    %c0_i32_0 = arith.constant 0 : i32
    return %arg0, %c0_i32 : i32, i32
  }
  func.func @transform_1(%arg0: i32) -> (i32, i32) {
    %c0_i32 = arith.constant 0 : i32
    %c0_i32_0 = arith.constant 0 : i32
    %c0_i32_1 = arith.constant 0 : i32
    return %c0_i32, %c0_i32_0 : i32, i32
  }
  func.func @transform_2(%arg0: i32) -> (i32, i32) {
    %c0_i32 = arith.constant 0 : i32
    %c0_i32_0 = arith.constant 0 : i32
    return %arg0, %c0_i32 : i32, i32
  }
  func.func @transform_3(%arg0: i32) -> (i32, i32) {
    %c0_i32 = arith.constant 0 : i32
    %c0_i32_0 = arith.constant 0 : i32
    return %arg0, %c0_i32 : i32, i32
  }
  func.func @transform_4(%arg0: i32) -> (i32, i32) {
    %c0_i32 = arith.constant 0 : i32
    %c0_i32_0 = arith.constant 0 : i32
    %c0_i32_1 = arith.constant 0 : i32
    return %c0_i32, %c0_i32_0 : i32, i32
  }
  func.func @transform_5(%arg0: i32) -> (i32, i32) {
    %c0_i32 = arith.constant 0 : i32
    %c0_i32_0 = arith.constant 0 : i32
    return %arg0, %c0_i32 : i32, i32
  }
}

module attributes {stable_mosaic.version = 11 : i64} {
  func.func @_agg_kernel_single(%arg0: i32, %arg1: memref<384x768xbf16, #tpu.memory_space<vmem>>, %arg2: memref<768x128xbf16, #tpu.memory_space<vmem>>, %arg3: memref<384x128xbf16, #tpu.memory_space<vmem>>, %arg4: memref<384x1xf32, #tpu.memory_space<vmem>>, %arg5: memref<1x128xf32, #tpu.memory_space<vmem>>, %arg6: memref<128x128xbf16, #tpu.memory_space<vmem>>, %arg7: memref<384x128xbf16, #tpu.memory_space<vmem>>) attributes {dimension_semantics = [#tpu.dimension_semantics<parallel>], iteration_bounds = array<i64: 2>, scalar_prefetch = 0 : i64, scratch_operands = 0 : i64, tpu.core_type = #tpu.core_type<tc>, window_params = [{transform_indices = @transform_0, window_bounds = array<i64: 384, 768>}, {pipeline_mode = #tpu.pipeline_mode<synchronous>, transform_indices = @transform_1, window_bounds = array<i64: 768, 128>}, {transform_indices = @transform_2, window_bounds = array<i64: 384, 128>}, {transform_indices = @transform_3, window_bounds = array<i64: 384, 1>}, {pipeline_mode = #tpu.pipeline_mode<synchronous>, transform_indices = @transform_4, window_bounds = array<i64: 1, 128>}, {pipeline_mode = #tpu.pipeline_mode<synchronous>, transform_indices = @transform_5, window_bounds = array<i64: 128, 128>}, {transform_indices = @transform_6, window_bounds = array<i64: 384, 128>}]} {
    %c0 = arith.constant 0 : index
    %c0_0 = arith.constant 0 : index
    %0 = vector.load %arg1[%c0, %c0_0] : memref<384x768xbf16, #tpu.memory_space<vmem>>, vector<384x768xbf16>
    %c0_1 = arith.constant 0 : index
    %c0_2 = arith.constant 0 : index
    %1 = vector.load %arg2[%c0_1, %c0_2] : memref<768x128xbf16, #tpu.memory_space<vmem>>, vector<768x128xbf16>
    %cst = arith.constant dense<0.000000e+00> : vector<384x128xf32>
    %2 = tpu.matmul %0, %1, %cst {dimension_numbers = #tpu.dot_dimension_numbers<[1], [0], [0], [1], [0, 0, 1, 1], [], []>} : vector<384x768xbf16>, vector<768x128xbf16>, vector<384x128xf32> -> vector<384x128xf32>
    %c0_3 = arith.constant 0 : index
    %c0_4 = arith.constant 0 : index
    %3 = vector.load %arg3[%c0_3, %c0_4] : memref<384x128xbf16, #tpu.memory_space<vmem>>, vector<384x128xbf16>
    %4 = arith.extf %3 : vector<384x128xbf16> to vector<384x128xf32>
    %5 = arith.addf %2, %4 : vector<384x128xf32>
    %c0_5 = arith.constant 0 : index
    %c0_6 = arith.constant 0 : index
    %6 = vector.load %arg4[%c0_5, %c0_6] : memref<384x1xf32, #tpu.memory_space<vmem>>, vector<384x1xf32>
    %7 = vector.broadcast %6 : vector<384x1xf32> to vector<384x128xf32>
    %8 = arith.mulf %5, %7 : vector<384x128xf32>
    %c0_7 = arith.constant 0 : index
    %c0_8 = arith.constant 0 : index
    %9 = vector.load %arg5[%c0_7, %c0_8] : memref<1x128xf32, #tpu.memory_space<vmem>>, vector<1x128xf32>
    %10 = vector.broadcast %9 : vector<1x128xf32> to vector<384x128xf32>
    %11 = arith.addf %8, %10 : vector<384x128xf32>
    %cst_9 = arith.constant 0.000000e+00 : f32
    %12 = vector.broadcast %cst_9 : f32 to vector<384x128xf32>
    %13 = arith.maximumf %11, %12 : vector<384x128xf32>
    %14 = arith.truncf %13 : vector<384x128xf32> to vector<384x128xbf16>
    %c0_10 = arith.constant 0 : index
    %c0_11 = arith.constant 0 : index
    %15 = vector.load %arg6[%c0_10, %c0_11] : memref<128x128xbf16, #tpu.memory_space<vmem>>, vector<128x128xbf16>
    %cst_12 = arith.constant dense<0.000000e+00> : vector<384x128xf32>
    %16 = tpu.matmul %14, %15, %cst_12 {dimension_numbers = #tpu.dot_dimension_numbers<[1], [0], [0], [1], [0, 0, 1, 1], [], []>} : vector<384x128xbf16>, vector<128x128xbf16>, vector<384x128xf32> -> vector<384x128xf32>
    %17 = arith.truncf %16 : vector<384x128xf32> to vector<384x128xbf16>
    %c0_13 = arith.constant 0 : index
    %c0_14 = arith.constant 0 : index
    %18 = vector.load %arg7[%c0_13, %c0_14] : memref<384x128xbf16, #tpu.memory_space<vmem>>, vector<384x128xbf16>
    tpu.vector_store %arg7[%c0_13, %c0_14], %17 {strides = array<i32>} : memref<384x128xbf16, #tpu.memory_space<vmem>>, vector<384x128xbf16>,
    return
  }
  func.func @transform_0(%arg0: i32) -> (i32, i32) {
    %c0_i32 = arith.constant 0 : i32
    %c0_i32_0 = arith.constant 0 : i32
    return %arg0, %c0_i32 : i32, i32
  }
  func.func @transform_1(%arg0: i32) -> (i32, i32) {
    %c0_i32 = arith.constant 0 : i32
    %c0_i32_0 = arith.constant 0 : i32
    %c0_i32_1 = arith.constant 0 : i32
    return %c0_i32, %c0_i32_0 : i32, i32
  }
  func.func @transform_2(%arg0: i32) -> (i32, i32) {
    %c0_i32 = arith.constant 0 : i32
    %c0_i32_0 = arith.constant 0 : i32
    return %arg0, %c0_i32 : i32, i32
  }
  func.func @transform_3(%arg0: i32) -> (i32, i32) {
    %c0_i32 = arith.constant 0 : i32
    %c0_i32_0 = arith.constant 0 : i32
    return %arg0, %c0_i32 : i32, i32
  }
  func.func @transform_4(%arg0: i32) -> (i32, i32) {
    %c0_i32 = arith.constant 0 : i32
    %c0_i32_0 = arith.constant 0 : i32
    %c0_i32_1 = arith.constant 0 : i32
    return %c0_i32, %c0_i32_0 : i32, i32
  }
  func.func @transform_5(%arg0: i32) -> (i32, i32) {
    %c0_i32 = arith.constant 0 : i32
    %c0_i32_0 = arith.constant 0 : i32
    %c0_i32_1 = arith.constant 0 : i32
    return %c0_i32, %c0_i32_0 : i32, i32
  }
  func.func @transform_6(%arg0: i32) -> (i32, i32) {
    %c0_i32 = arith.constant 0 : i32
    %c0_i32_0 = arith.constant 0 : i32
    return %arg0, %c0_i32 : i32, i32
  }
}

</mosaic_0001>

<bundles_post_ra>
// kernel: sage_forward.3
= control target key start
LH: loop header
LB: loop body
LE: loop exit
PB: predicated region body
PF: predicated region fallthrough
CT: control target
= control target key end

     0   :  { %s3485_s18 = smov 0   ;;  %s4201_s0 = inlined_call_operand.vmem [shape: bf16[768,768], index: 0, kind: input, shape index: {}]   ;;  %s4202_s1 = inlined_call_operand.vmem [shape: bf16[768,128], index: 1, kind: input, shape index: {}, may-alias: {1,2}]   ;;  %s4203_s2 = inlined_call_operand.vmem [shape: bf16[768,128], index: 2, kind: input, shape index: {}, may-alias: {1,2}]   ;;  %s4204_s3 = inlined_call_operand.vmem [shape: f32[768,1], index: 3, kind: input, shape index: {}]   ;;  %s4205_s4 = inlined_call_operand.vmem [shape: f32[1,128], index: 4, kind: input, shape index: {}]   ;;  %s4206_s5 = inlined_call_operand.vmem [shape: f32[768,128], index: 5, kind: output, shape index: {}]  }
   0x1 LB: > { %s2814_s19 = sadd.s32 4294967295, %s3452_s18   ;;  %p2818_p0 = scmp.ge.s32.totalorder %s3452_s18, 1  ;;  %s3452_s18 = sphi %s3485_s18, %s15_s18  }
   0x2   : > { %p211_p1 = scmp.lt.s32.totalorder %s3452_s18, 3 }
   0x4   : > { %p212_p2 = pnand %p2818_p0, %p211_p1 }
   0x6   : > { %215 = sbr.rel (%p212_p2) target bundleno = 562 (0x232), region = 40 }
   0xb   : > { %v3181_v0 = vld [vmem:[%s4202_s1 + $0x38] sm:$0xff]   ;;  %v3454_v1 = vmov 0   ;;  %s250_s22 = smul.u32 48, %s2814_s19  ;;  %v3182_v2 = vld [vmem:[%s4202_s1 + $0x30] sm:$0xff]   ;;  %v3183_v3 = vld [vmem:[%s4202_s1 + $0x28] sm:$0xff]  }
   0xc   : > { %1620 = vmatprep.subr.bf16.mxu0 %v3454_v1  ;;  %3137 = vmatprep.subr.bf16.mxu1 %v3454_v1  ;;  %v3184_v4 = vld [vmem:[%s4202_s1 + $0x20] sm:$0xff]   ;;  %v3185_v5 = vld [vmem:[%s4202_s1 + $0x18] sm:$0xff]   ;;  %v3186_v7 = vld [vmem:[%s4202_s1 + $0x10] sm:$0xff]  }
   0xd   : > { %1621 = vmatpush1.bf16.msra.mxu0 %v3181_v0  ;;  %3153 = vmatpush1.bf16.msra.mxu1 %v3181_v0  ;;  %p251_p3 = scmp.lt.s32.totalorder %s250_s22, 95  ;;  %v3187_v9 = vld [vmem:[%s4202_s1 + $0x8] sm:$0xff]   ;;  %v3188_v10 = vld [vmem:[%s4202_s1] sm:$0xff]   ;;  %v3189_v11 = vld [vmem:[%s4202_s1 + $0x78] sm:$0xff]  }
   0xe   : > { %1622 = vmatprep.subr.bf16.mxu0 %v3454_v1  ;;  %3138 = vmatprep.subr.bf16.mxu1 %v3454_v1  ;;  %v3190_v12 = vld [vmem:[%s4202_s1 + $0x70] sm:$0xff]   ;;  %v3191_v13 = vld [vmem:[%s4202_s1 + $0x68] sm:$0xff]   ;;  %v3192_v14 = vld [vmem:[%s4202_s1 + $0x60] sm:$0xff]  }
   0xf   : > { %3179 = vset.pattern.permute.xlu0 %v3454_v1  ;;  %3180 = vset.pattern.permute.xlu1 %v3454_v1  ;;  %s4216_s22 = smov (!%p251_p3, %s250_s22), 95  ;;  %v3193_v15 = vld [vmem:[%s4202_s1 + $0x58] sm:$0xff]   ;;  %v3194_v16 = vld [vmem:[%s4202_s1 + $0x50] sm:$0xff]   ;;  %v3195_v17 = vld [vmem:[%s4202_s1 + $0x48] sm:$0xff]  }
  0x10   : > { %s3169_s29 = smul.u32 24, %s4216_s22  ;;  %v3196_v18 = vld [vmem:[%s4202_s1 + $0x40] sm:$0xff]   ;;  %v3203_v21 = vld [vmem:[%s4202_s1 + $0xb8] sm:$0xff]   ;;  %v3209_v25 = vld [vmem:[%s4202_s1 + $0xb0] sm:$0xff]   ;;  %s2821_s10 = sshll.u32 %s4216_s22, 3 }
  0x11   : > { %1623 = vmatpush1.bf16.msra.mxu0 %v3182_v2  ;;  %3154 = vmatpush1.bf16.msra.mxu1 %v3182_v2  ;;  %v3204_v22 = vld [vmem:[%s4202_s1 + $0x138] sm:$0xff]   ;;  %v3212_v26 = vld [vmem:[%s4202_s1 + $0x130] sm:$0xff]   ;;  %v3213_v29 = vld [vmem:[%s4202_s1 + $0xa8] sm:$0xff]   ;;  %s3703_s13 = scalar_lea.vmem %s4204_s3, %s2821_s10  ;;  %s4027_s21 = scalar_lea.vmem %s4206_s5, %s2821_s10 }
  0x12   : > { %1624 = vmatprep.subr.bf16.mxu0 %v3454_v1  ;;  %3139 = vmatprep.subr.bf16.mxu1 %v3454_v1  ;;  %s3524_s9 = scalar_lea.vmem %s4201_s0, %s3169_s29  ;;  %v3218_v32 = vld [vmem:[%s4202_s1 + $0x128] sm:$0xff]   ;;  %v3221_v33 = vld [vmem:[%s4202_s1 + $0xa0] sm:$0xff]   ;;  %v3229_v39 = vld [vmem:[%s4202_s1 + $0x98] sm:$0xff]  }
  0x13   : > { %v3199_v6 = vld [vmem:[%s3524_s9 + $0x4] ss:$24 sps:$4 sm:$0xff]   ;;  %v3197_v19 = vld [vmem:[%s3524_s9] ss:$24 sps:$4 sm:$0xff]   ;;  %v3205_v23 = vld [vmem:[%s3524_s9 + $0x34] ss:$24 sps:$4 sm:$0xff]  }
  0x14   : > { %v3202_v8 = vld [vmem:[%s3524_s9 + $0x244] ss:$24 sps:$4 sm:$0xff]   ;;  %1652 = vmatprep.mubr.bf16.mxu0 %v3199_v6  ;;  %v3200_v20 = vld [vmem:[%s3524_s9 + $0x240] ss:$24 sps:$4 sm:$0xff]   ;;  %v3207_v24 = vld [vmem:[%s3524_s9 + $0x274] ss:$24 sps:$4 sm:$0xff]  }
  0x15   : > { %1625 = vmatpush1.bf16.msra.mxu0 %v3183_v3  ;;  %3155 = vmatpush1.bf16.msra.mxu1 %v3183_v3  ;;  %v3210_v27 = vld [vmem:[%s3524_s9 + $0x30] ss:$24 sps:$4 sm:$0xff]   ;;  %v3214_v30 = vld [vmem:[%s3524_s9 + $0x64] ss:$24 sps:$4 sm:$0xff]   ;;  %v3219_v35 = vld [vmem:[%s3524_s9 + $0x60] ss:$24 sps:$4 sm:$0xff]  }
  0x16   : > { %1626 = vmatprep.subr.bf16.mxu0 %v3454_v1  ;;  %3140 = vmatprep.subr.bf16.mxu1 %v3454_v1  ;;  %v3211_v28 = vld [vmem:[%s3524_s9 + $0x270] ss:$24 sps:$4 sm:$0xff]   ;;  %v3216_v31 = vld [vmem:[%s3524_s9 + $0x2a4] ss:$24 sps:$4 sm:$0xff]   ;;  %v3220_v36 = vld [vmem:[%s3524_s9 + $0x2a0] ss:$24 sps:$4 sm:$0xff]  }
  0x17   : > { %1748 = vmatprep.mubr.bf16.mxu1 %v3202_v8  ;;  %v3222_v34 = vld [vmem:[%s4202_s1 + $0x120] sm:$0xff]   ;;  %v3223_v37 = vld [vmem:[%s3524_s9 + $0x94] ss:$24 sps:$4 sm:$0xff]   ;;  %v3230_v40 = vld [vmem:[%s4202_s1 + $0x118] sm:$0xff]  }
  0x18   : > { %v3225_v38 = vld [vmem:[%s3524_s9 + $0x2d4] ss:$24 sps:$4 sm:$0xff]   ;;  %v3227_v43 = vld [vmem:[%s3524_s9 + $0x90] ss:$24 sps:$4 sm:$0xff]   ;;  %v3231_v45 = vld [vmem:[%s3524_s9 + $0xc4] ss:$24 sps:$4 sm:$0xff]  }
  0x19   : > { %1627 = vmatpush1.bf16.msra.mxu0 %v3184_v4  ;;  %3156 = vmatpush1.bf16.msra.mxu1 %v3184_v4  ;;  %v3235_v41 = vld [vmem:[%s4202_s1 + $0x90] sm:$0xff]   ;;  %v3233_v46 = vld [vmem:[%s3524_s9 + $0x304] ss:$24 sps:$4 sm:$0xff]   ;;  %v3239_v47 = vld [vmem:[%s4202_s1 + $0x88] sm:$0xff]  }
  0x1a   : > { %1628 = vmatprep.subr.bf16.mxu0 %v3454_v1  ;;  %3141 = vmatprep.subr.bf16.mxu1 %v3454_v1  ;;  %v3238_v42 = vld [vmem:[%s4202_s1 + $0x110] sm:$0xff]   ;;  %v3244_v48 = vld [vmem:[%s4202_s1 + $0x108] sm:$0xff]   ;;  %v3247_v49 = vld [vmem:[%s4202_s1 + $0x80] sm:$0xff]  }
  0x1b   : > { %v3228_v44 = vld [vmem:[%s3524_s9 + $0x2d0] ss:$24 sps:$4 sm:$0xff]   ;;  %v3248_v50 = vld [vmem:[%s4202_s1 + $0x100] sm:$0xff]   ;;  %v3240_v53 = vld [vmem:[%s3524_s9 + $0xf4] ss:$24 sps:$4 sm:$0xff]  }
  0x1c   : > { %v3236_v51 = vld [vmem:[%s3524_s9 + $0xc0] ss:$24 sps:$4 sm:$0xff]   ;;  %v3242_v54 = vld [vmem:[%s3524_s9 + $0x334] ss:$24 sps:$4 sm:$0xff]   ;;  %v3245_v59 = vld [vmem:[%s3524_s9 + $0xf0] ss:$24 sps:$4 sm:$0xff]  }
  0x1d   : > { %1629 = vmatpush1.bf16.msra.mxu0 %v3185_v5  ;;  %3157 = vmatpush1.bf16.msra.mxu1 %v3185_v5  ;;  %v3237_v52 = vld [vmem:[%s3524_s9 + $0x300] ss:$24 sps:$4 sm:$0xff]   ;;  %v3261_v57 = vld [vmem:[%s4202_s1 + $0xf0] sm:$0xff]   ;;  %v3249_v61 = vld [vmem:[%s3524_s9 + $0x124] ss:$24 sps:$4 sm:$0xff]  }
  0x1e   : > { %1630 = vmatprep.subr.bf16.mxu0 %v3454_v1  ;;  %3142 = vmatprep.subr.bf16.mxu1 %v3454_v1  ;;  %v3255_v55 = vld [vmem:[%s4202_s1 + $0xf8] sm:$0xff]   ;;  %v3264_v58 = vld [vmem:[%s4202_s1 + $0x170] sm:$0xff]   ;;  %v3265_v63 = vld [vmem:[%s4202_s1 + $0xe8] sm:$0xff]  }
  0x1f   : > { %v3256_v56 = vld [vmem:[%s4202_s1 + $0x178] sm:$0xff]   ;;  %v3246_v60 = vld [vmem:[%s3524_s9 + $0x330] ss:$24 sps:$4 sm:$0xff]   ;;  %v3273_v2 = vld [vmem:[%s4202_s1 + $0xe0] sm:$0xff]  }
  0x20   : > { %v3251_v62 = vld [vmem:[%s3524_s9 + $0x364] ss:$24 sps:$4 sm:$0xff]   ;;  %v3270_v0 = vld [vmem:[%s4202_s1 + $0x168] sm:$0xff]   ;;  %v3253_v4 = vld [vmem:[%s3524_s9 + $0x120] ss:$24 sps:$4 sm:$0xff]  }
  0x21   : > { %1631 = vmatpush1.bf16.msra.mxu0 %v3186_v7  ;;  %3158 = vmatpush1.bf16.msra.mxu1 %v3186_v7  ;;  %v2295_v3 = vld [vmem:[%s3703_s13] sm:$0xff]  ;;  %v2297_v7 = vld [vmem:[%s3703_s13 + $0x10] sm:$0xff] }
  0x22   : > { %1632 = vmatprep.subr.bf16.mxu0 %v3454_v1  ;;  %3143 = vmatprep.subr.bf16.mxu1 %v3454_v1  ;;  %v3254_v5 = vld [vmem:[%s3524_s9 + $0x360] ss:$24 sps:$4 sm:$0xff]   ;;  %v3257_v8 = vld [vmem:[%s3524_s9 + $0x154] ss:$24 sps:$4 sm:$0xff]  }
  0x23   : > { %v3274_v6 = vld [vmem:[%s4202_s1 + $0x160] sm:$0xff]   ;;  %2345 = vperm.xlu0 %3179, %v2295_v3   ;;  %2355 = vperm.xlu1 %3180, %v2297_v7   ;;  %v2321_v7 = vld [vmem:[%s3703_s13 + $0xd0] sm:$0xff] }
  0x24   : > { %v3312_v3 = vld [vmem:[%s3524_s9 + $0x40] ss:$24 sps:$4 sm:$0xff]  }
  0x25   : > { %1633 = vmatpush1.bf16.msra.mxu0 %v3187_v9  ;;  %3159 = vmatpush1.bf16.msra.mxu1 %v3187_v9  ;;  %v3259_v9 = vld [vmem:[%s3524_s9 + $0x394] ss:$24 sps:$4 sm:$0xff]  }
  0x26   : > { %1634 = vmatprep.subr.bf16.mxu0 %v3454_v1  ;;  %3144 = vmatprep.subr.bf16.mxu1 %v3454_v1 }
  0x29   : > { %1635 = vmatpush1.bf16.msra.mxu0 %v3188_v10  ;;  %3160 = vmatpush1.bf16.msra.mxu1 %v3188_v10  ;;  %v3281_v10 = vld [vmem:[%s4202_s1 + $0xd8] sm:$0xff]  }
  0x2a   : > { %1636 = vmatprep.subr.bf16.mxu0 %v3454_v1  ;;  %3145 = vmatprep.subr.bf16.mxu1 %v3454_v1 }
  0x2d   : > { %1637 = vmatpush2.bf16.msra.mxu0 %v3189_v11  ;;  %3161 = vmatpush2.bf16.msra.mxu1 %v3189_v11  ;;  %v3282_v11 = vld [vmem:[%s4202_s1 + $0x158] sm:$0xff]  }
  0x2e   : > { %1638 = vmatprep.subr.bf16.mxu0 %v3454_v1  ;;  %3146 = vmatprep.subr.bf16.mxu1 %v3454_v1 }
  0x31   : > { %1639 = vmatpush2.bf16.msra.mxu0 %v3190_v12  ;;  %3162 = vmatpush2.bf16.msra.mxu1 %v3190_v12  ;;  %v3287_v12 = vld [vmem:[%s4202_s1 + $0xd0] sm:$0xff]  }
  0x32   : > { %1640 = vmatprep.subr.bf16.mxu0 %v3454_v1  ;;  %3147 = vmatprep.subr.bf16.mxu1 %v3454_v1 }
  0x35   : > { %1641 = vmatpush2.bf16.msra.mxu0 %v3191_v13  ;;  %3163 = vmatpush2.bf16.msra.mxu1 %v3191_v13  ;;  %v3290_v13 = vld [vmem:[%s4202_s1 + $0x150] sm:$0xff]  }
  0x36   : > { %1642 = vmatprep.subr.bf16.mxu0 %v3454_v1  ;;  %3148 = vmatprep.subr.bf16.mxu1 %v3454_v1 }
  0x39   : > { %1643 = vmatpush2.bf16.msra.mxu0 %v3192_v14  ;;  %3164 = vmatpush2.bf16.msra.mxu1 %v3192_v14  ;;  %v2296_v14 = vld [vmem:[%s3703_s13 + $0x8] sm:$0xff] }
  0x3a   : > { %1644 = vmatprep.subr.bf16.mxu0 %v3454_v1  ;;  %3149 = vmatprep.subr.bf16.mxu1 %v3454_v1 }
  0x3b   : > { %2350 = vperm.xlu0 %3179, %v2296_v14   ;;  %v2326_v14 = vld [vmem:[%s3703_s13 + $0xf8] sm:$0xff] }
  0x3d   : > { %1645 = vmatpush2.bf16.msra.mxu0 %v3193_v15  ;;  %3165 = vmatpush2.bf16.msra.mxu1 %v3193_v15  ;;  %v2298_v15 = vld [vmem:[%s3703_s13 + $0x18] sm:$0xff] }
  0x3e   : > { %1646 = vmatprep.subr.bf16.mxu0 %v3454_v1  ;;  %3150 = vmatprep.subr.bf16.mxu1 %v3454_v1 }
  0x3f   : > { %2360 = vperm.xlu1 %3180, %v2298_v15   ;;  %v2325_v15 = vld [vmem:[%s3703_s13 + $0xf0] sm:$0xff] }
  0x41   : > { %1647 = vmatpush2.bf16.msra.mxu0 %v3194_v16  ;;  %3166 = vmatpush2.bf16.msra.mxu1 %v3194_v16  ;;  %v3262_v16 = vld [vmem:[%s3524_s9 + $0x150] ss:$24 sps:$4 sm:$0xff]  }
  0x42   : > { %1648 = vmatprep.subr.bf16.mxu0 %v3454_v1  ;;  %3151 = vmatprep.subr.bf16.mxu1 %v3454_v1 }
  0x45   : > { %1649 = vmatpush2.bf16.msra.mxu0 %v3195_v17  ;;  %3167 = vmatpush2.bf16.msra.mxu1 %v3195_v17  ;;  %v3263_v17 = vld [vmem:[%s3524_s9 + $0x390] ss:$24 sps:$4 sm:$0xff]  }
  0x46   : > { %1650 = vmatprep.subr.bf16.mxu0 %v3454_v1  ;;  %3152 = vmatprep.subr.bf16.mxu1 %v3454_v1 }
  0x49   : > { %1651 = vmatpush2.bf16.msra.mxu0 %v3196_v18  ;;  %3168 = vmatpush2.bf16.msra.mxu1 %v3196_v18  ;;  %v3266_v18 = vld [vmem:[%s3524_s9 + $0x184] ss:$24 sps:$4 sm:$0xff]  }
  0x4a   : > { %1845 = vmatprep.subr.bf16.mxu1 %v3454_v1  ;;  %2070 = vmatprep.subr.bf16.mxu0 %v3454_v1 }
  0x4c   : > { %1653 = vmatmul.mubr.bf16.vlgmr.msra.gmra.mxu0 %v3197_v19  ;;  %1749 = vmatmul.mubr.bf16.vlgmr.msra.gmra.mxu1 %v3200_v20  ;;  %v3268_v19 = vld [vmem:[%s3524_s9 + $0x3c4] ss:$24 sps:$4 sm:$0xff]   ;;  %v3291_v20 = vld [vmem:[%s4202_s1 + $0xc8] sm:$0xff]  }
  0x4d   : > { %1846 = vmatpush1.bf16.msra.mxu1 %v3203_v21  ;;  %2071 = vmatpush1.bf16.msra.mxu0 %v3204_v22  ;;  %v3296_v21 = vld [vmem:[%s4202_s1 + $0x148] sm:$0xff]   ;;  %v3299_v22 = vld [vmem:[%s4202_s1 + $0xc0] sm:$0xff]  }
  0x4e   : > { %1847 = vmatprep.subr.bf16.mxu1 %v3454_v1  ;;  %1660 = vmatprep.mubr.bf16.mxu0 %v3205_v23  ;;  %v3300_v23 = vld [vmem:[%s4202_s1 + $0x140] sm:$0xff]  }
  0x4f   : > { %1756 = vmatprep.mubr.bf16.mxu1 %v3207_v24  ;;  %2072 = vmatprep.subr.bf16.mxu0 %v3454_v1  ;;  %v2300_v24 = vld [vmem:[%s3703_s13 + $0x28] sm:$0xff] }
  0x50   : > { %2370 = vperm.xlu1 %3180, %v2300_v24   ;;  %v2332_v24 = vld [vmem:[%s3703_s13 + $0x128] sm:$0xff] }
  0x51   : > { %1848 = vmatpush1.bf16.msra.mxu1 %v3209_v25  ;;  %2073 = vmatpush1.bf16.msra.mxu0 %v3212_v26  ;;  %v2299_v25 = vld [vmem:[%s3703_s13 + $0x20] sm:$0xff] }
  0x52   : > { %1849 = vmatprep.subr.bf16.mxu1 %v3454_v1  ;;  %2074 = vmatprep.subr.bf16.mxu0 %v3454_v1  ;;  %v3271_v26 = vld [vmem:[%s3524_s9 + $0x180] ss:$24 sps:$4 sm:$0xff]  }
  0x53   : > { %2365 = vperm.xlu0 %3179, %v2299_v25   ;;  %v2331_v25 = vld [vmem:[%s3703_s13 + $0x120] sm:$0xff] }
  0x54   : > { %1661 = vmatmul.mubr.bf16.gmra.mxu0 %v3210_v27  ;;  %1757 = vmatmul.mubr.bf16.gmra.mxu1 %v3211_v28  ;;  %v3272_v27 = vld [vmem:[%s3524_s9 + $0x3c0] ss:$24 sps:$4 sm:$0xff]   ;;  %v3275_v28 = vld [vmem:[%s3524_s9 + $0x1b4] ss:$24 sps:$4 sm:$0xff]  }
  0x55   : > { %1850 = vmatpush1.bf16.msra.mxu1 %v3213_v29  ;;  %1668 = vmatprep.mubr.bf16.mxu0 %v3214_v30  ;;  %v3277_v29 = vld [vmem:[%s3524_s9 + $0x3f4] ss:$24 sps:$4 sm:$0xff]   ;;  %v2302_v30 = vld [vmem:[%s3703_s13 + $0x38] sm:$0xff] }
  0x56   : > { %1764 = vmatprep.mubr.bf16.mxu1 %v3216_v31  ;;  %2075 = vmatpush1.bf16.msra.mxu0 %v3218_v32  ;;  %v2301_v31 = vld [vmem:[%s3703_s13 + $0x30] sm:$0xff]  ;;  %v2304_v32 = vld [vmem:[%s3703_s13 + $0x48] sm:$0xff] }
  0x57   : > { %1851 = vmatprep.subr.bf16.mxu1 %v3454_v1  ;;  %2076 = vmatprep.subr.bf16.mxu0 %v3454_v1 }
  0x58   : > { %2380 = vperm.xlu1 %3180, %v2302_v30   ;;  %2375 = vperm.xlu0 %3179, %v2301_v31   ;;  %v2334_v30 = vld [vmem:[%s3703_s13 + $0x138] sm:$0xff]  ;;  %v2333_v31 = vld [vmem:[%s3703_s13 + $0x130] sm:$0xff] }
  0x59   : > { %1852 = vmatpush1.bf16.msra.mxu1 %v3221_v33  ;;  %v2303_v33 = vld [vmem:[%s3703_s13 + $0x40] sm:$0xff] }
  0x5a   : > { %2077 = vmatpush1.bf16.msra.mxu0 %v3222_v34  ;;  %1853 = vmatprep.subr.bf16.mxu1 %v3454_v1  ;;  %v3280_v34 = vld [vmem:[%s3524_s9 + $0x3f0] ss:$24 sps:$4 sm:$0xff]  }
  0x5b   : > { %2078 = vmatprep.subr.bf16.mxu0 %v3454_v1 }
  0x5c   : > { %1669 = vmatmul.mubr.bf16.gmra.mxu0 %v3219_v35  ;;  %1765 = vmatmul.mubr.bf16.gmra.mxu1 %v3220_v36  ;;  %v3283_v35 = vld [vmem:[%s3524_s9 + $0x1e4] ss:$24 sps:$4 sm:$0xff]  }
  0x5d   : > { %1676 = vmatprep.mubr.bf16.mxu0 %v3223_v37  ;;  %1772 = vmatprep.mubr.bf16.mxu1 %v3225_v38  ;;  %v3285_v36 = vld [vmem:[%s3524_s9 + $0x424] ss:$24 sps:$4 sm:$0xff]   ;;  %v2305_v38 = vld [vmem:[%s3703_s13 + $0x50] sm:$0xff] }
  0x5e   : > { %1854 = vmatpush1.bf16.msra.mxu1 %v3229_v39  ;;  %2079 = vmatpush1.bf16.msra.mxu0 %v3230_v40  ;;  %v2306_v37 = vld [vmem:[%s3703_s13 + $0x58] sm:$0xff]  ;;  %v2308_v39 = vld [vmem:[%s3703_s13 + $0x68] sm:$0xff]  ;;  %v2307_v40 = vld [vmem:[%s3703_s13 + $0x60] sm:$0xff] }
  0x5f   : > { %1855 = vmatprep.subr.bf16.mxu1 %v3454_v1  ;;  %2080 = vmatprep.subr.bf16.mxu0 %v3454_v1 }
  0x60   : > { %2390 = vperm.xlu1 %3180, %v2304_v32   ;;  %2385 = vperm.xlu0 %3179, %v2303_v33   ;;  %v2336_v32 = vld [vmem:[%s3703_s13 + $0x148] sm:$0xff]  ;;  %v2335_v33 = vld [vmem:[%s3703_s13 + $0x140] sm:$0xff] }
  0x62   : > { %1856 = vmatpush1.bf16.msra.mxu1 %v3235_v41  ;;  %2081 = vmatpush1.bf16.msra.mxu0 %v3238_v42  ;;  %v3288_v41 = vld [vmem:[%s3524_s9 + $0x1e0] ss:$24 sps:$4 sm:$0xff]  }
  0x63   : > { %1857 = vmatprep.subr.bf16.mxu1 %v3454_v1  ;;  %2082 = vmatprep.subr.bf16.mxu0 %v3454_v1  ;;  %v3289_v42 = vld [vmem:[%s3524_s9 + $0x420] ss:$24 sps:$4 sm:$0xff]  }
  0x64   : > { %1677 = vmatmul.mubr.bf16.gmra.mxu0 %v3227_v43  ;;  %1773 = vmatmul.mubr.bf16.gmra.mxu1 %v3228_v44  ;;  %v3292_v43 = vld [vmem:[%s3524_s9 + $0x214] ss:$24 sps:$4 sm:$0xff]  }
  0x65   : > { %1684 = vmatprep.mubr.bf16.mxu0 %v3231_v45  ;;  %1780 = vmatprep.mubr.bf16.mxu1 %v3233_v46  ;;  %v3294_v44 = vld [vmem:[%s3524_s9 + $0x454] ss:$24 sps:$4 sm:$0xff]   ;;  %v2310_v45 = vld [vmem:[%s3703_s13 + $0x78] sm:$0xff] }
  0x66   : > { %1858 = vmatpush1.bf16.msra.mxu1 %v3239_v47  ;;  %2083 = vmatpush1.bf16.msra.mxu0 %v3244_v48  ;;  %v2309_v46 = vld [vmem:[%s3703_s13 + $0x70] sm:$0xff]  ;;  %v2312_v47 = vld [vmem:[%s3703_s13 + $0x88] sm:$0xff]  ;;  %v2311_v48 = vld [vmem:[%s3703_s13 + $0x80] sm:$0xff] }
  0x67   : > { %1859 = vmatprep.subr.bf16.mxu1 %v3454_v1  ;;  %2084 = vmatprep.subr.bf16.mxu0 %v3454_v1 }
  0x68   : > { %2400 = vperm.xlu1 %3180, %v2306_v37   ;;  %2395 = vperm.xlu0 %3179, %v2305_v38   ;;  %v2338_v37 = vld [vmem:[%s3703_s13 + $0x158] sm:$0xff]  ;;  %v2337_v38 = vld [vmem:[%s3703_s13 + $0x150] sm:$0xff] }
  0x6a   : > { %1860 = vmatpush1.bf16.msra.mxu1 %v3247_v49  ;;  %2085 = vmatpush1.bf16.msra.mxu0 %v3248_v50  ;;  %v3297_v49 = vld [vmem:[%s3524_s9 + $0x210] ss:$24 sps:$4 sm:$0xff]  }
  0x6b   : > { %1861 = vmatprep.subr.bf16.mxu1 %v3454_v1  ;;  %2086 = vmatprep.subr.bf16.mxu0 %v3454_v1  ;;  %v3298_v50 = vld [vmem:[%s3524_s9 + $0x450] ss:$24 sps:$4 sm:$0xff]  }
  0x6c   : > { %1685 = vmatmul.mubr.bf16.gmra.mxu0 %v3236_v51  ;;  %1781 = vmatmul.mubr.bf16.gmra.mxu1 %v3237_v52  ;;  %v3303_v51 = vld [vmem:[%s3524_s9 + $0xc] ss:$24 sps:$4 sm:$0xff]  }
  0x6d   : > { %1692 = vmatprep.mubr.bf16.mxu0 %v3240_v53  ;;  %1788 = vmatprep.mubr.bf16.mxu1 %v3242_v54  ;;  %v3306_v52 = vld [vmem:[%s3524_s9 + $0x14] ss:$24 sps:$4 sm:$0xff]   ;;  %v2314_v53 = vld [vmem:[%s3703_s13 + $0x98] sm:$0xff] }
  0x6e   : > { %1862 = vmatpush2.bf16.msra.mxu1 %v3255_v55  ;;  %2087 = vmatpush2.bf16.msra.mxu0 %v3256_v56  ;;  %v2313_v54 = vld [vmem:[%s3703_s13 + $0x90] sm:$0xff]  ;;  %v2316_v55 = vld [vmem:[%s3703_s13 + $0xa8] sm:$0xff]  ;;  %v2315_v56 = vld [vmem:[%s3703_s13 + $0xa0] sm:$0xff] }
  0x6f   : > { %1863 = vmatprep.subr.bf16.mxu1 %v3454_v1  ;;  %2088 = vmatprep.subr.bf16.mxu0 %v3454_v1 }
  0x70   : > { %2410 = vperm.xlu1 %3180, %v2308_v39   ;;  %2405 = vperm.xlu0 %3179, %v2307_v40   ;;  %v2340_v39 = vld [vmem:[%s3703_s13 + $0x168] sm:$0xff]  ;;  %v2339_v40 = vld [vmem:[%s3703_s13 + $0x160] sm:$0xff] }
  0x72   : > { %1864 = vmatpush2.bf16.msra.mxu1 %v3261_v57  ;;  %2089 = vmatpush2.bf16.msra.mxu0 %v3264_v58  ;;  %v3301_v57 = vld [vmem:[%s3524_s9 + $0x8] ss:$24 sps:$4 sm:$0xff]  }
  0x73   : > { %1865 = vmatprep.subr.bf16.mxu1 %v3454_v1  ;;  %2090 = vmatprep.subr.bf16.mxu0 %v3454_v1  ;;  %v3304_v58 = vld [vmem:[%s3524_s9 + $0x10] ss:$24 sps:$4 sm:$0xff]  }
  0x74   : > { %1693 = vmatmul.mubr.bf16.gmra.mxu0 %v3245_v59  ;;  %1789 = vmatmul.mubr.bf16.gmra.mxu1 %v3246_v60  ;;  %v3307_v59 = vld [vmem:[%s3524_s9 + $0x3c] ss:$24 sps:$4 sm:$0xff]  }
  0x75   : > { %1700 = vmatprep.mubr.bf16.mxu0 %v3249_v61  ;;  %1796 = vmatprep.mubr.bf16.mxu1 %v3251_v62  ;;  %v3309_v60 = vld [vmem:[%s3524_s9 + $0x44] ss:$24 sps:$4 sm:$0xff]   ;;  %v2317_v62 = vld [vmem:[%s3703_s13 + $0xb0] sm:$0xff] }
  0x76   : > { %1866 = vmatpush2.bf16.msra.mxu1 %v3265_v63  ;;  %2091 = vmatpush2.bf16.msra.mxu0 %v3270_v0  ;;  %v2318_v61 = vld [vmem:[%s3703_s13 + $0xb8] sm:$0xff]  ;;  %v2320_v63 = vld [vmem:[%s3703_s13 + $0xc8] sm:$0xff]  ;;  %v2319_v0 = vld [vmem:[%s3703_s13 + $0xc0] sm:$0xff] }
  0x77   : > { %1867 = vmatprep.subr.bf16.mxu1 %v3454_v1  ;;  %2092 = vmatprep.subr.bf16.mxu0 %v3454_v1 }
  0x78   : > { %2420 = vperm.xlu1 %3180, %v2310_v45   ;;  %2415 = vperm.xlu0 %3179, %v2309_v46   ;;  %v2342_v45 = vld [vmem:[%s3703_s13 + $0x178] sm:$0xff]  ;;  %v2341_v46 = vld [vmem:[%s3703_s13 + $0x170] sm:$0xff] }
  0x7a   : > { %1868 = vmatpush2.bf16.msra.mxu1 %v3273_v2  ;;  %2093 = vmatpush2.bf16.msra.mxu0 %v3274_v6  ;;  %v3311_v2 = vld [vmem:[%s3524_s9 + $0x38] ss:$24 sps:$4 sm:$0xff]  }
  0x7b   : > { %1869 = vmatprep.subr.bf16.mxu1 %v3454_v1  ;;  %2094 = vmatprep.subr.bf16.mxu0 %v3454_v1  ;;  %v2322_v6 = vld [vmem:[%s3703_s13 + $0xd8] sm:$0xff] }
  0x7c   : > { %1701 = vmatmul.mubr.bf16.gmra.mxu0 %v3253_v4  ;;  %1797 = vmatmul.mubr.bf16.gmra.mxu1 %v3254_v5  ;;  %v3313_v4 = vld [vmem:[%s3524_s9 + $0x6c] ss:$24 sps:$4 sm:$0xff]  }
  0x7d   : > { %1708 = vmatprep.mubr.bf16.mxu0 %v3257_v8  ;;  %1804 = vmatprep.mubr.bf16.mxu1 %v3259_v9  ;;  %v3315_v5 = vld [vmem:[%s3524_s9 + $0x74] ss:$24 sps:$4 sm:$0xff]   ;;  %v2323_v9 = vld [vmem:[%s3703_s13 + $0xe0] sm:$0xff] }
  0x7e   : > { %1870 = vmatpush2.bf16.msra.mxu1 %v3281_v10  ;;  %2095 = vmatpush2.bf16.msra.mxu0 %v3282_v11  ;;  %v2324_v8 = vld [vmem:[%s3703_s13 + $0xe8] sm:$0xff] }
  0x7f   : > { %1871 = vmatprep.subr.bf16.mxu1 %v3454_v1  ;;  %2096 = vmatprep.subr.bf16.mxu0 %v3454_v1  ;;  %v3317_v10 = vld [vmem:[%s3524_s9 + $0x68] ss:$24 sps:$4 sm:$0xff]  }
  0x80   : > { %2430 = vperm.xlu1 %3180, %v2312_v47   ;;  %2425 = vperm.xlu0 %3179, %v2311_v48   ;;  %v3318_v11 = vld [vmem:[%s3524_s9 + $0x70] ss:$24 sps:$4 sm:$0xff]   ;;  %v3348_v48 = vld [vmem:[%s3524_s9 + $0x160] ss:$24 sps:$4 sm:$0xff]  }
  0x81   : > { %v3347_v47 = vld [vmem:[%s3524_s9 + $0x158] ss:$24 sps:$4 sm:$0xff]  }
  0x82   : > { %1872 = vmatpush2.bf16.msra.mxu1 %v3287_v12  ;;  %2097 = vmatpush2.bf16.msra.mxu0 %v3290_v13  ;;  %v3319_v12 = vld [vmem:[%s3524_s9 + $0x9c] ss:$24 sps:$4 sm:$0xff]  }
  0x83   : > { %1873 = vmatprep.subr.bf16.mxu1 %v3454_v1  ;;  %2098 = vmatprep.subr.bf16.mxu0 %v3454_v1  ;;  %v3321_v13 = vld [vmem:[%s3524_s9 + $0xa4] ss:$24 sps:$4 sm:$0xff]  }
  0x84   : > { %1709 = vmatmul.mubr.bf16.gmra.mxu0 %v3262_v16  ;;  %1805 = vmatmul.mubr.bf16.gmra.mxu1 %v3263_v17  ;;  %v2328_v16 = vld [vmem:[%s3703_s13 + $0x108] sm:$0xff]  ;;  %v2327_v17 = vld [vmem:[%s3703_s13 + $0x100] sm:$0xff] }
  0x85   : > { %1716 = vmatprep.mubr.bf16.mxu0 %v3266_v18  ;;  %1812 = vmatprep.mubr.bf16.mxu1 %v3268_v19  ;;  %v3323_v18 = vld [vmem:[%s3524_s9 + $0x98] ss:$24 sps:$4 sm:$0xff]  }
  0x86   : > { %1874 = vmatpush2.bf16.msra.mxu1 %v3291_v20  ;;  %2099 = vmatpush2.bf16.msra.mxu0 %v3296_v21  ;;  %v3324_v19 = vld [vmem:[%s3524_s9 + $0xa0] ss:$24 sps:$4 sm:$0xff]   ;;  %v3325_v20 = vld [vmem:[%s3524_s9 + $0xcc] ss:$24 sps:$4 sm:$0xff]  }
  0x87   : > { %1875 = vmatprep.subr.bf16.mxu1 %v3454_v1  ;;  %2100 = vmatprep.subr.bf16.mxu0 %v3454_v1  ;;  %v3279_v1 = vld [vmem:[%s3524_s9 + $0x1b0] ss:$24 sps:$4 sm:$0xff]   ;;  %v3327_v21 = vld [vmem:[%s3524_s9 + $0xd4] ss:$24 sps:$4 sm:$0xff]  }
  0x88   : > { %2440 = vperm.xlu1 %3180, %v2314_v53   ;;  %2435 = vperm.xlu0 %3179, %v2313_v54   ;;  %v3355_v53 = vld [vmem:[%s3524_s9 + $0x1bc] ss:$24 sps:$4 sm:$0xff]  }
  0x89   : > { %v3357_v54 = vld [vmem:[%s3524_s9 + $0x1c4] ss:$24 sps:$4 sm:$0xff]  }
  0x8a   : > { %1876 = vmatpush2.bf16.msra.mxu1 %v3299_v22  ;;  %2101 = vmatpush2.bf16.msra.mxu0 %v3300_v23  ;;  %v2330_v22 = vld [vmem:[%s3703_s13 + $0x118] sm:$0xff]  ;;  %v2329_v23 = vld [vmem:[%s3703_s13 + $0x110] sm:$0xff]  ;;  %s2820_s13 = sshll.u32 %s4216_s22, 2 }
  0x8b   : > { %s4003_s16 = scalar_lea.vmem %s4203_s2, %s2820_s13 }
  0x8c   : > { %1717 = vmatmul.mubr.bf16.gmra.mxu0 %v3271_v26  ;;  %1813 = vmatmul.mubr.bf16.gmra.mxu1 %v3272_v27  ;;  %v3329_v26 = vld [vmem:[%s3524_s9 + $0xc8] ss:$24 sps:$4 sm:$0xff]  }
  0x8d   : > { %1724 = vmatprep.mubr.bf16.mxu0 %v3275_v28  ;;  %1820 = vmatprep.mubr.bf16.mxu1 %v3277_v29  ;;  %v3330_v27 = vld [vmem:[%s3524_s9 + $0xd0] ss:$24 sps:$4 sm:$0xff]   ;;  %v3331_v28 = vld [vmem:[%s3524_s9 + $0xfc] ss:$24 sps:$4 sm:$0xff]  }
  0x8e   : > { %2450 = vperm.xlu1 %3180, %v2316_v55   ;;  %2445 = vperm.xlu0 %3179, %v2315_v56   ;;  %v3333_v29 = vld [vmem:[%s3524_s9 + $0x104] ss:$24 sps:$4 sm:$0xff]   ;;  %v3359_v55 = vld [vmem:[%s3524_s9 + $0x1b8] ss:$24 sps:$4 sm:$0xff]  }
  0x8f   : > { %v3360_v56 = vld [vmem:[%s3524_s9 + $0x1c0] ss:$24 sps:$4 sm:$0xff]  }
  0x92   : > { %2460 = vperm.xlu1 %3180, %v2318_v61   ;;  %2455 = vperm.xlu0 %3179, %v2317_v62   ;;  %v3367_v61 = vld [vmem:[%s3524_s9 + $0x21c] ss:$24 sps:$4 sm:$0xff]  }
  0x93   : > { %v3369_v62 = vld [vmem:[%s3524_s9 + $0x224] ss:$24 sps:$4 sm:$0xff]  }
  0x94   : > { %1725 = vmatmul.mubr.bf16.gmra.mxu0 %v3279_v1  ;;  %1821 = vmatmul.mubr.bf16.gmra.mxu1 %v3280_v34  ;;  %v3335_v1 = vld [vmem:[%s3524_s9 + $0xf8] ss:$24 sps:$4 sm:$0xff]  }
  0x95   : > { %1732 = vmatprep.mubr.bf16.mxu0 %v3283_v35  ;;  %1828 = vmatprep.mubr.bf16.mxu1 %v3285_v36  ;;  %v3336_v34 = vld [vmem:[%s3524_s9 + $0x100] ss:$24 sps:$4 sm:$0xff]   ;;  %v3337_v35 = vld [vmem:[%s3524_s9 + $0x12c] ss:$24 sps:$4 sm:$0xff]  }
  0x96   : > { %2470 = vperm.xlu1 %3180, %v2320_v63   ;;  %2465 = vperm.xlu0 %3179, %v2319_v0   ;;  %v3339_v36 = vld [vmem:[%s3524_s9 + $0x134] ss:$24 sps:$4 sm:$0xff]   ;;  %v3371_v63 = vld [vmem:[%s3524_s9 + $0x218] ss:$24 sps:$4 sm:$0xff]  }
  0x97   : > { %v3372_v0 = vld [vmem:[%s3524_s9 + $0x220] ss:$24 sps:$4 sm:$0xff]  }
  0x9a   : > { %2480 = vperm.xlu1 %3180, %v2322_v6   ;;  %2475 = vperm.xlu0 %3179, %v2321_v7   ;;  %v3379_v6 = vld [vmem:[%s3524_s9 + $0x27c] ss:$24 sps:$4 sm:$0xff]  }
  0x9b   : > { %v3381_v7 = vld [vmem:[%s3524_s9 + $0x284] ss:$24 sps:$4 sm:$0xff]  }
  0x9c   : > { %1733 = vmatmul.mubr.bf16.gmra.mxu0 %v3288_v41  ;;  %1829 = vmatmul.mubr.bf16.gmra.mxu1 %v3289_v42  ;;  %v3341_v41 = vld [vmem:[%s3524_s9 + $0x128] ss:$24 sps:$4 sm:$0xff]  }
  0x9d   : > { %1740 = vmatprep.mubr.bf16.mxu0 %v3292_v43  ;;  %1836 = vmatprep.mubr.bf16.mxu1 %v3294_v44  ;;  %v3342_v42 = vld [vmem:[%s3524_s9 + $0x130] ss:$24 sps:$4 sm:$0xff]   ;;  %v3343_v43 = vld [vmem:[%s3524_s9 + $0x15c] ss:$24 sps:$4 sm:$0xff]  }
  0x9e   : > { %2490 = vperm.xlu1 %3180, %v2324_v8   ;;  %2485 = vperm.xlu0 %3179, %v2323_v9   ;;  %v3345_v44 = vld [vmem:[%s3524_s9 + $0x164] ss:$24 sps:$4 sm:$0xff]  }
  0xa2   : > { %2500 = vperm.xlu1 %3180, %v2326_v14   ;;  %2495 = vperm.xlu0 %3179, %v2325_v15   ;;  %v3383_v14 = vld [vmem:[%s3524_s9 + $0x278] ss:$24 sps:$4 sm:$0xff]  }
  0xa3   : > { %v3384_v15 = vld [vmem:[%s3524_s9 + $0x280] ss:$24 sps:$4 sm:$0xff]  }
  0xa4   : > { %1741 = vmatmul.mubr.bf16.gmra.mxu0 %v3297_v49  ;;  %1837 = vmatmul.mubr.bf16.gmra.mxu1 %v3298_v50  ;;  %v3349_v49 = vld [vmem:[%s3524_s9 + $0x18c] ss:$24 sps:$4 sm:$0xff]  }
  0xa5   : > { %1877 = vmatprep.mubr.bf16.mxu1 %v3303_v51  ;;  %2102 = vmatprep.mubr.bf16.mxu0 %v3306_v52  ;;  %v3351_v50 = vld [vmem:[%s3524_s9 + $0x194] ss:$24 sps:$4 sm:$0xff]   ;;  %v3353_v51 = vld [vmem:[%s3524_s9 + $0x188] ss:$24 sps:$4 sm:$0xff]  }
  0xa6   : > { %2510 = vperm.xlu1 %3180, %v2328_v16   ;;  %2505 = vperm.xlu0 %3179, %v2327_v17   ;;  %v3354_v52 = vld [vmem:[%s3524_s9 + $0x190] ss:$24 sps:$4 sm:$0xff]   ;;  %v3385_v16 = vld [vmem:[%s3524_s9 + $0x2ac] ss:$24 sps:$4 sm:$0xff]  }
  0xa7   : > { %v3387_v17 = vld [vmem:[%s3524_s9 + $0x2b4] ss:$24 sps:$4 sm:$0xff]  }
  0xaa   : > { %2520 = vperm.xlu1 %3180, %v2330_v22   ;;  %2515 = vperm.xlu0 %3179, %v2329_v23  }
  0xac   : > { %1878 = vmatmul.mubr.bf16.vlgmr.msra.gmra.mxu1 %v3301_v57  ;;  %2103 = vmatmul.mubr.bf16.vlgmr.msra.gmra.mxu0 %v3304_v58  ;;  %v3361_v57 = vld [vmem:[%s3524_s9 + $0x1ec] ss:$24 sps:$4 sm:$0xff]  }
  0xad   : > { %1885 = vmatprep.mubr.bf16.mxu1 %v3307_v59  ;;  %2110 = vmatprep.mubr.bf16.mxu0 %v3309_v60  ;;  %v3363_v58 = vld [vmem:[%s3524_s9 + $0x1f4] ss:$24 sps:$4 sm:$0xff]   ;;  %v3365_v59 = vld [vmem:[%s3524_s9 + $0x1e8] ss:$24 sps:$4 sm:$0xff]  }
  0xae   : > { %2530 = vperm.xlu1 %3180, %v2332_v24   ;;  %2525 = vperm.xlu0 %3179, %v2331_v25   ;;  %v3366_v60 = vld [vmem:[%s3524_s9 + $0x1f0] ss:$24 sps:$4 sm:$0xff]  }
  0xb2   : > { %2540 = vperm.xlu1 %3180, %v2334_v30   ;;  %2535 = vperm.xlu0 %3179, %v2333_v31  }
  0xb4   : > { %1886 = vmatmul.mubr.bf16.gmra.mxu1 %v3311_v2  ;;  %2111 = vmatmul.mubr.bf16.gmra.mxu0 %v3312_v3  ;;  %v3373_v2 = vld [vmem:[%s3524_s9 + $0x24c] ss:$24 sps:$4 sm:$0xff]  }
  0xb5   : > { %1893 = vmatprep.mubr.bf16.mxu1 %v3313_v4  ;;  %2118 = vmatprep.mubr.bf16.mxu0 %v3315_v5  ;;  %v3375_v3 = vld [vmem:[%s3524_s9 + $0x254] ss:$24 sps:$4 sm:$0xff]   ;;  %v3377_v4 = vld [vmem:[%s3524_s9 + $0x248] ss:$24 sps:$4 sm:$0xff]  }
  0xb6   : > { %2550 = vperm.xlu1 %3180, %v2336_v32   ;;  %2545 = vperm.xlu0 %3179, %v2335_v33   ;;  %v3378_v5 = vld [vmem:[%s3524_s9 + $0x250] ss:$24 sps:$4 sm:$0xff]  }
  0xba   : > { %2560 = vperm.xlu1 %3180, %v2338_v37   ;;  %2555 = vperm.xlu0 %3179, %v2337_v38   ;;  %v3395_v37 = vld [vmem:[%s3524_s9 + $0x2d8] ss:$24 sps:$4 sm:$0xff]  }
  0xbb   : > { %v3396_v38 = vld [vmem:[%s3524_s9 + $0x2e0] ss:$24 sps:$4 sm:$0xff]  }
  0xbc   : > { %1894 = vmatmul.mubr.bf16.gmra.mxu1 %v3317_v10  ;;  %2119 = vmatmul.mubr.bf16.gmra.mxu0 %v3318_v11 }
  0xbd   : > { %1901 = vmatprep.mubr.bf16.mxu1 %v3319_v12  ;;  %2126 = vmatprep.mubr.bf16.mxu0 %v3321_v13 }
  0xbe   : > { %2570 = vperm.xlu1 %3180, %v2340_v39   ;;  %2565 = vperm.xlu0 %3179, %v2339_v40   ;;  %v3399_v39 = vld [vmem:[%s3524_s9 + $0x30c] ss:$24 sps:$4 sm:$0xff]  }
  0xbf   : > { %v3402_v40 = vld [vmem:[%s3524_s9 + $0x314] ss:$24 sps:$4 sm:$0xff]  }
  0xc2   : > { %2580 = vperm.xlu1 %3180, %v2342_v45   ;;  %2575 = vperm.xlu0 %3179, %v2341_v46  }
  0xc4   : > { %1902 = vmatmul.mubr.bf16.gmra.mxu1 %v3323_v18  ;;  %2127 = vmatmul.mubr.bf16.gmra.mxu0 %v3324_v19 }
  0xc5   : > { %1909 = vmatprep.mubr.bf16.mxu1 %v3325_v20  ;;  %2134 = vmatprep.mubr.bf16.mxu0 %v3327_v21 }
  0xcc   : > { %1910 = vmatmul.mubr.bf16.gmra.mxu1 %v3329_v26  ;;  %2135 = vmatmul.mubr.bf16.gmra.mxu0 %v3330_v27  ;;  %v3389_v26 = vld [vmem:[%s3524_s9 + $0x2a8] ss:$24 sps:$4 sm:$0xff]  }
  0xcd   : > { %1917 = vmatprep.mubr.bf16.mxu1 %v3331_v28  ;;  %2142 = vmatprep.mubr.bf16.mxu0 %v3333_v29  ;;  %v3390_v27 = vld [vmem:[%s3524_s9 + $0x2b0] ss:$24 sps:$4 sm:$0xff]   ;;  %v3391_v28 = vld [vmem:[%s3524_s9 + $0x2dc] ss:$24 sps:$4 sm:$0xff]  }
  0xce   : > { %v3393_v29 = vld [vmem:[%s3524_s9 + $0x2e4] ss:$24 sps:$4 sm:$0xff]  }
  0xd4   : > { %1918 = vmatmul.mubr.bf16.gmra.mxu1 %v3335_v1  ;;  %2143 = vmatmul.mubr.bf16.gmra.mxu0 %v3336_v34 }
  0xd5   : > { %1925 = vmatprep.mubr.bf16.mxu1 %v3337_v35  ;;  %2150 = vmatprep.mubr.bf16.mxu0 %v3339_v36 }
  0xdc   : > { %1926 = vmatmul.mubr.bf16.gmra.mxu1 %v3341_v41  ;;  %2151 = vmatmul.mubr.bf16.gmra.mxu0 %v3342_v42 }
  0xdd   : > { %1933 = vmatprep.mubr.bf16.mxu1 %v3343_v43  ;;  %2158 = vmatprep.mubr.bf16.mxu0 %v3345_v44 }
  0xe4   : > { %1934 = vmatmul.mubr.bf16.gmra.mxu1 %v3347_v47  ;;  %2159 = vmatmul.mubr.bf16.gmra.mxu0 %v3348_v48 }
  0xe5   : > { %1941 = vmatprep.mubr.bf16.mxu1 %v3349_v49  ;;  %2166 = vmatprep.mubr.bf16.mxu0 %v3351_v50  ;;  %v3397_v49 = vld [vmem:[%s3524_s9 + $0x308] ss:$24 sps:$4 sm:$0xff]  }
  0xe6   : > { %v3400_v50 = vld [vmem:[%s3524_s9 + $0x310] ss:$24 sps:$4 sm:$0xff]  }
  0xec   : > { %1942 = vmatmul.mubr.bf16.gmra.mxu1 %v3353_v51  ;;  %2167 = vmatmul.mubr.bf16.gmra.mxu0 %v3354_v52  ;;  %v3405_v51 = vld [vmem:[%s3524_s9 + $0x33c] ss:$24 sps:$4 sm:$0xff]  }
  0xed   : > { %1949 = vmatprep.mubr.bf16.mxu1 %v3355_v53  ;;  %2174 = vmatprep.mubr.bf16.mxu0 %v3357_v54  ;;  %v3408_v52 = vld [vmem:[%s3524_s9 + $0x344] ss:$24 sps:$4 sm:$0xff]  }
  0xf4   : > { %1950 = vmatmul.mubr.bf16.gmra.mxu1 %v3359_v55  ;;  %2175 = vmatmul.mubr.bf16.gmra.mxu0 %v3360_v56 }
  0xf5   : > { %1957 = vmatprep.mubr.bf16.mxu1 %v3361_v57  ;;  %2182 = vmatprep.mubr.bf16.mxu0 %v3363_v58 }
  0xfc   : > { %1958 = vmatmul.mubr.bf16.gmra.mxu1 %v3365_v59  ;;  %2183 = vmatmul.mubr.bf16.gmra.mxu0 %v3366_v60 }
  0xfd   : > { %1965 = vmatprep.mubr.bf16.mxu1 %v3367_v61  ;;  %2190 = vmatprep.mubr.bf16.mxu0 %v3369_v62  ;;  %v3403_v61 = vld [vmem:[%s3524_s9 + $0x338] ss:$24 sps:$4 sm:$0xff]  }
  0xfe   : > { %v3406_v62 = vld [vmem:[%s3524_s9 + $0x340] ss:$24 sps:$4 sm:$0xff]  }
 0x104   : > { %1966 = vmatmul.mubr.bf16.gmra.mxu1 %v3371_v63  ;;  %2191 = vmatmul.mubr.bf16.gmra.mxu0 %v3372_v0  ;;  %v3411_v63 = vld [vmem:[%s3524_s9 + $0x36c] ss:$24 sps:$4 sm:$0xff]  }
 0x105   : > { %1973 = vmatprep.mubr.bf16.mxu1 %v3373_v2  ;;  %2198 = vmatprep.mubr.bf16.mxu0 %v3375_v3  ;;  %v3414_v0 = vld [vmem:[%s3524_s9 + $0x374] ss:$24 sps:$4 sm:$0xff]  }
 0x10c   : > { %v3869_v8 = vpop.f32.mrf.mxu0  ;;  %v3871_v9 = vpop.f32.mrf.mxu1  ;;  %1974 = vmatmul.mubr.bf16.gmra.mxu1 %v3377_v4  ;;  %2199 = vmatmul.mubr.bf16.gmra.mxu0 %v3378_v5 }
 0x10d   : > { %1981 = vmatprep.mubr.bf16.mxu1 %v3379_v6  ;;  %2206 = vmatprep.mubr.bf16.mxu0 %v3381_v7 }
 0x10e   : > { %v1656_v10 = vpop.f32.mrf.mxu0  ;;  %v1752_v11 = vpop.f32.mrf.mxu1 }
 0x110   : > { %v3873_v12 = vpop.f32.mrf.mxu0  ;;  %v3875_v13 = vpop.f32.mrf.mxu1 }
 0x112   : > { %v1659_v18 = vpop.f32.mrf.mxu0  ;;  %v1755_v19 = vpop.f32.mrf.mxu1 }
 0x114   : > { %v3881_v20 = vpop.f32.mrf.mxu0  ;;  %v3883_v21 = vpop.f32.mrf.mxu1  ;;  %1982 = vmatmul.mubr.bf16.gmra.mxu1 %v3383_v14  ;;  %2207 = vmatmul.mubr.bf16.gmra.mxu0 %v3384_v15  ;;  %v3409_v14 = vld [vmem:[%s3524_s9 + $0x368] ss:$24 sps:$4 sm:$0xff]  }
 0x115   : > { %1989 = vmatprep.mubr.bf16.mxu1 %v3385_v16  ;;  %2214 = vmatprep.mubr.bf16.mxu0 %v3387_v17  ;;  %v3412_v15 = vld [vmem:[%s3524_s9 + $0x370] ss:$24 sps:$4 sm:$0xff]   ;;  %v3417_v16 = vld [vmem:[%s3524_s9 + $0x39c] ss:$24 sps:$4 sm:$0xff]  }
 0x116   : > { %v1664_v22 = vpop.f32.mrf.mxu0  ;;  %v1760_v23 = vpop.f32.mrf.mxu1  ;;  %v3420_v17 = vld [vmem:[%s3524_s9 + $0x3a4] ss:$24 sps:$4 sm:$0xff]  }
 0x118   : > { %v3885_v24 = vpop.f32.mrf.mxu0  ;;  %v3887_v25 = vpop.f32.mrf.mxu1 }
 0x11a   : > { %v1667_v30 = vpop.f32.mrf.mxu0  ;;  %v1763_v31 = vpop.f32.mrf.mxu1 }
 0x11b   : > { %v3415_v30 = vld [vmem:[%s3524_s9 + $0x398] ss:$24 sps:$4 sm:$0xff]  }
 0x11c   : > { %v3893_v32 = vpop.f32.mrf.mxu0  ;;  %v3895_v33 = vpop.f32.mrf.mxu1  ;;  %1990 = vmatmul.mubr.bf16.gmra.mxu1 %v3389_v26  ;;  %2215 = vmatmul.mubr.bf16.gmra.mxu0 %v3390_v27  ;;  %v3418_v31 = vld [vmem:[%s3524_s9 + $0x3a0] ss:$24 sps:$4 sm:$0xff]  }
 0x11d   : > { %1997 = vmatprep.mubr.bf16.mxu1 %v3391_v28  ;;  %2222 = vmatprep.mubr.bf16.mxu0 %v3393_v29 }
 0x11e   : > { %v1672_v1 = vpop.f32.mrf.mxu0  ;;  %v1768_v34 = vpop.f32.mrf.mxu1 }
 0x11f   : > { %v3423_v1 = vld [vmem:[%s3524_s9 + $0x3cc] ss:$24 sps:$4 sm:$0xff]  }
 0x120   : > { %v3897_v35 = vpop.f32.mrf.mxu0  ;;  %v3899_v36 = vpop.f32.mrf.mxu1  ;;  %v3426_v34 = vld [vmem:[%s3524_s9 + $0x3d4] ss:$24 sps:$4 sm:$0xff]  }
 0x122   : > { %v1675_v41 = vpop.f32.mrf.mxu0  ;;  %v1771_v42 = vpop.f32.mrf.mxu1 }
 0x124   : > { %v3905_v43 = vpop.f32.mrf.mxu0  ;;  %v3907_v44 = vpop.f32.mrf.mxu1  ;;  %1998 = vmatmul.mubr.bf16.gmra.mxu1 %v3395_v37  ;;  %2223 = vmatmul.mubr.bf16.gmra.mxu0 %v3396_v38 }
 0x125   : > { %2005 = vmatprep.mubr.bf16.mxu1 %v3399_v39  ;;  %2230 = vmatprep.mubr.bf16.mxu0 %v3402_v40 }
 0x126   : > { %v1680_v45 = vpop.f32.mrf.mxu0  ;;  %v1776_v46 = vpop.f32.mrf.mxu1 }
 0x128   : > { %v3909_v47 = vpop.f32.mrf.mxu0  ;;  %v3911_v48 = vpop.f32.mrf.mxu1 }
 0x12a   : > { %v1683_v53 = vpop.f32.mrf.mxu0  ;;  %v1779_v54 = vpop.f32.mrf.mxu1 }
 0x12c   : > { %v3917_v55 = vpop.f32.mrf.mxu0  ;;  %v3919_v56 = vpop.f32.mrf.mxu1  ;;  %2006 = vmatmul.mubr.bf16.gmra.mxu1 %v3397_v49  ;;  %2231 = vmatmul.mubr.bf16.gmra.mxu0 %v3400_v50  ;;  %v3421_v49 = vld [vmem:[%s3524_s9 + $0x3c8] ss:$24 sps:$4 sm:$0xff]  }
 0x12d   : > { %2013 = vmatprep.mubr.bf16.mxu1 %v3405_v51  ;;  %2238 = vmatprep.mubr.bf16.mxu0 %v3408_v52  ;;  %v3424_v50 = vld [vmem:[%s3524_s9 + $0x3d0] ss:$24 sps:$4 sm:$0xff]   ;;  %v3429_v51 = vld [vmem:[%s3524_s9 + $0x3fc] ss:$24 sps:$4 sm:$0xff]  }
 0x12e   : > { %v1688_v57 = vpop.f32.mrf.mxu0  ;;  %v1784_v58 = vpop.f32.mrf.mxu1  ;;  %v3432_v52 = vld [vmem:[%s3524_s9 + $0x404] ss:$24 sps:$4 sm:$0xff]  }
 0x130   : > { %v3921_v59 = vpop.f32.mrf.mxu0  ;;  %v3923_v60 = vpop.f32.mrf.mxu1 }
 0x132   : > { %v1691_v2 = vpop.f32.mrf.mxu0  ;;  %v1787_v3 = vpop.f32.mrf.mxu1 }
 0x133   : > { %v3427_v2 = vld [vmem:[%s3524_s9 + $0x3f8] ss:$24 sps:$4 sm:$0xff]  }
 0x134   : > { %v3929_v4 = vpop.f32.mrf.mxu0  ;;  %v3931_v5 = vpop.f32.mrf.mxu1  ;;  %2014 = vmatmul.mubr.bf16.gmra.mxu1 %v3403_v61  ;;  %2239 = vmatmul.mubr.bf16.gmra.mxu0 %v3406_v62  ;;  %v3430_v3 = vld [vmem:[%s3524_s9 + $0x400] ss:$24 sps:$4 sm:$0xff]  }
 0x135   : > { %2021 = vmatprep.mubr.bf16.mxu1 %v3411_v63  ;;  %2246 = vmatprep.mubr.bf16.mxu0 %v3414_v0 }
 0x136   : > { %v1696_v6 = vpop.f32.mrf.mxu0  ;;  %v1792_v7 = vpop.f32.mrf.mxu1 }
 0x137   : > { %v3435_v6 = vld [vmem:[%s3524_s9 + $0x42c] ss:$24 sps:$4 sm:$0xff]  }
 0x138   : > { %v3933_v10 = vpop.f32.mrf.mxu0  ;;  %v3935_v11 = vpop.f32.mrf.mxu1  ;;  %v3438_v7 = vld [vmem:[%s3524_s9 + $0x434] ss:$24 sps:$4 sm:$0xff]  }
 0x13a   : > { %v1699_v18 = vpop.f32.mrf.mxu0  ;;  %v1795_v19 = vpop.f32.mrf.mxu1 }
 0x13c   : > { %v3941_v22 = vpop.f32.mrf.mxu0  ;;  %v3943_v23 = vpop.f32.mrf.mxu1  ;;  %2022 = vmatmul.mubr.bf16.gmra.mxu1 %v3409_v14  ;;  %2247 = vmatmul.mubr.bf16.gmra.mxu0 %v3412_v15 }
 0x13d   : > { %2029 = vmatprep.mubr.bf16.mxu1 %v3417_v16  ;;  %2254 = vmatprep.mubr.bf16.mxu0 %v3420_v17 }
 0x13e   : > { %v1704_v26 = vpop.f32.mrf.mxu0  ;;  %v1800_v27 = vpop.f32.mrf.mxu1 }
 0x140   : > { %v3945_v28 = vpop.f32.mrf.mxu0  ;;  %v3947_v29 = vpop.f32.mrf.mxu1 }
 0x142   : > { %v1707_v37 = vpop.f32.mrf.mxu0  ;;  %v1803_v38 = vpop.f32.mrf.mxu1 }
 0x144   : > { %v3953_v39 = vpop.f32.mrf.mxu0  ;;  %v3955_v40 = vpop.f32.mrf.mxu1  ;;  %2030 = vmatmul.mubr.bf16.gmra.mxu1 %v3415_v30  ;;  %2255 = vmatmul.mubr.bf16.gmra.mxu0 %v3418_v31  ;;  %v3433_v30 = vld [vmem:[%s3524_s9 + $0x428] ss:$24 sps:$4 sm:$0xff]  }
 0x145   : > { %2037 = vmatprep.mubr.bf16.mxu1 %v3423_v1  ;;  %2262 = vmatprep.mubr.bf16.mxu0 %v3426_v34  ;;  %v3436_v31 = vld [vmem:[%s3524_s9 + $0x430] ss:$24 sps:$4 sm:$0xff]   ;;  %v3441_v1 = vld [vmem:[%s3524_s9 + $0x45c] ss:$24 sps:$4 sm:$0xff]  }
 0x146   : > { %v1712_v41 = vpop.f32.mrf.mxu0  ;;  %v1808_v42 = vpop.f32.mrf.mxu1  ;;  %v3444_v34 = vld [vmem:[%s3524_s9 + $0x464] ss:$24 sps:$4 sm:$0xff]  }
 0x148   : > { %v3957_v45 = vpop.f32.mrf.mxu0  ;;  %v3959_v46 = vpop.f32.mrf.mxu1 }
 0x14a   : > { %v1715_v53 = vpop.f32.mrf.mxu0  ;;  %v1811_v54 = vpop.f32.mrf.mxu1 }
 0x14b   : > { %v3439_v53 = vld [vmem:[%s3524_s9 + $0x458] ss:$24 sps:$4 sm:$0xff]  }
 0x14c   : > { %v3965_v57 = vpop.f32.mrf.mxu0  ;;  %v3967_v58 = vpop.f32.mrf.mxu1  ;;  %2038 = vmatmul.mubr.bf16.gmra.mxu1 %v3421_v49  ;;  %2263 = vmatmul.mubr.bf16.gmra.mxu0 %v3424_v50  ;;  %v3442_v54 = vld [vmem:[%s3524_s9 + $0x460] ss:$24 sps:$4 sm:$0xff]  }
 0x14d   : > { %2045 = vmatprep.mubr.bf16.mxu1 %v3429_v51  ;;  %2270 = vmatprep.mubr.bf16.mxu0 %v3432_v52 }
 0x14e   : > { %v1720_v61 = vpop.f32.mrf.mxu0  ;;  %v1816_v62 = vpop.f32.mrf.mxu1 }
 0x150   : > { %v3969_v63 = vpop.f32.mrf.mxu0  ;;  %v3971_v0 = vpop.f32.mrf.mxu1 }
 0x152   : > { %v1723_v14 = vpop.f32.mrf.mxu0  ;;  %v1819_v15 = vpop.f32.mrf.mxu1 }
 0x154   : > { %v3977_v16 = vpop.f32.mrf.mxu0  ;;  %v3979_v17 = vpop.f32.mrf.mxu1  ;;  %2046 = vmatmul.mubr.bf16.gmra.mxu1 %v3427_v2  ;;  %2271 = vmatmul.mubr.bf16.gmra.mxu0 %v3430_v3  ;;  %v3019_v2 = vld [vmem:[%s4003_s16] sm:$0xff]  }
 0x155   : > { %2053 = vmatprep.mubr.bf16.mxu1 %v3435_v6  ;;  %2278 = vmatprep.mubr.bf16.mxu0 %v3438_v7  ;;  %v3020_v15 = vunpack.c.l.bf16 %v3019_v2 }
 0x156   : > { %v1728_v18 = vpop.f32.mrf.mxu0  ;;  %v1824_v19 = vpop.f32.mrf.mxu1 }
 0x158   : > { %v3981_v26 = vpop.f32.mrf.mxu0  ;;  %v3983_v27 = vpop.f32.mrf.mxu1 }
 0x15a   : > { %v1731_v37 = vpop.f32.mrf.mxu0  ;;  %v1827_v38 = vpop.f32.mrf.mxu1 }
 0x15b   : > { %v2346_v37 = vpop.permute.xlu0 %2345  ;;  %v3114_v38 = vld [vmem:[%s4003_s16 + $0x8] sm:$0xff]  }
 0x15c   : > { %v3989_v41 = vpop.f32.mrf.mxu0  ;;  %v3991_v42 = vpop.f32.mrf.mxu1  ;;  %2054 = vmatmul.mubr.bf16.gmra.mxu1 %v3433_v30  ;;  %2279 = vmatmul.mubr.bf16.gmra.mxu0 %v3436_v31 }
 0x15d   : > { %4207 = vst [vmem:[#allocation2_spill] sm:$0xff] %v3991_v42  ;;  %2061 = vmatprep.mubr.bf16.mxu1 %v3441_v1  ;;  %2286 = vmatprep.mubr.bf16.mxu0 %v3444_v34  ;;  %v1655_v1 = vadd.f32 %v3020_v15, %v3869_v8  ;;  %v3021_v34 = vunpack.c.h.bf16 %v3019_v2 }
 0x15e   : > { %v1736_v49 = vpop.f32.mrf.mxu0  ;;  %v1832_v50 = vpop.f32.mrf.mxu1 }
 0x160   : > { %v3994_v51 = vpop.f32.mrf.mxu0  ;;  %v3996_v52 = vpop.f32.mrf.mxu1 }
 0x161   : > { %4208 = vst [vmem:[#allocation3_spill] sm:$0xff] %v3996_v52 }
 0x162   : > { %v1739_v61 = vpop.f32.mrf.mxu0  ;;  %v1835_v62 = vpop.f32.mrf.mxu1 }
 0x163   : > { %v1658_v62 = vadd.f32 %v3021_v34, %v3873_v12 }
 0x164   : > { %v4006_v3 = vpop.f32.mrf.mxu0  ;;  %v4008_v6 = vpop.f32.mrf.mxu1  ;;  %2062 = vmatmul.mubr.bf16.gmra.mxu1 %v3439_v53  ;;  %2287 = vmatmul.mubr.bf16.gmra.mxu0 %v3442_v54 }
 0x165   : > { %4209 = vst [vmem:[#allocation4_spill] sm:$0xff] %v4008_v6 }
 0x166   : > { %v1744_v7 = vpop.f32.mrf.mxu0  ;;  %v1840_v14 = vpop.f32.mrf.mxu1 }
 0x167   : > { %v3024_v7 = vunpack.c.l.bf16 %v3114_v38 }
 0x168   : > { %v4010_v18 = vpop.f32.mrf.mxu0  ;;  %v4012_v19 = vpop.f32.mrf.mxu1 }
 0x169   : > { %4210 = vst [vmem:[#allocation5_spill] sm:$0xff] %v4012_v19  ;;  %v2351_v19 = vpop.permute.xlu0 %2350  ;;  %v1663_v34 = vadd.f32 %v3024_v7, %v3881_v20 }
 0x16a   : > { %v1747_v30 = vpop.f32.mrf.mxu0  ;;  %v1843_v31 = vpop.f32.mrf.mxu1 }
 0x16b   : > { %v4020_v30 = vld [vmem:[%s4205_s4] ss:$0 sm:$0xff] }
 0x16c   : > { %v1879_v49 = vpop.f32.mrf.mxu1  ;;  %v2104_v50 = vpop.f32.mrf.mxu0 }
 0x16d   : > { %v1880_v61 = vadd.f32 %v1879_v49, %v1655_v1  ;;  %v3025_v49 = vunpack.c.h.bf16 %v3114_v38 }
 0x16e   : > { %v1881_v53 = vpop.f32.mrf.mxu1  ;;  %v2106_v54 = vpop.f32.mrf.mxu0 }
 0x16f   : > { %v2105_v14 = vadd.f32 %v2104_v50, %v1880_v61  ;;  %v3115_v53 = vld [vmem:[%s4003_s16 + $0x10] sm:$0xff]   ;;  %v1666_v42 = vadd.f32 %v3025_v49, %v3885_v24  ;;  %v3116_v49 = vld [vmem:[%s4003_s16 + $0x18] sm:$0xff]  }
 0x170   : > { %v1882_v8 = vpop.f32.mrf.mxu1  ;;  %v2107_v2 = vpop.f32.mrf.mxu0 }
 0x171   : > { %v2583_v15 = vmul.f32 %v2346_v37, %v2105_v14  ;;  %v1883_v31 = vadd.f32 %v1882_v8, %v1658_v62  ;;  %v2356_v8 = vpop.permute.xlu1 %2355 }
 0x172   : > { %v1884_v12 = vpop.f32.mrf.mxu1  ;;  %v2109_v1 = vpop.f32.mrf.mxu0 }
 0x173   : > { %v2638_v50 = vadd.f32 %v4020_v30, %v2583_v15  ;;  %v2108_v61 = vadd.f32 %v2107_v2, %v1883_v31  ;;  %v3028_v12 = vunpack.c.l.bf16 %v3115_v53 }
 0x174   : > { %v1887_v37 = vpop.f32.mrf.mxu1  ;;  %v2112_v54 = vpop.f32.mrf.mxu0 }
 0x175   : > { %2686 = vst [vmem:[%s4027_s21] sm:$0xff] %v2638_v50  ;;  %v2584_v62 = vmul.f32 %v2351_v19, %v2108_v61  ;;  %v1888_v14 = vadd.f32 %v1887_v37, %v1663_v34  ;;  %v1671_v19 = vadd.f32 %v3028_v12, %v3893_v32  ;;  %v3029_v34 = vunpack.c.h.bf16 %v3115_v53  ;;  %v2361_v24 = vpop.permute.xlu1 %2360  ;;  %v2366_v12 = vpop.permute.xlu0 %2365 }
 0x176   : > { %v1889_v6 = vpop.f32.mrf.mxu1  ;;  %v2114_v52 = vpop.f32.mrf.mxu0 }
 0x177   : > { %v2639_v20 = vadd.f32 %v4020_v30, %v2584_v62  ;;  %v2113_v38 = vadd.f32 %v2112_v54, %v1888_v14 }
 0x178   : > { %v1890_v7 = vpop.f32.mrf.mxu1  ;;  %v2115_v2 = vpop.f32.mrf.mxu0 }
 0x179   : > { %2687 = vst [vmem:[%s4027_s21 + $0x8] sm:$0xff] %v2639_v20  ;;  %v2585_v15 = vmul.f32 %v2356_v8, %v2113_v38  ;;  %v1891_v31 = vadd.f32 %v1890_v7, %v1666_v42  ;;  %v1674_v42 = vadd.f32 %v3029_v34, %v3897_v35  ;;  %v3032_v8 = vunpack.c.l.bf16 %v3116_v49 }
 0x17a   : > { %v1892_v1 = vpop.f32.mrf.mxu1  ;;  %v2117_v50 = vpop.f32.mrf.mxu0 }
 0x17b   : > { %v2640_v52 = vadd.f32 %v4020_v30, %v2585_v15  ;;  %v2116_v6 = vadd.f32 %v2115_v2, %v1891_v31  ;;  %v1679_v50 = vadd.f32 %v3032_v8, %v3905_v43 }
 0x17c   : > { %v1895_v61 = vpop.f32.mrf.mxu1  ;;  %v2120_v37 = vpop.f32.mrf.mxu0 }
 0x17d   : > { %2688 = vst [vmem:[%s4027_s21 + $0x10] sm:$0xff] %v2640_v52  ;;  %v2586_v54 = vmul.f32 %v2361_v24, %v2116_v6  ;;  %v1896_v62 = vadd.f32 %v1895_v61, %v1671_v19  ;;  %v3033_v19 = vunpack.c.h.bf16 %v3116_v49  ;;  %v2371_v52 = vpop.permute.xlu1 %2370  ;;  %v3117_v6 = vld [vmem:[%s4003_s16 + $0x20] sm:$0xff]   ;;  %v2376_v49 = vpop.permute.xlu0 %2375 }
 0x17e   : > { %v1897_v14 = vpop.f32.mrf.mxu1  ;;  %v2122_v20 = vpop.f32.mrf.mxu0 }
 0x17f   : > { %v2641_v32 = vadd.f32 %v4020_v30, %v2586_v54  ;;  %v2121_v53 = vadd.f32 %v2120_v37, %v1896_v62  ;;  %v1682_v20 = vadd.f32 %v3033_v19, %v3909_v47  ;;  %v3118_v19 = vld [vmem:[%s4003_s16 + $0x28] sm:$0xff]  }
 0x180   : > { %v1898_v38 = vpop.f32.mrf.mxu1  ;;  %v2123_v7 = vpop.f32.mrf.mxu0 }
 0x181   : > { %2689 = vst [vmem:[%s4027_s21 + $0x18] sm:$0xff] %v2641_v32  ;;  %v2587_v2 = vmul.f32 %v2366_v12, %v2121_v53  ;;  %v1899_v15 = vadd.f32 %v1898_v38, %v1674_v42  ;;  %v3036_v42 = vunpack.c.l.bf16 %v3117_v6 }
 0x182   : > { %v1900_v31 = vpop.f32.mrf.mxu1  ;;  %v2125_v1 = vpop.f32.mrf.mxu0 }
 0x183   : > { %v2642_v35 = vadd.f32 %v4020_v30, %v2587_v2  ;;  %v2124_v34 = vadd.f32 %v2123_v7, %v1899_v15  ;;  %v1687_v15 = vadd.f32 %v3036_v42, %v3917_v55  ;;  %v3037_v31 = vunpack.c.h.bf16 %v3117_v6  ;;  %v2381_v1 = vpop.permute.xlu1 %2380 }
 0x184   : > { %v1903_v24 = vpop.f32.mrf.mxu1  ;;  %v2128_v61 = vpop.f32.mrf.mxu0 }
 0x185   : > { %2690 = vst [vmem:[%s4027_s21 + $0x20] sm:$0xff] %v2642_v35  ;;  %v2588_v37 = vmul.f32 %v2371_v52, %v2124_v34  ;;  %v1904_v54 = vadd.f32 %v1903_v24, %v1679_v50 }
 0x186   : > { %v1905_v62 = vpop.f32.mrf.mxu1  ;;  %v2130_v14 = vpop.f32.mrf.mxu0 }
 0x187   : > { %v2643_v43 = vadd.f32 %v4020_v30, %v2588_v37  ;;  %v2129_v8 = vadd.f32 %v2128_v61, %v1904_v54  ;;  %v1690_v54 = vadd.f32 %v3037_v31, %v3921_v59  ;;  %v3040_v62 = vunpack.c.l.bf16 %v3118_v19  ;;  %v2386_v14 = vpop.permute.xlu0 %2385 }
 0x188   : > { %v1906_v32 = vpop.f32.mrf.mxu1  ;;  %v2131_v53 = vpop.f32.mrf.mxu0 }
 0x189   : > { %2691 = vst [vmem:[%s4027_s21 + $0x28] sm:$0xff] %v2643_v43  ;;  %v2589_v12 = vmul.f32 %v2376_v49, %v2129_v8  ;;  %v1907_v38 = vadd.f32 %v1906_v32, %v1682_v20 }
 0x18a   : > { %v1908_v7 = vpop.f32.mrf.mxu1  ;;  %v2133_v2 = vpop.f32.mrf.mxu0 }
 0x18b   : > { %v2644_v47 = vadd.f32 %v4020_v30, %v2589_v12  ;;  %v2132_v50 = vadd.f32 %v2131_v53, %v1907_v38  ;;  %v1695_v53 = vadd.f32 %v3040_v62, %v3929_v4  ;;  %v3041_v12 = vunpack.c.h.bf16 %v3118_v19  ;;  %v2391_v38 = vpop.permute.xlu1 %2390  ;;  %v3119_v2 = vld [vmem:[%s4003_s16 + $0x30] sm:$0xff]  }
 0x18c   : > { %v1911_v52 = vpop.f32.mrf.mxu1  ;;  %v2136_v35 = vpop.f32.mrf.mxu0 }
 0x18d   : > { %2692 = vst [vmem:[%s4027_s21 + $0x30] sm:$0xff] %v2644_v47  ;;  %v2590_v34 = vmul.f32 %v2381_v1, %v2132_v50  ;;  %v1912_v24 = vadd.f32 %v1911_v52, %v1687_v15 }
 0x18e   : > { %v1913_v61 = vpop.f32.mrf.mxu1  ;;  %v2138_v37 = vpop.f32.mrf.mxu0 }
 0x18f   : > { %v2645_v55 = vadd.f32 %v4020_v30, %v2590_v34  ;;  %v2137_v6 = vadd.f32 %v2136_v35, %v1912_v24  ;;  %v1698_v35 = vadd.f32 %v3041_v12, %v3933_v10  ;;  %v3044_v34 = vunpack.c.l.bf16 %v3119_v2  ;;  %v2396_v24 = vpop.permute.xlu0 %2395 }
 0x190   : > { %v1914_v20 = vpop.f32.mrf.mxu1  ;;  %v2139_v42 = vpop.f32.mrf.mxu0 }
 0x191   : > { %2693 = vst [vmem:[%s4027_s21 + $0x38] sm:$0xff] %v2645_v55  ;;  %v2591_v43 = vmul.f32 %v2386_v14, %v2137_v6  ;;  %v1915_v49 = vadd.f32 %v1914_v20, %v1690_v54  ;;  %v1703_v6 = vadd.f32 %v3044_v34, %v3941_v22  ;;  %v3045_v20 = vunpack.c.h.bf16 %v3119_v2 }
 0x192   : > { %v1916_v8 = vpop.f32.mrf.mxu1  ;;  %v2141_v32 = vpop.f32.mrf.mxu0 }
 0x193   : > { %v2646_v59 = vadd.f32 %v4020_v30, %v2591_v43  ;;  %v2140_v7 = vadd.f32 %v2139_v42, %v1915_v49  ;;  %v2401_v42 = vpop.permute.xlu1 %2400  ;;  %v3120_v49 = vld [vmem:[%s4003_s16 + $0x38] sm:$0xff]  }
 0x194   : > { %v1919_v15 = vpop.f32.mrf.mxu1  ;;  %v2144_v31 = vpop.f32.mrf.mxu0 }
 0x195   : > { %2694 = vst [vmem:[%s4027_s21 + $0x40] sm:$0xff] %v2646_v59  ;;  %v2592_v1 = vmul.f32 %v2391_v38, %v2140_v7  ;;  %v1920_v47 = vadd.f32 %v1919_v15, %v1695_v53  ;;  %v1706_v7 = vadd.f32 %v3045_v20, %v3945_v28  ;;  %v3048_v15 = vunpack.c.l.bf16 %v3120_v49 }
 0x196   : > { %v1921_v50 = vpop.f32.mrf.mxu1  ;;  %v2146_v52 = vpop.f32.mrf.mxu0 }
 0x197   : > { %v2647_v4 = vadd.f32 %v4020_v30, %v2592_v1  ;;  %v2145_v19 = vadd.f32 %v2144_v31, %v1920_v47  ;;  %v2406_v31 = vpop.permute.xlu0 %2405 }
 0x198   : > { %v1922_v61 = vpop.f32.mrf.mxu1  ;;  %v2147_v37 = vpop.f32.mrf.mxu0 }
 0x199   : > { %2695 = vst [vmem:[%s4027_s21 + $0x48] sm:$0xff] %v2647_v4  ;;  %v2593_v54 = vmul.f32 %v2396_v24, %v2145_v19  ;;  %v1923_v62 = vadd.f32 %v1922_v61, %v1698_v35  ;;  %v1711_v24 = vadd.f32 %v3048_v15, %v3953_v39  ;;  %v3049_v4 = vunpack.c.h.bf16 %v3120_v49  ;;  %v2411_v19 = vpop.permute.xlu1 %2410 }
 0x19a   : > { %v1924_v14 = vpop.f32.mrf.mxu1  ;;  %v2149_v55 = vpop.f32.mrf.mxu0 }
 0x19b   : > { %v2648_v10 = vadd.f32 %v4020_v30, %v2593_v54  ;;  %v2148_v43 = vadd.f32 %v2147_v37, %v1923_v62  ;;  %v3121_v37 = vld [vmem:[%s4003_s16 + $0x40] sm:$0xff]  }
 0x19c   : > { %v1927_v8 = vpop.f32.mrf.mxu1  ;;  %v2152_v32 = vpop.f32.mrf.mxu0  ;;  %v3053_v15 = vunpack.c.h.bf16 %v3121_v37 }
 0x19d   : > { %2696 = vst [vmem:[%s4027_s21 + $0x50] sm:$0xff] %v2648_v10  ;;  %v2594_v53 = vmul.f32 %v2401_v42, %v2148_v43  ;;  %v1928_v12 = vadd.f32 %v1927_v8, %v1703_v6  ;;  %v1714_v42 = vadd.f32 %v3049_v4, %v3957_v45  ;;  %v3052_v10 = vunpack.c.l.bf16 %v3121_v37  ;;  %v2416_v43 = vpop.permute.xlu0 %2415 }
 0x19e   : > { %v1929_v38 = vpop.f32.mrf.mxu1  ;;  %v2154_v59 = vpop.f32.mrf.mxu0 }
 0x19f   : > { %v2649_v22 = vadd.f32 %v4020_v30, %v2594_v53  ;;  %v2153_v2 = vadd.f32 %v2152_v32, %v1928_v12 }
 0x1a0   : > { %v1930_v1 = vpop.f32.mrf.mxu1  ;;  %v2155_v47 = vpop.f32.mrf.mxu0 }
 0x1a1   : > { %2697 = vst [vmem:[%s4027_s21 + $0x58] sm:$0xff] %v2649_v22  ;;  %v2595_v50 = vmul.f32 %v2406_v31, %v2153_v2  ;;  %v1931_v52 = vadd.f32 %v1930_v1, %v1706_v7  ;;  %v1719_v7 = vadd.f32 %v3052_v10, %v3965_v57  ;;  %v2421_v31 = vpop.permute.xlu1 %2420  ;;  %v3122_v2 = vld [vmem:[%s4003_s16 + $0x48] sm:$0xff]  }
 0x1a2   : > { %v1932_v35 = vpop.f32.mrf.mxu1  ;;  %v2157_v34 = vpop.f32.mrf.mxu0  ;;  %v3056_v4 = vunpack.c.l.bf16 %v3122_v2 }
 0x1a3   : > { %v2650_v28 = vadd.f32 %v4020_v30, %v2595_v50  ;;  %v2156_v61 = vadd.f32 %v2155_v47, %v1931_v52 }
 0x1a4   : > { %v1935_v54 = vpop.f32.mrf.mxu1  ;;  %v2160_v62 = vpop.f32.mrf.mxu0 }
 0x1a5   : > { %2698 = vst [vmem:[%s4027_s21 + $0x60] sm:$0xff] %v2650_v28  ;;  %v2596_v14 = vmul.f32 %v2411_v19, %v2156_v61  ;;  %v1936_v55 = vadd.f32 %v1935_v54, %v1711_v24  ;;  %v1722_v24 = vadd.f32 %v3053_v15, %v3969_v63  ;;  %v2426_v19 = vpop.permute.xlu0 %2425 }
 0x1a6   : > { %v1937_v6 = vpop.f32.mrf.mxu1  ;;  %v2162_v20 = vpop.f32.mrf.mxu0 }
 0x1a7   : > { %v2651_v39 = vadd.f32 %v4020_v30, %v2596_v14  ;;  %v2161_v49 = vadd.f32 %v2160_v62, %v1936_v55  ;;  %v1727_v6 = vadd.f32 %v3056_v4, %v3977_v16  ;;  %v3057_v20 = vunpack.c.h.bf16 %v3122_v2 }
 0x1a8   : > { %v1938_v8 = vpop.f32.mrf.mxu1  ;;  %v2163_v32 = vpop.f32.mrf.mxu0 }
 0x1a9   : > { %2699 = vst [vmem:[%s4027_s21 + $0x68] sm:$0xff] %v2651_v39  ;;  %v2597_v53 = vmul.f32 %v2416_v43, %v2161_v49  ;;  %v1939_v12 = vadd.f32 %v1938_v8, %v1714_v42  ;;  %v2431_v42 = vpop.permute.xlu1 %2430  ;;  %v3123_v43 = vld [vmem:[%s4003_s16 + $0x50] sm:$0xff]  }
 0x1aa   : > { %v1940_v38 = vpop.f32.mrf.mxu1  ;;  %v2165_v59 = vpop.f32.mrf.mxu0 }
 0x1ab   : > { %v2652_v45 = vadd.f32 %v4020_v30, %v2597_v53  ;;  %v2164_v22 = vadd.f32 %v2163_v32, %v1939_v12  ;;  %v1730_v38 = vadd.f32 %v3057_v20, %v3981_v26  ;;  %v3060_v59 = vunpack.c.l.bf16 %v3123_v43 }
 0x1ac   : > { %v1943_v1 = vpop.f32.mrf.mxu1  ;;  %v2168_v47 = vpop.f32.mrf.mxu0 }
 0x1ad   : > { %2700 = vst [vmem:[%s4027_s21 + $0x70] sm:$0xff] %v2652_v45  ;;  %v2598_v50 = vmul.f32 %v2421_v31, %v2164_v22  ;;  %v1944_v52 = vadd.f32 %v1943_v1, %v1719_v7  ;;  %v2436_v7 = vpop.permute.xlu0 %2435 }
 0x1ae   : > { %v1945_v35 = vpop.f32.mrf.mxu1  ;;  %v2170_v34 = vpop.f32.mrf.mxu0 }
 0x1af   : > { %v2653_v57 = vadd.f32 %v4020_v30, %v2598_v50  ;;  %v2169_v28 = vadd.f32 %v2168_v47, %v1944_v52  ;;  %v1735_v50 = vadd.f32 %v3060_v59, %v3989_v41  ;;  %v3061_v52 = vunpack.c.h.bf16 %v3123_v43  ;;  %v2441_v35 = vpop.permute.xlu1 %2440 }
 0x1b0   : > { %v1946_v61 = vpop.f32.mrf.mxu1  ;;  %v2171_v37 = vpop.f32.mrf.mxu0 }
 0x1b1   : > { %2701 = vst [vmem:[%s4027_s21 + $0x78] sm:$0xff] %v2653_v57  ;;  %v2599_v54 = vmul.f32 %v2426_v19, %v2169_v28  ;;  %v1947_v62 = vadd.f32 %v1946_v61, %v1722_v24  ;;  %v3124_v24 = vld [vmem:[%s4003_s16 + $0x58] sm:$0xff]  }
 0x1b2   : > { %v1948_v14 = vpop.f32.mrf.mxu1  ;;  %v2173_v55 = vpop.f32.mrf.mxu0 }
 0x1b3   : > { %v2654_v63 = vadd.f32 %v4020_v30, %v2599_v54  ;;  %v2172_v10 = vadd.f32 %v2171_v37, %v1947_v62  ;;  %v1738_v54 = vadd.f32 %v3061_v52, %v3994_v51  ;;  %v3064_v62 = vunpack.c.l.bf16 %v3124_v24  ;;  %v2446_v14 = vpop.permute.xlu0 %2445 }
 0x1b4   : > { %v1951_v39 = vpop.f32.mrf.mxu1  ;;  %v2176_v49 = vpop.f32.mrf.mxu0 }
 0x1b5   : > { %2702 = vst [vmem:[%s4027_s21 + $0x80] sm:$0xff] %v2654_v63  ;;  %v2600_v8 = vmul.f32 %v2431_v42, %v2172_v10  ;;  %v1952_v32 = vadd.f32 %v1951_v39, %v1727_v6  ;;  %v1743_v39 = vadd.f32 %v3064_v62, %v4006_v3 }
 0x1b6   : > { %v1953_v53 = vpop.f32.mrf.mxu1  ;;  %v2178_v12 = vpop.f32.mrf.mxu0 }
 0x1b7   : > { %v2655_v16 = vadd.f32 %v4020_v30, %v2600_v8  ;;  %v2177_v15 = vadd.f32 %v2176_v49, %v1952_v32  ;;  %v3065_v49 = vunpack.c.h.bf16 %v3124_v24  ;;  %v2451_v8 = vpop.permute.xlu1 %2450  ;;  %v3125_v53 = vld [vmem:[%s4003_s16 + $0x60] sm:$0xff]  }
 0x1b8   : > { %v1954_v31 = vpop.f32.mrf.mxu1  ;;  %v2179_v45 = vpop.f32.mrf.mxu0  ;;  %v3069_v24 = vunpack.c.h.bf16 %v3125_v53 }
 0x1b9   : > { %2703 = vst [vmem:[%s4027_s21 + $0x88] sm:$0xff] %v2655_v16  ;;  %v2601_v22 = vmul.f32 %v2436_v7, %v2177_v15  ;;  %v1955_v2 = vadd.f32 %v1954_v31, %v1730_v38  ;;  %v3068_v31 = vunpack.c.l.bf16 %v3125_v53 }
 0x1ba   : > { %v1956_v1 = vpop.f32.mrf.mxu1  ;;  %v2181_v47 = vpop.f32.mrf.mxu0 }
 0x1bb   : > { %v2656_v26 = vadd.f32 %v4020_v30, %v2601_v22  ;;  %v2180_v34 = vadd.f32 %v2179_v45, %v1955_v2  ;;  %v1746_v45 = vadd.f32 %v3065_v49, %v4010_v18  ;;  %v2456_v22 = vpop.permute.xlu0 %2455 }
 0x1bc   : > { %v1959_v4 = vpop.f32.mrf.mxu1  ;;  %v2184_v19 = vpop.f32.mrf.mxu0 }
 0x1bd   : > { %2704 = vst [vmem:[%s4027_s21 + $0x90] sm:$0xff] %v2656_v26  ;;  %v2602_v57 = vmul.f32 %v2441_v35, %v2180_v34  ;;  %v1960_v28 = vadd.f32 %v1959_v4, %v1735_v50  ;;  %v1751_v34 = vadd.f32 %v3068_v31, %v3871_v9  ;;  %v2461_v4 = vpop.permute.xlu1 %2460 }
 0x1be   : > { %v1961_v61 = vpop.f32.mrf.mxu1  ;;  %v2186_v37 = vpop.f32.mrf.mxu0 }
 0x1bf   : > { %v2657_v41 = vadd.f32 %v4020_v30, %v2602_v57  ;;  %v2185_v55 = vadd.f32 %v2184_v19, %v1960_v28  ;;  %v3126_v57 = vld [vmem:[%s4003_s16 + $0x68] sm:$0xff]  }
 0x1c0   : > { %v1962_v6 = vpop.f32.mrf.mxu1  ;;  %v2187_v20 = vpop.f32.mrf.mxu0 }
 0x1c1   : > { %2705 = vst [vmem:[%s4027_s21 + $0x98] sm:$0xff] %v2657_v41  ;;  %v2603_v42 = vmul.f32 %v2446_v14, %v2185_v55  ;;  %v1963_v63 = vadd.f32 %v1962_v6, %v1738_v54  ;;  %v1754_v41 = vadd.f32 %v3069_v24, %v3875_v13  ;;  %v3072_v55 = vunpack.c.l.bf16 %v3126_v57  ;;  %v2466_v6 = vpop.permute.xlu0 %2465 }
 0x1c2   : > { %v1964_v10 = vpop.f32.mrf.mxu1  ;;  %v2189_v43 = vpop.f32.mrf.mxu0 }
 0x1c3   : > { %v2658_v51 = vadd.f32 %v4020_v30, %v2603_v42  ;;  %v2188_v32 = vadd.f32 %v2187_v20, %v1963_v63 }
 0x1c4   : > { %v1967_v12 = vpop.f32.mrf.mxu1  ;;  %v2192_v38 = vpop.f32.mrf.mxu0 }
 0x1c5   : > { %2706 = vst [vmem:[%s4027_s21 + $0xa0] sm:$0xff] %v2658_v51  ;;  %v2604_v59 = vmul.f32 %v2451_v8, %v2188_v32  ;;  %v1968_v7 = vadd.f32 %v1967_v12, %v1743_v39  ;;  %v1759_v8 = vadd.f32 %v3072_v55, %v3883_v21  ;;  %v3073_v51 = vunpack.c.h.bf16 %v3126_v57  ;;  %v2471_v32 = vpop.permute.xlu1 %2470  ;;  %v3127_v12 = vld [vmem:[%s4003_s16 + $0x70] sm:$0xff]  }
 0x1c6   : > { %v1969_v16 = vpop.f32.mrf.mxu1  ;;  %v2194_v15 = vpop.f32.mrf.mxu0  ;;  %v3077_v24 = vunpack.c.h.bf16 %v3127_v12 }
 0x1c7   : > { %v2659_v3 = vadd.f32 %v4020_v30, %v2604_v59  ;;  %v2193_v2 = vadd.f32 %v2192_v38, %v1968_v7 }
 0x1c8   : > { %v1970_v1 = vpop.f32.mrf.mxu1  ;;  %v2195_v47 = vpop.f32.mrf.mxu0 }
 0x1c9   : > { %2707 = vst [vmem:[%s4027_s21 + $0xa8] sm:$0xff] %v2659_v3  ;;  %v2605_v50 = vmul.f32 %v2456_v22, %v2193_v2  ;;  %v1971_v52 = vadd.f32 %v1970_v1, %v1746_v45  ;;  %v1762_v45 = vadd.f32 %v3073_v51, %v3887_v25  ;;  %v3076_v22 = vunpack.c.l.bf16 %v3127_v12  ;;  %v2476_v3 = vpop.permute.xlu0 %2475 }
 0x1ca   : > { %v1972_v35 = vpop.f32.mrf.mxu1  ;;  %v2197_v26 = vpop.f32.mrf.mxu0 }
 0x1cb   : > { %v2660_v19 = vadd.f32 %v4020_v30, %v2605_v50  ;;  %v2196_v18 = vadd.f32 %v2195_v47, %v1971_v52 }
 0x1cc   : > { %v1975_v28 = vpop.f32.mrf.mxu1  ;;  %v2200_v61 = vpop.f32.mrf.mxu0 }
 0x1cd   : > { %2708 = vst [vmem:[%s4027_s21 + $0xb0] sm:$0xff] %v2660_v19  ;;  %v2606_v37 = vmul.f32 %v2461_v4, %v2196_v18  ;;  %v1976_v54 = vadd.f32 %v1975_v28, %v1751_v34  ;;  %v1767_v34 = vadd.f32 %v3076_v22, %v3895_v33  ;;  %v2481_v4 = vpop.permute.xlu1 %2480  ;;  %v3128_v18 = vld [vmem:[%s4003_s16 + $0x78] sm:$0xff]   ;;  %v2486_v55 = vpop.permute.xlu0 %2485 }
 0x1ce   : > { %v1977_v62 = vpop.f32.mrf.mxu1  ;;  %v2202_v14 = vpop.f32.mrf.mxu0 }
 0x1cf   : > { %v2661_v9 = vadd.f32 %v4020_v30, %v2606_v37  ;;  %v2201_v20 = vadd.f32 %v2200_v61, %v1976_v54  ;;  %v1770_v14 = vadd.f32 %v3077_v24, %v3899_v36 }
 0x1d0   : > { %v1978_v42 = vpop.f32.mrf.mxu1  ;;  %v2203_v63 = vpop.f32.mrf.mxu0 }
 0x1d1   : > { %2709 = vst [vmem:[%s4027_s21 + $0xb8] sm:$0xff] %v2661_v9  ;;  %v2607_v10 = vmul.f32 %v2466_v6, %v2201_v20  ;;  %v1979_v43 = vadd.f32 %v1978_v42, %v1754_v41  ;;  %v3080_v41 = vunpack.c.l.bf16 %v3128_v18 }
 0x1d2   : > { %v1980_v39 = vpop.f32.mrf.mxu1  ;;  %v2205_v49 = vpop.f32.mrf.mxu0 }
 0x1d3   : > { %v2662_v13 = vadd.f32 %v4020_v30, %v2607_v10  ;;  %v2204_v53 = vadd.f32 %v2203_v63, %v1979_v43  ;;  %v1775_v39 = vadd.f32 %v3080_v41, %v3907_v44  ;;  %v3081_v49 = vunpack.c.h.bf16 %v3128_v18 }
 0x1d4   : > { %v1983_v38 = vpop.f32.mrf.mxu1  ;;  %v2208_v59 = vpop.f32.mrf.mxu0 }
 0x1d5   : > { %2710 = vst [vmem:[%s4027_s21 + $0xc0] sm:$0xff] %v2662_v13  ;;  %v2608_v7 = vmul.f32 %v2471_v32, %v2204_v53  ;;  %v1984_v16 = vadd.f32 %v1983_v38, %v1759_v8  ;;  %v2491_v8 = vpop.permute.xlu1 %2490  ;;  %v3129_v32 = vld [vmem:[%s4003_s16 + $0x80] sm:$0xff]  }
 0x1d6   : > { %v1985_v15 = vpop.f32.mrf.mxu1  ;;  %v2210_v31 = vpop.f32.mrf.mxu0 }
 0x1d7   : > { %v2663_v21 = vadd.f32 %v4020_v30, %v2608_v7  ;;  %v2209_v2 = vadd.f32 %v2208_v59, %v1984_v16  ;;  %v1778_v16 = vadd.f32 %v3081_v49, %v3911_v48  ;;  %v3084_v15 = vunpack.c.l.bf16 %v3129_v32  ;;  %v2496_v31 = vpop.permute.xlu0 %2495 }
 0x1d8   : > { %v1986_v1 = vpop.f32.mrf.mxu1  ;;  %v2211_v47 = vpop.f32.mrf.mxu0 }
 0x1d9   : > { %2711 = vst [vmem:[%s4027_s21 + $0xc8] sm:$0xff] %v2663_v21  ;;  %v2609_v50 = vmul.f32 %v2476_v3, %v2209_v2  ;;  %v1987_v52 = vadd.f32 %v1986_v1, %v1762_v45 }
 0x1da   : > { %v1988_v35 = vpop.f32.mrf.mxu1  ;;  %v2213_v26 = vpop.f32.mrf.mxu0 }
 0x1db   : > { %v2664_v25 = vadd.f32 %v4020_v30, %v2609_v50  ;;  %v2212_v19 = vadd.f32 %v2211_v47, %v1987_v52  ;;  %v1783_v50 = vadd.f32 %v3084_v15, %v3919_v56  ;;  %v3085_v52 = vunpack.c.h.bf16 %v3129_v32  ;;  %v2501_v35 = vpop.permute.xlu1 %2500 }
 0x1dc   : > { %v1991_v57 = vpop.f32.mrf.mxu1  ;;  %v2216_v28 = vpop.f32.mrf.mxu0 }
 0x1dd   : > { %2712 = vst [vmem:[%s4027_s21 + $0xd0] sm:$0xff] %v2664_v25  ;;  %v2610_v61 = vmul.f32 %v2481_v4, %v2212_v19  ;;  %v1992_v37 = vadd.f32 %v1991_v57, %v1767_v34  ;;  %v3130_v34 = vld [vmem:[%s4003_s16 + $0x88] sm:$0xff]  }
 0x1de   : > { %v1993_v54 = vpop.f32.mrf.mxu1  ;;  %v2218_v62 = vpop.f32.mrf.mxu0 }
 0x1df   : > { %v2665_v33 = vadd.f32 %v4020_v30, %v2610_v61  ;;  %v2217_v6 = vadd.f32 %v2216_v28, %v1992_v37  ;;  %v1786_v28 = vadd.f32 %v3085_v52, %v3923_v60  ;;  %v3088_v61 = vunpack.c.l.bf16 %v3130_v34  ;;  %v2506_v37 = vpop.permute.xlu0 %2505 }
 0x1e0   : > { %v1994_v9 = vpop.f32.mrf.mxu1  ;;  %v2219_v20 = vpop.f32.mrf.mxu0 }
 0x1e1   : > { %2713 = vst [vmem:[%s4027_s21 + $0xd8] sm:$0xff] %v2665_v33  ;;  %v2611_v42 = vmul.f32 %v2486_v55, %v2217_v6  ;;  %v1995_v63 = vadd.f32 %v1994_v9, %v1770_v14  ;;  %v1791_v9 = vadd.f32 %v3088_v61, %v3931_v5 }
 0x1e2   : > { %v1996_v10 = vpop.f32.mrf.mxu1  ;;  %v2221_v43 = vpop.f32.mrf.mxu0 }
 0x1e3   : > { %v2666_v36 = vadd.f32 %v4020_v30, %v2611_v42  ;;  %v2220_v51 = vadd.f32 %v2219_v20, %v1995_v63  ;;  %v3089_v20 = vunpack.c.h.bf16 %v3130_v34  ;;  %v2511_v42 = vpop.permute.xlu1 %2510  ;;  %v3131_v10 = vld [vmem:[%s4003_s16 + $0x90] sm:$0xff]  }
 0x1e4   : > { %v1999_v13 = vpop.f32.mrf.mxu1  ;;  %v2224_v53 = vpop.f32.mrf.mxu0 }
 0x1e5   : > { %2714 = vst [vmem:[%s4027_s21 + $0xe0] sm:$0xff] %v2666_v36  ;;  %v2612_v12 = vmul.f32 %v2491_v8, %v2220_v51  ;;  %v2000_v38 = vadd.f32 %v1999_v13, %v1775_v39  ;;  %v1794_v32 = vadd.f32 %v3089_v20, %v3935_v11  ;;  %v3092_v13 = vunpack.c.l.bf16 %v3131_v10 }
 0x1e6   : > { %v2001_v59 = vpop.f32.mrf.mxu1  ;;  %v2226_v7 = vpop.f32.mrf.mxu0 }
 0x1e7   : > { %v2667_v44 = vadd.f32 %v4020_v30, %v2612_v12  ;;  %v2225_v45 = vadd.f32 %v2224_v53, %v2000_v38  ;;  %v2516_v53 = vpop.permute.xlu0 %2515 }
 0x1e8   : > { %v2002_v22 = vpop.f32.mrf.mxu1  ;;  %v2227_v3 = vpop.f32.mrf.mxu0 }
 0x1e9   : > { %2715 = vst [vmem:[%s4027_s21 + $0xe8] sm:$0xff] %v2667_v44  ;;  %v2613_v21 = vmul.f32 %v2496_v31, %v2225_v45  ;;  %v2003_v2 = vadd.f32 %v2002_v22, %v1778_v16  ;;  %v1799_v44 = vadd.f32 %v3092_v13, %v3943_v23  ;;  %v3093_v45 = vunpack.c.h.bf16 %v3131_v10  ;;  %v2521_v22 = vpop.permute.xlu1 %2520 }
 0x1ea   : > { %v2004_v1 = vpop.f32.mrf.mxu1  ;;  %v2229_v47 = vpop.f32.mrf.mxu0 }
 0x1eb   : > { %v2668_v48 = vadd.f32 %v4020_v30, %v2613_v21  ;;  %v2228_v26 = vadd.f32 %v2227_v3, %v2003_v2  ;;  %v3132_v21 = vld [vmem:[%s4003_s16 + $0x98] sm:$0xff]   ;;  %v2526_v34 = vpop.permute.xlu0 %2525 }
 0x1ec   : > { %v2007_v24 = vpop.f32.mrf.mxu1  ;;  %v2232_v4 = vpop.f32.mrf.mxu0 }
 0x1ed   : > { %2716 = vst [vmem:[%s4027_s21 + $0xf0] sm:$0xff] %v2668_v48  ;;  %v2614_v25 = vmul.f32 %v2501_v35, %v2228_v26  ;;  %v2008_v19 = vadd.f32 %v2007_v24, %v1783_v50  ;;  %v1802_v48 = vadd.f32 %v3093_v45, %v3947_v29  ;;  %v3096_v26 = vunpack.c.l.bf16 %v3132_v21 }
 0x1ee   : > { %v2009_v18 = vpop.f32.mrf.mxu1  ;;  %v2234_v57 = vpop.f32.mrf.mxu0 }
 0x1ef   : > { %v2669_v56 = vadd.f32 %v4020_v30, %v2614_v25  ;;  %v2233_v54 = vadd.f32 %v2232_v4, %v2008_v19  ;;  %v1807_v61 = vadd.f32 %v3096_v26, %v3955_v40  ;;  %v3135_v26 = vld [vmem:[%s4003_s16 + $0xb0] sm:$0xff]  }
 0x1f0   : > { %v2010_v62 = vpop.f32.mrf.mxu1  ;;  %v2235_v14 = vpop.f32.mrf.mxu0 }
 0x1f1   : > { %2717 = vst [vmem:[%s4027_s21 + $0xf8] sm:$0xff] %v2669_v56  ;;  %v2615_v41 = vmul.f32 %v2506_v37, %v2233_v54  ;;  %v2011_v55 = vadd.f32 %v2010_v62, %v1786_v28  ;;  %v3097_v37 = vunpack.c.h.bf16 %v3132_v21  ;;  %v2531_v56 = vpop.permute.xlu1 %2530  ;;  %v3133_v62 = vld [vmem:[%s4003_s16 + $0xa0] sm:$0xff]  }
 0x1f2   : > { %v2012_v33 = vpop.f32.mrf.mxu1  ;;  %v2237_v6 = vpop.f32.mrf.mxu0 }
 0x1f3   : > { %v2670_v60 = vadd.f32 %v4020_v30, %v2615_v41  ;;  %v2236_v63 = vadd.f32 %v2235_v14, %v2011_v55  ;;  %v1810_v20 = vadd.f32 %v3097_v37, %v3959_v46 }
 0x1f4   : > { %v2015_v43 = vpop.f32.mrf.mxu1  ;;  %v2240_v39 = vpop.f32.mrf.mxu0 }
 0x1f5   : > { %2718 = vst [vmem:[%s4027_s21 + $0x100] sm:$0xff] %v2670_v60  ;;  %v2616_v49 = vmul.f32 %v2511_v42, %v2236_v63  ;;  %v2016_v8 = vadd.f32 %v2015_v43, %v1791_v9  ;;  %v3100_v42 = vunpack.c.l.bf16 %v3133_v62  ;;  %v2536_v60 = vpop.permute.xlu0 %2535  ;;  %v2541_v13 = vpop.permute.xlu1 %2540 }
 0x1f6   : > { %v2017_v36 = vpop.f32.mrf.mxu1  ;;  %v2242_v51 = vpop.f32.mrf.mxu0 }
 0x1f7   : > { %v2671_v5 = vadd.f32 %v4020_v30, %v2616_v49  ;;  %v2241_v12 = vadd.f32 %v2240_v39, %v2016_v8  ;;  %v1815_v51 = vadd.f32 %v3100_v42, %v3967_v58 }
 0x1f8   : > { %v2018_v38 = vpop.f32.mrf.mxu1  ;;  %v2243_v59 = vpop.f32.mrf.mxu0 }
 0x1f9   : > { %2719 = vst [vmem:[%s4027_s21 + $0x108] sm:$0xff] %v2671_v5  ;;  %v2617_v7 = vmul.f32 %v2516_v53, %v2241_v12  ;;  %v2019_v16 = vadd.f32 %v2018_v38, %v1794_v32  ;;  %v3101_v32 = vunpack.c.h.bf16 %v3133_v62  ;;  %v3134_v5 = vld [vmem:[%s4003_s16 + $0xa8] sm:$0xff]   ;;  %v2546_v45 = vpop.permute.xlu0 %2545 }
 0x1fa   : > { %v2020_v15 = vpop.f32.mrf.mxu1  ;;  %v2245_v31 = vpop.f32.mrf.mxu0 }
 0x1fb   : > { %v2672_v11 = vadd.f32 %v4020_v30, %v2617_v7  ;;  %v2244_v3 = vadd.f32 %v2243_v59, %v2019_v16  ;;  %v1818_v31 = vadd.f32 %v3101_v32, %v3971_v0 }
 0x1fc   : > { %v2023_v2 = vpop.f32.mrf.mxu1  ;;  %v2248_v1 = vpop.f32.mrf.mxu0 }
 0x1fd   : > { %2720 = vst [vmem:[%s4027_s21 + $0x110] sm:$0xff] %v2672_v11  ;;  %v2618_v47 = vmul.f32 %v2521_v22, %v2244_v3  ;;  %v2024_v50 = vadd.f32 %v2023_v2, %v1799_v44  ;;  %v3104_v44 = vunpack.c.l.bf16 %v3134_v5 }
 0x1fe   : > { %v2025_v52 = vpop.f32.mrf.mxu1  ;;  %v2250_v35 = vpop.f32.mrf.mxu0 }
 0x1ff   : > { %v2673_v23 = vadd.f32 %v4020_v30, %v2618_v47  ;;  %v2249_v24 = vadd.f32 %v2248_v1, %v2024_v50  ;;  %v1823_v50 = vadd.f32 %v3104_v44, %v3979_v17  ;;  %v3105_v52 = vunpack.c.h.bf16 %v3134_v5  ;;  %v2551_v35 = vpop.permute.xlu1 %2550  ;;  %v4177_v17 = vld [vmem:[%s4205_s4] ss:$0 sm:$0xff] }
 0x200   : > { %v2026_v4 = vpop.f32.mrf.mxu1  ;;  %v2251_v25 = vpop.f32.mrf.mxu0 }
 0x201   : > { %2721 = vst [vmem:[%s4027_s21 + $0x118] sm:$0xff] %v2673_v23  ;;  %v2619_v19 = vmul.f32 %v2526_v34, %v2249_v24  ;;  %v2027_v18 = vadd.f32 %v2026_v4, %v1802_v48 }
 0x202   : > { %v2028_v57 = vpop.f32.mrf.mxu1  ;;  %v2253_v28 = vpop.f32.mrf.mxu0 }
 0x203   : > { %v2674_v29 = vadd.f32 %v4020_v30, %v2619_v19  ;;  %v2252_v54 = vadd.f32 %v2251_v25, %v2027_v18  ;;  %v1826_v18 = vadd.f32 %v3105_v52, %v3983_v27  ;;  %v3108_v57 = vunpack.c.l.bf16 %v3135_v26  ;;  %v2556_v28 = vpop.permute.xlu0 %2555  ;;  %v4211_v27 = vld [vmem:[#allocation2_spill] sm:$0xff] }
 0x204   : > { %v2031_v14 = vpop.f32.mrf.mxu1  ;;  %v2256_v41 = vpop.f32.mrf.mxu0 }
 0x205   : > { %2722 = vst [vmem:[%s4027_s21 + $0x120] sm:$0xff] %v2674_v29  ;;  %v2620_v55 = vmul.f32 %v2531_v56, %v2252_v54  ;;  %v2032_v33 = vadd.f32 %v2031_v14, %v1807_v61 }
 0x206   : > { %v2033_v6 = vpop.f32.mrf.mxu1  ;;  %v2258_v9 = vpop.f32.mrf.mxu0 }
 0x207   : > { %v2675_v40 = vadd.f32 %v4020_v30, %v2620_v55  ;;  %v2257_v63 = vadd.f32 %v2256_v41, %v2032_v33  ;;  %v1831_v41 = vadd.f32 %v3108_v57, %v4211_v27  ;;  %v3109_v55 = vunpack.c.h.bf16 %v3135_v26  ;;  %v2561_v33 = vpop.permute.xlu1 %2560 }
 0x208   : > { %v2034_v10 = vpop.f32.mrf.mxu1  ;;  %v2259_v43 = vpop.f32.mrf.mxu0 }
 0x209   : > { %2723 = vst [vmem:[%s4027_s21 + $0x128] sm:$0xff] %v2675_v40  ;;  %v2621_v39 = vmul.f32 %v2536_v60, %v2257_v63  ;;  %v2035_v49 = vadd.f32 %v2034_v10, %v1810_v20  ;;  %v3136_v20 = vld [vmem:[%s4003_s16 + $0xb8] sm:$0xff]  }
 0x20a   : > { %v2036_v8 = vpop.f32.mrf.mxu1  ;;  %v2261_v36 = vpop.f32.mrf.mxu0 }
 0x20b   : > { %v2676_v46 = vadd.f32 %v4020_v30, %v2621_v39  ;;  %v2260_v53 = vadd.f32 %v2259_v43, %v2035_v49  ;;  %v4212_v39 = vld [vmem:[#allocation3_spill] sm:$0xff]  ;;  %v3112_v8 = vunpack.c.l.bf16 %v3136_v20  ;;  %v2566_v36 = vpop.permute.xlu0 %2565 }
 0x20c   : > { %v2039_v12 = vpop.f32.mrf.mxu1  ;;  %v2264_v38 = vpop.f32.mrf.mxu0  ;;  %v1834_v49 = vadd.f32 %v3109_v55, %v4212_v39 }
 0x20d   : > { %2724 = vst [vmem:[%s4027_s21 + $0x130] sm:$0xff] %v2676_v46  ;;  %v2622_v59 = vmul.f32 %v2541_v13, %v2260_v53  ;;  %v2040_v7 = vadd.f32 %v2039_v12, %v1815_v51 }
 0x20e   : > { %v2041_v16 = vpop.f32.mrf.mxu1  ;;  %v2266_v15 = vpop.f32.mrf.mxu0 }
 0x20f   : > { %v2677_v58 = vadd.f32 %v4020_v30, %v2622_v59  ;;  %v2265_v22 = vadd.f32 %v2264_v38, %v2040_v7  ;;  %v4213_v59 = vld [vmem:[#allocation4_spill] sm:$0xff]  ;;  %v3113_v16 = vunpack.c.h.bf16 %v3136_v20  ;;  %v2571_v15 = vpop.permute.xlu1 %2570 }
 0x210   : > { %v2042_v11 = vpop.f32.mrf.mxu1  ;;  %v2267_v3 = vpop.f32.mrf.mxu0  ;;  %v1839_v7 = vadd.f32 %v3112_v8, %v4213_v59 }
 0x211   : > { %2725 = vst [vmem:[%s4027_s21 + $0x138] sm:$0xff] %v2677_v58  ;;  %v2623_v21 = vmul.f32 %v2546_v45, %v2265_v22  ;;  %v2043_v2 = vadd.f32 %v2042_v11, %v1818_v31 }
 0x212   : > { %v2044_v1 = vpop.f32.mrf.mxu1  ;;  %v2269_v47 = vpop.f32.mrf.mxu0 }
 0x213   : > { %v2678_v0 = vadd.f32 %v4020_v30, %v2623_v21  ;;  %v2268_v48 = vadd.f32 %v2267_v3, %v2043_v2  ;;  %v4214_v2 = vld [vmem:[#allocation5_spill] sm:$0xff]  ;;  %v2576_v47 = vpop.permute.xlu0 %2575 }
 0x214   : > { %v2047_v34 = vpop.f32.mrf.mxu1  ;;  %v2272_v23 = vpop.f32.mrf.mxu0  ;;  %v1842_v1 = vadd.f32 %v3113_v16, %v4214_v2 }
 0x215   : > { %2726 = vst [vmem:[%s4027_s21 + $0x140] sm:$0xff] %v2678_v0  ;;  %v2624_v24 = vmul.f32 %v2551_v35, %v2268_v48  ;;  %v2048_v4 = vadd.f32 %v2047_v34, %v1823_v50 }
 0x216   : > { %v2049_v25 = vpop.f32.mrf.mxu1  ;;  %v2274_v19 = vpop.f32.mrf.mxu0 }
 0x217   : > { %v2679_v30 = vadd.f32 %v4177_v17, %v2624_v24  ;;  %v2273_v61 = vadd.f32 %v2272_v23, %v2048_v4  ;;  %v2581_v25 = vpop.permute.xlu1 %2580 }
 0x218   : > { %v2050_v37 = vpop.f32.mrf.mxu1  ;;  %v2275_v56 = vpop.f32.mrf.mxu0 }
 0x219   : > { %2727 = vst [vmem:[%s4027_s21 + $0x148] sm:$0xff] %v2679_v30  ;;  %v2625_v29 = vmul.f32 %v2556_v28, %v2273_v61  ;;  %v2051_v54 = vadd.f32 %v2050_v37, %v1826_v18 }
 0x21a   : > { %v2052_v62 = vpop.f32.mrf.mxu1  ;;  %v2277_v14 = vpop.f32.mrf.mxu0 }
 0x21b   : > { %v2680_v6 = vadd.f32 %v4177_v17, %v2625_v29  ;;  %v2276_v9 = vadd.f32 %v2275_v56, %v2051_v54 }
 0x21c   : > { %v2055_v42 = vpop.f32.mrf.mxu1  ;;  %v2280_v60 = vpop.f32.mrf.mxu0 }
 0x21d   : > { %2728 = vst [vmem:[%s4027_s21 + $0x150] sm:$0xff] %v2680_v6  ;;  %v2626_v40 = vmul.f32 %v2561_v33, %v2276_v9  ;;  %v2056_v63 = vadd.f32 %v2055_v42, %v1831_v41 }
 0x21e   : > { %v2057_v10 = vpop.f32.mrf.mxu1  ;;  %v2282_v43 = vpop.f32.mrf.mxu0 }
 0x21f   : > { %v2681_v51 = vadd.f32 %v4177_v17, %v2626_v40  ;;  %v2281_v32 = vadd.f32 %v2280_v60, %v2056_v63 }
 0x220   : > { %v2058_v13 = vpop.f32.mrf.mxu1  ;;  %v2283_v46 = vpop.f32.mrf.mxu0 }
 0x221   : > { %2729 = vst [vmem:[%s4027_s21 + $0x158] sm:$0xff] %v2681_v51  ;;  %v2627_v53 = vmul.f32 %v2566_v36, %v2281_v32  ;;  %v2059_v5 = vadd.f32 %v2058_v13, %v1834_v49 }
 0x222   : > { %v2060_v12 = vpop.f32.mrf.mxu1  ;;  %v2285_v38 = vpop.f32.mrf.mxu0 }
 0x223   : > { %v2682_v31 = vadd.f32 %v4177_v17, %v2627_v53  ;;  %v2284_v44 = vadd.f32 %v2283_v46, %v2059_v5 }
 0x224   : > { %v2063_v45 = vpop.f32.mrf.mxu1  ;;  %v2288_v58 = vpop.f32.mrf.mxu0 }
 0x225   : > { %2730 = vst [vmem:[%s4027_s21 + $0x160] sm:$0xff] %v2682_v31  ;;  %v2628_v22 = vmul.f32 %v2571_v15, %v2284_v44  ;;  %v2064_v11 = vadd.f32 %v2063_v45, %v1839_v7 }
 0x226   : > { %v2065_v3 = vpop.f32.mrf.mxu1  ;;  %v2290_v21 = vpop.f32.mrf.mxu0 }
 0x227   : > { %v2683_v50 = vadd.f32 %v4177_v17, %v2628_v22  ;;  %v2289_v52 = vadd.f32 %v2288_v58, %v2064_v11 }
 0x228   : > { %v2066_v35 = vpop.f32.mrf.mxu1  ;;  %v2291_v0 = vpop.f32.mrf.mxu0 }
 0x229   : > { %2731 = vst [vmem:[%s4027_s21 + $0x168] sm:$0xff] %v2683_v50  ;;  %v2629_v48 = vmul.f32 %v2576_v47, %v2289_v52  ;;  %v2067_v26 = vadd.f32 %v2066_v35, %v1842_v1 }
 0x22a   : > { %v2068_v34 = vpop.f32.mrf.mxu1  ;;  %v2293_v23 = vpop.f32.mrf.mxu0 }
 0x22b   : > { %v2684_v24 = vadd.f32 %v4177_v17, %v2629_v48  ;;  %v2292_v4 = vadd.f32 %v2291_v0, %v2067_v26 }
 0x22d   : > { %2732 = vst [vmem:[%s4027_s21 + $0x170] sm:$0xff] %v2684_v24  ;;  %v2630_v19 = vmul.f32 %v2581_v25, %v2292_v4 }
 0x22f   : > { %v2685_v18 = vadd.f32 %v4177_v17, %v2630_v19 }
 0x231   : > { %2733 = vst [vmem:[%s4027_s21 + $0x178] sm:$0xff] %v2685_v18 }
 0x232 PF: > { %s15_s18 = sadd.s32 1, %s3452_s18  }
 0x233   : > { %p12_p4 = scmp.ge.s32.totalorder %s15_s18, 4  }
 0x235   :  { %14 = sbr.rel (!%p12_p4) target bundleno = 1 (0x1), region = 76 }

// kernel: sage_forward.2
= control target key start
LH: loop header
LB: loop body
LE: loop exit
PB: predicated region body
PF: predicated region fallthrough
CT: control target
= control target key end

     0   :  { %s4420_s21 = smov 0   ;;  %s5259_s0 = inlined_call_operand.vmem [shape: bf16[768,768], index: 0, kind: input, shape index: {}]   ;;  %s5260_s1 = inlined_call_operand.vmem [shape: bf16[768,128], index: 1, kind: input, shape index: {}, may-alias: {1,2}]   ;;  %s5261_s2 = inlined_call_operand.vmem [shape: bf16[768,128], index: 2, kind: input, shape index: {}, may-alias: {1,2}]   ;;  %s5262_s3 = inlined_call_operand.vmem [shape: f32[768,1], index: 3, kind: input, shape index: {}]   ;;  %s5263_s4 = inlined_call_operand.vmem [shape: f32[1,128], index: 4, kind: input, shape index: {}]   ;;  %s5264_s5 = inlined_call_operand.vmem [shape: bf16[128,128], index: 5, kind: input, shape index: {}]   ;;  %s5265_s6 = inlined_call_operand.vmem [shape: bf16[768,128], index: 6, kind: output, shape index: {}]  }
   0x1 LB: > { %s3394_s22 = sadd.s32 4294967295, %s4382_s21   ;;  %p3398_p0 = scmp.ge.s32.totalorder %s4382_s21, 1  ;;  %s4382_s21 = sphi %s4420_s21, %s16_s21  }
   0x2   : > { %p236_p1 = scmp.lt.s32.totalorder %s4382_s21, 3 }
   0x4   : > { %p237_p2 = pnand %p3398_p0, %p236_p1 }
   0x6   : > { %240 = sbr.rel (%p237_p2) target bundleno = 837 (0x345), region = 44 }
   0xb   : > { %v4104_v0 = vld [vmem:[%s5260_s1 + $0x38] sm:$0xff]   ;;  %v4384_v1 = vmov 0   ;;  %v4106_v3 = vld [vmem:[%s5260_s1 + $0x30] sm:$0xff]   ;;  %v4108_v5 = vld [vmem:[%s5260_s1 + $0x28] sm:$0xff]   ;;  %s277_s17 = smul.u32 48, %s3394_s22 }
   0xc   : > { %1647 = vmatprep.subr.bf16.mxu0 %v4384_v1  ;;  %1872 = vmatprep.subr.bf16.mxu1 %v4384_v1  ;;  %v4105_v2 = vld [vmem:[%s5260_s1 + $0xb8] sm:$0xff]   ;;  %v4107_v4 = vld [vmem:[%s5260_s1 + $0xb0] sm:$0xff]   ;;  %v4109_v6 = vld [vmem:[%s5260_s1 + $0xa8] sm:$0xff]  }
   0xd   : > { %1648 = vmatpush1.bf16.msra.mxu0 %v4104_v0  ;;  %4102 = vset.pattern.permute.xlu0 %v4384_v1  ;;  %v4110_v7 = vld [vmem:[%s5260_s1 + $0x20] sm:$0xff]   ;;  %v4112_v9 = vld [vmem:[%s5260_s1 + $0x18] sm:$0xff]   ;;  %v4114_v11 = vld [vmem:[%s5260_s1 + $0x10] sm:$0xff]   ;;  %p278_p3 = scmp.lt.s32.totalorder %s277_s17, 95 }
   0xe   : > { %1873 = vmatpush1.bf16.msra.mxu1 %v4105_v2  ;;  %1649 = vmatprep.subr.bf16.mxu0 %v4384_v1  ;;  %v4111_v8 = vld [vmem:[%s5260_s1 + $0xa0] sm:$0xff]   ;;  %v4113_v10 = vld [vmem:[%s5260_s1 + $0x98] sm:$0xff]   ;;  %v4115_v12 = vld [vmem:[%s5260_s1 + $0x90] sm:$0xff]  }
   0xf   : > { %1874 = vmatprep.subr.bf16.mxu1 %v4384_v1  ;;  %4103 = vset.pattern.permute.xlu1 %v4384_v1  ;;  %v4116_v13 = vld [vmem:[%s5260_s1 + $0x8] sm:$0xff]   ;;  %s5343_s17 = smov (!%p278_p3, %s277_s17), 95  ;;  %v4118_v15 = vld [vmem:[%s5260_s1] sm:$0xff]   ;;  %v4120_v17 = vld [vmem:[%s5260_s1 + $0x78] sm:$0xff]  }
  0x10   : > { %v4117_v14 = vld [vmem:[%s5260_s1 + $0x88] sm:$0xff]   ;;  %s4092_s7 = smul.u32 24, %s5343_s17  ;;  %v4119_v16 = vld [vmem:[%s5260_s1 + $0x80] sm:$0xff]   ;;  %v4121_v18 = vld [vmem:[%s5260_s1 + $0xf8] sm:$0xff]   ;;  %s3401_s11 = sshll.u32 %s5343_s17, 3 }
  0x11   : > { %1650 = vmatpush1.bf16.msra.mxu0 %v4106_v3  ;;  %v4122_v20 = vld [vmem:[%s5260_s1 + $0x70] sm:$0xff]   ;;  %v4124_v23 = vld [vmem:[%s5260_s1 + $0x68] sm:$0xff]   ;;  %v4126_v25 = vld [vmem:[%s5260_s1 + $0x60] sm:$0xff]   ;;  %s4685_s18 = scalar_lea.vmem %s5262_s3, %s3401_s11  ;;  %s3400_s19 = sshll.u32 %s5343_s17, 2 }
  0x12   : > { %1875 = vmatpush1.bf16.msra.mxu1 %v4107_v4  ;;  %1651 = vmatprep.subr.bf16.mxu0 %v4384_v1  ;;  %s4505_s14 = scalar_lea.vmem %s5259_s0, %s4092_s7  ;;  %v4123_v22 = vld [vmem:[%s5260_s1 + $0xf0] sm:$0xff]   ;;  %v4125_v24 = vld [vmem:[%s5260_s1 + $0xe8] sm:$0xff]   ;;  %v4127_v26 = vld [vmem:[%s5260_s1 + $0xe0] sm:$0xff]   ;;  %s4806_s24 = scalar_lea.vmem %s5261_s2, %s3400_s19 }
  0x13   : > { %1876 = vmatprep.subr.bf16.mxu1 %v4384_v1  ;;  %v4138_v19 = vld [vmem:[%s4505_s14 + $0x4] ss:$24 sps:$4 sm:$0xff]   ;;  %v4130_v29 = vld [vmem:[%s5260_s1 + $0x50] sm:$0xff]   ;;  %v4132_v31 = vld [vmem:[%s5260_s1 + $0x48] sm:$0xff]  }
  0x14   : > { %v4141_v21 = vld [vmem:[%s4505_s14 + $0xc] ss:$24 sps:$4 sm:$0xff]   ;;  %1679 = vmatprep.mubr.bf16.mxu0 %v4138_v19  ;;  %v4128_v27 = vld [vmem:[%s5260_s1 + $0x58] sm:$0xff]   ;;  %v4131_v30 = vld [vmem:[%s5260_s1 + $0xd0] sm:$0xff]  }
  0x15   : > { %1652 = vmatpush1.bf16.msra.mxu0 %v4108_v5  ;;  %1904 = vmatprep.mubr.bf16.mxu1 %v4141_v21  ;;  %v4129_v28 = vld [vmem:[%s5260_s1 + $0xd8] sm:$0xff]   ;;  %v4133_v32 = vld [vmem:[%s5260_s1 + $0xc8] sm:$0xff]   ;;  %v4134_v33 = vld [vmem:[%s5260_s1 + $0x40] sm:$0xff]  }
  0x16   : > { %1877 = vmatpush1.bf16.msra.mxu1 %v4109_v6  ;;  %1653 = vmatprep.subr.bf16.mxu0 %v4384_v1  ;;  %v4135_v34 = vld [vmem:[%s5260_s1 + $0xc0] sm:$0xff]   ;;  %v4142_v37 = vld [vmem:[%s5260_s1 + $0x138] sm:$0xff]   ;;  %v4143_v38 = vld [vmem:[%s4505_s14 + $0x34] ss:$24 sps:$4 sm:$0xff]  }
  0x17   : > { %1878 = vmatprep.subr.bf16.mxu1 %v4384_v1  ;;  %v4136_v35 = vld [vmem:[%s4505_s14] ss:$24 sps:$4 sm:$0xff]   ;;  %v4145_v39 = vld [vmem:[%s4505_s14 + $0x3c] ss:$24 sps:$4 sm:$0xff]   ;;  %v4147_v41 = vld [vmem:[%s4505_s14 + $0x30] ss:$24 sps:$4 sm:$0xff]  }
  0x18   : > { %v4139_v36 = vld [vmem:[%s4505_s14 + $0x8] ss:$24 sps:$4 sm:$0xff]   ;;  %v4149_v40 = vld [vmem:[%s5260_s1 + $0x130] sm:$0xff]   ;;  %v4150_v43 = vld [vmem:[%s4505_s14 + $0x64] ss:$24 sps:$4 sm:$0xff]  }
  0x19   : > { %1654 = vmatpush1.bf16.msra.mxu0 %v4110_v7  ;;  %v4148_v42 = vld [vmem:[%s4505_s14 + $0x38] ss:$24 sps:$4 sm:$0xff]   ;;  %v4152_v44 = vld [vmem:[%s4505_s14 + $0x6c] ss:$24 sps:$4 sm:$0xff]   ;;  %v4155_v48 = vld [vmem:[%s4505_s14 + $0x68] ss:$24 sps:$4 sm:$0xff]  }
  0x1a   : > { %1879 = vmatpush1.bf16.msra.mxu1 %v4111_v8  ;;  %1655 = vmatprep.subr.bf16.mxu0 %v4384_v1  ;;  %v4162_v45 = vld [vmem:[%s5260_s1 + $0x128] sm:$0xff]   ;;  %v4169_v46 = vld [vmem:[%s5260_s1 + $0x120] sm:$0xff]   ;;  %v4158_v50 = vld [vmem:[%s4505_s14 + $0x9c] ss:$24 sps:$4 sm:$0xff]  }
  0x1b   : > { %1880 = vmatprep.subr.bf16.mxu1 %v4384_v1  ;;  %v4154_v47 = vld [vmem:[%s4505_s14 + $0x60] ss:$24 sps:$4 sm:$0xff]   ;;  %v4156_v49 = vld [vmem:[%s4505_s14 + $0x94] ss:$24 sps:$4 sm:$0xff]   ;;  %v4160_v53 = vld [vmem:[%s4505_s14 + $0x90] ss:$24 sps:$4 sm:$0xff]  }
  0x1c   : > { %v4182_v51 = vld [vmem:[%s5260_s1 + $0x118] sm:$0xff]   ;;  %v4189_v52 = vld [vmem:[%s5260_s1 + $0x110] sm:$0xff]   ;;  %v4165_v56 = vld [vmem:[%s4505_s14 + $0xcc] ss:$24 sps:$4 sm:$0xff]  }
  0x1d   : > { %1656 = vmatpush1.bf16.msra.mxu0 %v4112_v9  ;;  %v4161_v54 = vld [vmem:[%s4505_s14 + $0x98] ss:$24 sps:$4 sm:$0xff]   ;;  %v4163_v55 = vld [vmem:[%s4505_s14 + $0xc4] ss:$24 sps:$4 sm:$0xff]   ;;  %v4202_v57 = vld [vmem:[%s5260_s1 + $0x108] sm:$0xff]  }
  0x1e   : > { %1881 = vmatpush1.bf16.msra.mxu1 %v4113_v10  ;;  %1657 = vmatprep.subr.bf16.mxu0 %v4384_v1  ;;  %v4209_v58 = vld [vmem:[%s5260_s1 + $0x100] sm:$0xff]   ;;  %v4170_v61 = vld [vmem:[%s4505_s14 + $0xf4] ss:$24 sps:$4 sm:$0xff]   ;;  %v4222_v63 = vld [vmem:[%s5260_s1 + $0x178] sm:$0xff]  }
  0x1f   : > { %1882 = vmatprep.subr.bf16.mxu1 %v4384_v1  ;;  %v4167_v59 = vld [vmem:[%s4505_s14 + $0xc0] ss:$24 sps:$4 sm:$0xff]   ;;  %v4172_v62 = vld [vmem:[%s4505_s14 + $0xfc] ss:$24 sps:$4 sm:$0xff]   ;;  %v4174_v2 = vld [vmem:[%s4505_s14 + $0xf0] ss:$24 sps:$4 sm:$0xff]  }
  0x20   : > { %v4168_v60 = vld [vmem:[%s4505_s14 + $0xc8] ss:$24 sps:$4 sm:$0xff]   ;;  %v4229_v0 = vld [vmem:[%s5260_s1 + $0x170] sm:$0xff]   ;;  %v4176_v4 = vld [vmem:[%s4505_s14 + $0x124] ss:$24 sps:$4 sm:$0xff]  }
  0x21   : > { %1658 = vmatpush1.bf16.msra.mxu0 %v4114_v11  ;;  %v4175_v3 = vld [vmem:[%s4505_s14 + $0xf8] ss:$24 sps:$4 sm:$0xff]   ;;  %v4178_v5 = vld [vmem:[%s4505_s14 + $0x12c] ss:$24 sps:$4 sm:$0xff]   ;;  %v4181_v9 = vld [vmem:[%s4505_s14 + $0x128] ss:$24 sps:$4 sm:$0xff]  }
  0x22   : > { %1883 = vmatpush1.bf16.msra.mxu1 %v4115_v12  ;;  %1659 = vmatprep.subr.bf16.mxu0 %v4384_v1  ;;  %v4242_v6 = vld [vmem:[%s5260_s1 + $0x168] sm:$0xff]   ;;  %v4180_v7 = vld [vmem:[%s4505_s14 + $0x120] ss:$24 sps:$4 sm:$0xff]   ;;  %v4185_v11 = vld [vmem:[%s4505_s14 + $0x15c] ss:$24 sps:$4 sm:$0xff]  }
  0x23   : > { %1884 = vmatprep.subr.bf16.mxu1 %v4384_v1  ;;  %v4249_v8 = vld [vmem:[%s5260_s1 + $0x160] sm:$0xff]   ;;  %v4183_v10 = vld [vmem:[%s4505_s14 + $0x154] ss:$24 sps:$4 sm:$0xff]   ;;  %v4262_v12 = vld [vmem:[%s5260_s1 + $0x158] sm:$0xff]  }
  0x24   : > { %v4194_v19 = vld [vmem:[%s4505_s14 + $0x180] ss:$24 sps:$4 sm:$0xff]  }
  0x25   : > { %1660 = vmatpush1.bf16.msra.mxu0 %v4116_v13  ;;  %v4187_v13 = vld [vmem:[%s4505_s14 + $0x150] ss:$24 sps:$4 sm:$0xff]  }
  0x26   : > { %1885 = vmatpush1.bf16.msra.mxu1 %v4117_v14  ;;  %1661 = vmatprep.subr.bf16.mxu0 %v4384_v1  ;;  %v4269_v14 = vld [vmem:[%s5260_s1 + $0x150] sm:$0xff]   ;;  %v4195_v21 = vld [vmem:[%s4505_s14 + $0x188] ss:$24 sps:$4 sm:$0xff]  }
  0x27   : > { %1886 = vmatprep.subr.bf16.mxu1 %v4384_v1 }
  0x29   : > { %1662 = vmatpush1.bf16.msra.mxu0 %v4118_v15  ;;  %v4188_v15 = vld [vmem:[%s4505_s14 + $0x158] ss:$24 sps:$4 sm:$0xff]  }
  0x2a   : > { %1887 = vmatpush1.bf16.msra.mxu1 %v4119_v16  ;;  %1663 = vmatprep.subr.bf16.mxu0 %v4384_v1  ;;  %v4190_v16 = vld [vmem:[%s4505_s14 + $0x184] ss:$24 sps:$4 sm:$0xff]  }
  0x2b   : > { %1888 = vmatprep.subr.bf16.mxu1 %v4384_v1 }
  0x2d   : > { %1664 = vmatpush2.bf16.msra.mxu0 %v4120_v17  ;;  %v4192_v17 = vld [vmem:[%s4505_s14 + $0x18c] ss:$24 sps:$4 sm:$0xff]  }
  0x2e   : > { %1889 = vmatpush2.bf16.msra.mxu1 %v4121_v18  ;;  %1665 = vmatprep.subr.bf16.mxu0 %v4384_v1  ;;  %v4282_v18 = vld [vmem:[%s5260_s1 + $0x148] sm:$0xff]  }
  0x2f   : > { %1890 = vmatprep.subr.bf16.mxu1 %v4384_v1 }
  0x31   : > { %1666 = vmatpush2.bf16.msra.mxu0 %v4122_v20  ;;  %v4289_v20 = vld [vmem:[%s5260_s1 + $0x140] sm:$0xff]  }
  0x32   : > { %1891 = vmatpush2.bf16.msra.mxu1 %v4123_v22  ;;  %1667 = vmatprep.subr.bf16.mxu0 %v4384_v1  ;;  %v4196_v22 = vld [vmem:[%s4505_s14 + $0x1b4] ss:$24 sps:$4 sm:$0xff]  }
  0x33   : > { %1892 = vmatprep.subr.bf16.mxu1 %v4384_v1 }
  0x35   : > { %1668 = vmatpush2.bf16.msra.mxu0 %v4124_v23  ;;  %v2322_v23 = vld [vmem:[%s4685_s18] sm:$0xff] }
  0x36   : > { %1893 = vmatpush2.bf16.msra.mxu1 %v4125_v24  ;;  %1669 = vmatprep.subr.bf16.mxu0 %v4384_v1  ;;  %v4198_v24 = vld [vmem:[%s4505_s14 + $0x1bc] ss:$24 sps:$4 sm:$0xff]  }
  0x37   : > { %1894 = vmatprep.subr.bf16.mxu1 %v4384_v1  ;;  %2372 = vperm.xlu0 %4102, %v2322_v23   ;;  %v2353_v23 = vld [vmem:[%s4685_s18 + $0xf8] sm:$0xff] }
  0x39   : > { %1670 = vmatpush2.bf16.msra.mxu0 %v4126_v25  ;;  %v4200_v25 = vld [vmem:[%s4505_s14 + $0x1b0] ss:$24 sps:$4 sm:$0xff]  }
  0x3a   : > { %1895 = vmatpush2.bf16.msra.mxu1 %v4127_v26  ;;  %1671 = vmatprep.subr.bf16.mxu0 %v4384_v1  ;;  %v4201_v26 = vld [vmem:[%s4505_s14 + $0x1b8] ss:$24 sps:$4 sm:$0xff]  }
  0x3b   : > { %1896 = vmatprep.subr.bf16.mxu1 %v4384_v1 }
  0x3d   : > { %1672 = vmatpush2.bf16.msra.mxu0 %v4128_v27  ;;  %v4203_v27 = vld [vmem:[%s4505_s14 + $0x1e4] ss:$24 sps:$4 sm:$0xff]  }
  0x3e   : > { %1897 = vmatpush2.bf16.msra.mxu1 %v4129_v28  ;;  %1673 = vmatprep.subr.bf16.mxu0 %v4384_v1  ;;  %v2324_v28 = vld [vmem:[%s4685_s18 + $0x10] sm:$0xff] }
  0x3f   : > { %1898 = vmatprep.subr.bf16.mxu1 %v4384_v1  ;;  %2382 = vperm.xlu1 %4103, %v2324_v28   ;;  %v4255_v28 = vld [vmem:[%s4505_s14 + $0x338] ss:$24 sps:$4 sm:$0xff]  }
  0x41   : > { %1674 = vmatpush2.bf16.msra.mxu0 %v4130_v29  ;;  %v2323_v29 = vld [vmem:[%s4685_s18 + $0x8] sm:$0xff] }
  0x42   : > { %1899 = vmatpush2.bf16.msra.mxu1 %v4131_v30  ;;  %1675 = vmatprep.subr.bf16.mxu0 %v4384_v1  ;;  %v2325_v30 = vld [vmem:[%s4685_s18 + $0x18] sm:$0xff] }
  0x43   : > { %1900 = vmatprep.subr.bf16.mxu1 %v4384_v1  ;;  %2377 = vperm.xlu0 %4102, %v2323_v29   ;;  %v4256_v29 = vld [vmem:[%s4505_s14 + $0x364] ss:$24 sps:$4 sm:$0xff]  }
  0x44   : > { %2387 = vperm.xlu1 %4103, %v2325_v30   ;;  %v2357_v30 = vld [vmem:[%s4685_s18 + $0x118] sm:$0xff] }
  0x45   : > { %1676 = vmatpush2.bf16.msra.mxu0 %v4132_v31  ;;  %v2326_v31 = vld [vmem:[%s4685_s18 + $0x20] sm:$0xff] }
  0x46   : > { %1901 = vmatpush2.bf16.msra.mxu1 %v4133_v32  ;;  %1677 = vmatprep.subr.bf16.mxu0 %v4384_v1  ;;  %v2327_v32 = vld [vmem:[%s4685_s18 + $0x28] sm:$0xff] }
  0x47   : > { %1902 = vmatprep.subr.bf16.mxu1 %v4384_v1  ;;  %2392 = vperm.xlu0 %4102, %v2326_v31   ;;  %v2358_v31 = vld [vmem:[%s4685_s18 + $0x120] sm:$0xff] }
  0x48   : > { %2397 = vperm.xlu1 %4103, %v2327_v32   ;;  %v2359_v32 = vld [vmem:[%s4685_s18 + $0x128] sm:$0xff] }
  0x49   : > { %1678 = vmatpush2.bf16.msra.mxu0 %v4134_v33  ;;  %v2328_v33 = vld [vmem:[%s4685_s18 + $0x30] sm:$0xff] }
  0x4a   : > { %1903 = vmatpush2.bf16.msra.mxu1 %v4135_v34  ;;  %2097 = vmatprep.subr.bf16.mxu0 %v4384_v1  ;;  %v4207_v34 = vld [vmem:[%s4505_s14 + $0x1e0] ss:$24 sps:$4 sm:$0xff]  }
  0x4b   : > { %4060 = vmatprep.subr.bf16.mxu1 %v4384_v1  ;;  %2402 = vperm.xlu0 %4102, %v2328_v33   ;;  %v4260_v33 = vld [vmem:[%s4505_s14 + $0x360] ss:$24 sps:$4 sm:$0xff]  }
  0x4c   : > { %1680 = vmatmul.mubr.bf16.vlgmr.msra.gmra.mxu0 %v4136_v35  ;;  %v4208_v35 = vld [vmem:[%s4505_s14 + $0x1e8] ss:$24 sps:$4 sm:$0xff]  }
  0x4d   : > { %1905 = vmatmul.mubr.bf16.vlgmr.msra.gmra.mxu1 %v4139_v36  ;;  %2098 = vmatpush1.bf16.msra.mxu0 %v4142_v37  ;;  %v4210_v36 = vld [vmem:[%s4505_s14 + $0x214] ss:$24 sps:$4 sm:$0xff]  }
  0x4e   : > { %1687 = vmatprep.mubr.bf16.mxu0 %v4143_v38  ;;  %1912 = vmatprep.mubr.bf16.mxu1 %v4145_v39  ;;  %v2329_v38 = vld [vmem:[%s4685_s18 + $0x38] sm:$0xff]  ;;  %v2330_v39 = vld [vmem:[%s4685_s18 + $0x40] sm:$0xff] }
  0x4f   : > { %2099 = vmatprep.subr.bf16.mxu0 %v4384_v1  ;;  %4076 = vmatpush1.bf16.msra.mxu1 %v4142_v37  ;;  %v4212_v37 = vld [vmem:[%s4505_s14 + $0x21c] ss:$24 sps:$4 sm:$0xff]  }
  0x50   : > { %4061 = vmatprep.subr.bf16.mxu1 %v4384_v1  ;;  %2407 = vperm.xlu1 %4103, %v2329_v38   ;;  %v2361_v38 = vld [vmem:[%s4685_s18 + $0x138] sm:$0xff] }
  0x51   : > { %2100 = vmatpush1.bf16.msra.mxu0 %v4149_v40  ;;  %2412 = vperm.xlu0 %4102, %v2330_v39   ;;  %v4267_v39 = vld [vmem:[%s4505_s14 + $0x390] ss:$24 sps:$4 sm:$0xff]  }
  0x52   : > { %2101 = vmatprep.subr.bf16.mxu0 %v4384_v1 }
  0x53   : > { %4077 = vmatpush1.bf16.msra.mxu1 %v4149_v40  ;;  %v2331_v40 = vld [vmem:[%s4685_s18 + $0x48] sm:$0xff] }
  0x54   : > { %1688 = vmatmul.mubr.bf16.gmra.mxu0 %v4147_v41  ;;  %4062 = vmatprep.subr.bf16.mxu1 %v4384_v1  ;;  %v2332_v41 = vld [vmem:[%s4685_s18 + $0x50] sm:$0xff] }
  0x55   : > { %1913 = vmatmul.mubr.bf16.gmra.mxu1 %v4148_v42  ;;  %1695 = vmatprep.mubr.bf16.mxu0 %v4150_v43  ;;  %v4214_v42 = vld [vmem:[%s4505_s14 + $0x210] ss:$24 sps:$4 sm:$0xff]  }
  0x56   : > { %1920 = vmatprep.mubr.bf16.mxu1 %v4152_v44  ;;  %2102 = vmatpush1.bf16.msra.mxu0 %v4162_v45  ;;  %v4215_v43 = vld [vmem:[%s4505_s14 + $0x218] ss:$24 sps:$4 sm:$0xff]   ;;  %v4216_v44 = vld [vmem:[%s4505_s14 + $0x244] ss:$24 sps:$4 sm:$0xff]  }
  0x57   : > { %2103 = vmatprep.subr.bf16.mxu0 %v4384_v1  ;;  %4078 = vmatpush1.bf16.msra.mxu1 %v4162_v45  ;;  %v4218_v45 = vld [vmem:[%s4505_s14 + $0x24c] ss:$24 sps:$4 sm:$0xff]  }
  0x58   : > { %4063 = vmatprep.subr.bf16.mxu1 %v4384_v1  ;;  %2417 = vperm.xlu1 %4103, %v2331_v40   ;;  %v4268_v40 = vld [vmem:[%s4505_s14 + $0x398] ss:$24 sps:$4 sm:$0xff]  }
  0x59   : > { %2422 = vperm.xlu0 %4102, %v2332_v41   ;;  %v4270_v41 = vld [vmem:[%s4505_s14 + $0x3c4] ss:$24 sps:$4 sm:$0xff]  }
  0x5a   : > { %2104 = vmatpush1.bf16.msra.mxu0 %v4169_v46 }
  0x5b   : > { %2105 = vmatprep.subr.bf16.mxu0 %v4384_v1  ;;  %4079 = vmatpush1.bf16.msra.mxu1 %v4169_v46  ;;  %v2333_v46 = vld [vmem:[%s4685_s18 + $0x58] sm:$0xff] }
  0x5c   : > { %1696 = vmatmul.mubr.bf16.gmra.mxu0 %v4154_v47  ;;  %4064 = vmatprep.subr.bf16.mxu1 %v4384_v1  ;;  %v2334_v47 = vld [vmem:[%s4685_s18 + $0x60] sm:$0xff] }
  0x5d   : > { %1921 = vmatmul.mubr.bf16.gmra.mxu1 %v4155_v48  ;;  %1703 = vmatprep.mubr.bf16.mxu0 %v4156_v49  ;;  %v2335_v48 = vld [vmem:[%s4685_s18 + $0x68] sm:$0xff]  ;;  %v2336_v49 = vld [vmem:[%s4685_s18 + $0x70] sm:$0xff] }
  0x5e   : > { %1928 = vmatprep.mubr.bf16.mxu1 %v4158_v50  ;;  %2106 = vmatpush1.bf16.msra.mxu0 %v4182_v51  ;;  %v4220_v50 = vld [vmem:[%s4505_s14 + $0x240] ss:$24 sps:$4 sm:$0xff]  }
  0x5f   : > { %2107 = vmatprep.subr.bf16.mxu0 %v4384_v1  ;;  %4080 = vmatpush1.bf16.msra.mxu1 %v4182_v51  ;;  %v4221_v51 = vld [vmem:[%s4505_s14 + $0x248] ss:$24 sps:$4 sm:$0xff]  }
  0x60   : > { %4065 = vmatprep.subr.bf16.mxu1 %v4384_v1  ;;  %2427 = vperm.xlu1 %4103, %v2333_v46   ;;  %v4275_v46 = vld [vmem:[%s4505_s14 + $0x3c8] ss:$24 sps:$4 sm:$0xff]  }
  0x61   : > { %2432 = vperm.xlu0 %4102, %v2334_v47   ;;  %v4276_v47 = vld [vmem:[%s4505_s14 + $0x3f4] ss:$24 sps:$4 sm:$0xff]  }
  0x62   : > { %2108 = vmatpush1.bf16.msra.mxu0 %v4189_v52 }
  0x63   : > { %2109 = vmatprep.subr.bf16.mxu0 %v4384_v1  ;;  %4081 = vmatpush1.bf16.msra.mxu1 %v4189_v52  ;;  %v4223_v52 = vld [vmem:[%s4505_s14 + $0x274] ss:$24 sps:$4 sm:$0xff]  }
  0x64   : > { %1704 = vmatmul.mubr.bf16.gmra.mxu0 %v4160_v53  ;;  %4066 = vmatprep.subr.bf16.mxu1 %v4384_v1  ;;  %v4225_v53 = vld [vmem:[%s4505_s14 + $0x27c] ss:$24 sps:$4 sm:$0xff]  }
  0x65   : > { %1929 = vmatmul.mubr.bf16.gmra.mxu1 %v4161_v54  ;;  %1711 = vmatprep.mubr.bf16.mxu0 %v4163_v55  ;;  %v2337_v54 = vld [vmem:[%s4685_s18 + $0x78] sm:$0xff]  ;;  %v2338_v55 = vld [vmem:[%s4685_s18 + $0x80] sm:$0xff] }
  0x66   : > { %1936 = vmatprep.mubr.bf16.mxu1 %v4165_v56  ;;  %2110 = vmatpush1.bf16.msra.mxu0 %v4202_v57  ;;  %v2339_v56 = vld [vmem:[%s4685_s18 + $0x88] sm:$0xff] }
  0x67   : > { %2111 = vmatprep.subr.bf16.mxu0 %v4384_v1  ;;  %4082 = vmatpush1.bf16.msra.mxu1 %v4202_v57  ;;  %v2340_v57 = vld [vmem:[%s4685_s18 + $0x90] sm:$0xff] }
  0x68   : > { %4067 = vmatprep.subr.bf16.mxu1 %v4384_v1  ;;  %2437 = vperm.xlu1 %4103, %v2335_v48   ;;  %v4278_v48 = vld [vmem:[%s4505_s14 + $0x3fc] ss:$24 sps:$4 sm:$0xff]  }
  0x69   : > { %2442 = vperm.xlu0 %4102, %v2336_v49   ;;  %v2364_v49 = vld [vmem:[%s4685_s18 + $0x150] sm:$0xff] }
  0x6a   : > { %2112 = vmatpush1.bf16.msra.mxu0 %v4209_v58 }
  0x6b   : > { %2113 = vmatprep.subr.bf16.mxu0 %v4384_v1  ;;  %4083 = vmatpush1.bf16.msra.mxu1 %v4209_v58  ;;  %v4227_v58 = vld [vmem:[%s4505_s14 + $0x270] ss:$24 sps:$4 sm:$0xff]  }
  0x6c   : > { %1712 = vmatmul.mubr.bf16.gmra.mxu0 %v4167_v59  ;;  %4068 = vmatprep.subr.bf16.mxu1 %v4384_v1  ;;  %v4228_v59 = vld [vmem:[%s4505_s14 + $0x278] ss:$24 sps:$4 sm:$0xff]  }
  0x6d   : > { %1937 = vmatmul.mubr.bf16.gmra.mxu1 %v4168_v60  ;;  %1719 = vmatprep.mubr.bf16.mxu0 %v4170_v61  ;;  %v4230_v60 = vld [vmem:[%s4505_s14 + $0x2a4] ss:$24 sps:$4 sm:$0xff]  }
  0x6e   : > { %1944 = vmatprep.mubr.bf16.mxu1 %v4172_v62  ;;  %2114 = vmatpush2.bf16.msra.mxu0 %v4222_v63  ;;  %v4232_v61 = vld [vmem:[%s4505_s14 + $0x2ac] ss:$24 sps:$4 sm:$0xff]   ;;  %v2341_v62 = vld [vmem:[%s4685_s18 + $0x98] sm:$0xff] }
  0x6f   : > { %2115 = vmatprep.subr.bf16.mxu0 %v4384_v1  ;;  %4084 = vmatpush2.bf16.msra.mxu1 %v4222_v63  ;;  %v2342_v63 = vld [vmem:[%s4685_s18 + $0xa0] sm:$0xff] }
  0x70   : > { %4069 = vmatprep.subr.bf16.mxu1 %v4384_v1  ;;  %2447 = vperm.xlu1 %4103, %v2337_v54   ;;  %v4285_v54 = vld [vmem:[%s4505_s14 + $0x42c] ss:$24 sps:$4 sm:$0xff]  }
  0x71   : > { %2452 = vperm.xlu0 %4102, %v2338_v55   ;;  %v2366_v55 = vld [vmem:[%s4685_s18 + $0x160] sm:$0xff] }
  0x72   : > { %2116 = vmatpush2.bf16.msra.mxu0 %v4229_v0 }
  0x73   : > { %2117 = vmatprep.subr.bf16.mxu0 %v4384_v1  ;;  %4085 = vmatpush2.bf16.msra.mxu1 %v4229_v0  ;;  %v2343_v0 = vld [vmem:[%s4685_s18 + $0xa8] sm:$0xff] }
  0x74   : > { %1720 = vmatmul.mubr.bf16.gmra.mxu0 %v4174_v2  ;;  %4070 = vmatprep.subr.bf16.mxu1 %v4384_v1  ;;  %v2344_v2 = vld [vmem:[%s4685_s18 + $0xb0] sm:$0xff] }
  0x75   : > { %1945 = vmatmul.mubr.bf16.gmra.mxu1 %v4175_v3  ;;  %1727 = vmatprep.mubr.bf16.mxu0 %v4176_v4  ;;  %v4234_v3 = vld [vmem:[%s4505_s14 + $0x2a0] ss:$24 sps:$4 sm:$0xff]  }
  0x76   : > { %1952 = vmatprep.mubr.bf16.mxu1 %v4178_v5  ;;  %2118 = vmatpush2.bf16.msra.mxu0 %v4242_v6  ;;  %v4235_v4 = vld [vmem:[%s4505_s14 + $0x2a8] ss:$24 sps:$4 sm:$0xff]   ;;  %v4236_v5 = vld [vmem:[%s4505_s14 + $0x2d4] ss:$24 sps:$4 sm:$0xff]  }
  0x77   : > { %2119 = vmatprep.subr.bf16.mxu0 %v4384_v1  ;;  %4086 = vmatpush2.bf16.msra.mxu1 %v4242_v6  ;;  %v4238_v6 = vld [vmem:[%s4505_s14 + $0x2dc] ss:$24 sps:$4 sm:$0xff]  }
  0x78   : > { %4071 = vmatprep.subr.bf16.mxu1 %v4384_v1  ;;  %2457 = vperm.xlu1 %4103, %v2339_v56   ;;  %v2367_v56 = vld [vmem:[%s4685_s18 + $0x168] sm:$0xff] }
  0x79   : > { %2462 = vperm.xlu0 %4102, %v2340_v57   ;;  %v4287_v57 = vld [vmem:[%s4505_s14 + $0x420] ss:$24 sps:$4 sm:$0xff]  }
  0x7a   : > { %2120 = vmatpush2.bf16.msra.mxu0 %v4249_v8 }
  0x7b   : > { %2121 = vmatprep.subr.bf16.mxu0 %v4384_v1  ;;  %4087 = vmatpush2.bf16.msra.mxu1 %v4249_v8  ;;  %v2346_v8 = vld [vmem:[%s4685_s18 + $0xc0] sm:$0xff] }
  0x7c   : > { %1728 = vmatmul.mubr.bf16.gmra.mxu0 %v4180_v7  ;;  %4072 = vmatprep.subr.bf16.mxu1 %v4384_v1  ;;  %v2345_v7 = vld [vmem:[%s4685_s18 + $0xb8] sm:$0xff] }
  0x7d   : > { %1953 = vmatmul.mubr.bf16.gmra.mxu1 %v4181_v9  ;;  %1735 = vmatprep.mubr.bf16.mxu0 %v4183_v10  ;;  %v2347_v9 = vld [vmem:[%s4685_s18 + $0xc8] sm:$0xff]  ;;  %v2348_v10 = vld [vmem:[%s4685_s18 + $0xd0] sm:$0xff] }
  0x7e   : > { %1960 = vmatprep.mubr.bf16.mxu1 %v4185_v11  ;;  %2122 = vmatpush2.bf16.msra.mxu0 %v4262_v12  ;;  %v4240_v11 = vld [vmem:[%s4505_s14 + $0x2d0] ss:$24 sps:$4 sm:$0xff]  }
  0x7f   : > { %2123 = vmatprep.subr.bf16.mxu0 %v4384_v1  ;;  %4088 = vmatpush2.bf16.msra.mxu1 %v4262_v12  ;;  %v4241_v12 = vld [vmem:[%s4505_s14 + $0x2d8] ss:$24 sps:$4 sm:$0xff]  }
  0x80   : > { %4073 = vmatprep.subr.bf16.mxu1 %v4384_v1  ;;  %2467 = vperm.xlu1 %4103, %v2341_v62   ;;  %v2369_v62 = vld [vmem:[%s4685_s18 + $0x178] sm:$0xff] }
  0x81   : > { %2472 = vperm.xlu0 %4102, %v2342_v63   ;;  %v4294_v63 = vld [vmem:[%s4505_s14 + $0x450] ss:$24 sps:$4 sm:$0xff]  }
  0x82   : > { %2124 = vmatpush2.bf16.msra.mxu0 %v4269_v14 }
  0x83   : > { %2125 = vmatprep.subr.bf16.mxu0 %v4384_v1  ;;  %4089 = vmatpush2.bf16.msra.mxu1 %v4269_v14  ;;  %v4245_v14 = vld [vmem:[%s4505_s14 + $0x30c] ss:$24 sps:$4 sm:$0xff]  }
  0x84   : > { %1736 = vmatmul.mubr.bf16.gmra.mxu0 %v4187_v13  ;;  %4074 = vmatprep.subr.bf16.mxu1 %v4384_v1  ;;  %v4243_v13 = vld [vmem:[%s4505_s14 + $0x304] ss:$24 sps:$4 sm:$0xff]  }
  0x85   : > { %1961 = vmatmul.mubr.bf16.gmra.mxu1 %v4188_v15  ;;  %1743 = vmatprep.mubr.bf16.mxu0 %v4190_v16  ;;  %v2349_v15 = vld [vmem:[%s4685_s18 + $0xd8] sm:$0xff]  ;;  %v2350_v16 = vld [vmem:[%s4685_s18 + $0xe0] sm:$0xff] }
  0x86   : > { %1968 = vmatprep.mubr.bf16.mxu1 %v4192_v17  ;;  %2126 = vmatpush2.bf16.msra.mxu0 %v4282_v18  ;;  %v2351_v17 = vld [vmem:[%s4685_s18 + $0xe8] sm:$0xff] }
  0x87   : > { %2127 = vmatprep.subr.bf16.mxu0 %v4384_v1  ;;  %4090 = vmatpush2.bf16.msra.mxu1 %v4282_v18  ;;  %v2352_v18 = vld [vmem:[%s4685_s18 + $0xf0] sm:$0xff] }
  0x88   : > { %4075 = vmatprep.subr.bf16.mxu1 %v4384_v1  ;;  %v4205_v1 = vld [vmem:[%s4505_s14 + $0x1ec] ss:$24 sps:$4 sm:$0xff]   ;;  %2477 = vperm.xlu1 %4103, %v2343_v0   ;;  %v4295_v0 = vld [vmem:[%s4505_s14 + $0x458] ss:$24 sps:$4 sm:$0xff]  }
  0x89   : > { %2482 = vperm.xlu0 %4102, %v2344_v2   ;;  %v4298_v2 = vld [vmem:[%s4505_s14 + $0x14] ss:$24 sps:$4 sm:$0xff]  }
  0x8a   : > { %2128 = vmatpush2.bf16.msra.mxu0 %v4289_v20 }
  0x8b   : > { %4091 = vmatpush2.bf16.msra.mxu1 %v4289_v20  ;;  %v4248_v20 = vld [vmem:[%s4505_s14 + $0x308] ss:$24 sps:$4 sm:$0xff]  }
  0x8c   : > { %1744 = vmatmul.mubr.bf16.gmra.mxu0 %v4194_v19  ;;  %2487 = vperm.xlu1 %4103, %v2345_v7   ;;  %v4247_v19 = vld [vmem:[%s4505_s14 + $0x300] ss:$24 sps:$4 sm:$0xff]  }
  0x8d   : > { %1969 = vmatmul.mubr.bf16.gmra.mxu1 %v4195_v21  ;;  %1751 = vmatprep.mubr.bf16.mxu0 %v4196_v22  ;;  %v4250_v21 = vld [vmem:[%s4505_s14 + $0x334] ss:$24 sps:$4 sm:$0xff]  }
  0x8e   : > { %1976 = vmatprep.mubr.bf16.mxu1 %v4198_v24  ;;  %2492 = vperm.xlu0 %4102, %v2346_v8   ;;  %v4252_v22 = vld [vmem:[%s4505_s14 + $0x33c] ss:$24 sps:$4 sm:$0xff]   ;;  %v2354_v24 = vld [vmem:[%s4685_s18 + $0x100] sm:$0xff] }
  0x8f   : > { %v4302_v8 = vld [vmem:[%s4505_s14 + $0x44] ss:$24 sps:$4 sm:$0xff]  }
  0x90   : > { %2497 = vperm.xlu1 %4103, %v2347_v9   ;;  %v4304_v9 = vld [vmem:[%s4505_s14 + $0x3a4] ss:$24 sps:$4 sm:$0xff]  }
  0x92   : > { %2502 = vperm.xlu0 %4102, %v2348_v10  }
  0x94   : > { %1752 = vmatmul.mubr.bf16.gmra.mxu0 %v4200_v25  ;;  %2507 = vperm.xlu1 %4103, %v2349_v15   ;;  %v2355_v25 = vld [vmem:[%s4685_s18 + $0x108] sm:$0xff] }
  0x95   : > { %1977 = vmatmul.mubr.bf16.gmra.mxu1 %v4201_v26  ;;  %1759 = vmatprep.mubr.bf16.mxu0 %v4203_v27  ;;  %v2356_v26 = vld [vmem:[%s4685_s18 + $0x110] sm:$0xff]  ;;  %v3918_v15 = vld [vmem:[%s4806_s24 + $0x8] sm:$0xff]  }
  0x96   : > { %1984 = vmatprep.mubr.bf16.mxu1 %v4205_v1  ;;  %2512 = vperm.xlu0 %4102, %v2350_v16   ;;  %v4254_v27 = vld [vmem:[%s4505_s14 + $0x330] ss:$24 sps:$4 sm:$0xff]   ;;  %v4258_v1 = vld [vmem:[%s4505_s14 + $0x36c] ss:$24 sps:$4 sm:$0xff]  }
  0x98   : > { %2517 = vperm.xlu1 %4103, %v2351_v17  }
  0x9a   : > { %2522 = vperm.xlu0 %4102, %v2352_v18  }
  0x9c   : > { %1760 = vmatmul.mubr.bf16.gmra.mxu0 %v4207_v34  ;;  %2527 = vperm.xlu1 %4103, %v2353_v23   ;;  %v4261_v34 = vld [vmem:[%s4505_s14 + $0x368] ss:$24 sps:$4 sm:$0xff]  }
  0x9d   : > { %1985 = vmatmul.mubr.bf16.gmra.mxu1 %v4208_v35  ;;  %1767 = vmatprep.mubr.bf16.mxu0 %v4210_v36  ;;  %v4263_v35 = vld [vmem:[%s4505_s14 + $0x394] ss:$24 sps:$4 sm:$0xff]   ;;  %v4307_v23 = vld [vmem:[%s4505_s14 + $0x3a0] ss:$24 sps:$4 sm:$0xff]  }
  0x9e   : > { %1992 = vmatprep.mubr.bf16.mxu1 %v4212_v37  ;;  %2532 = vperm.xlu0 %4102, %v2354_v24   ;;  %v4265_v36 = vld [vmem:[%s4505_s14 + $0x39c] ss:$24 sps:$4 sm:$0xff]  }
  0x9f   : > { %v2360_v37 = vld [vmem:[%s4685_s18 + $0x130] sm:$0xff] }
  0xa0   : > { %2537 = vperm.xlu1 %4103, %v2355_v25   ;;  %v4308_v24 = vld [vmem:[%s4505_s14 + $0x74] ss:$24 sps:$4 sm:$0xff]  }
  0xa2   : > { %2542 = vperm.xlu0 %4102, %v2356_v26   ;;  %v4310_v26 = vld [vmem:[%s4505_s14 + $0x3d4] ss:$24 sps:$4 sm:$0xff]  }
  0xa4   : > { %1768 = vmatmul.mubr.bf16.gmra.mxu0 %v4214_v42  ;;  %2547 = vperm.xlu1 %4103, %v2357_v30   ;;  %v4272_v42 = vld [vmem:[%s4505_s14 + $0x3cc] ss:$24 sps:$4 sm:$0xff]  }
  0xa5   : > { %1993 = vmatmul.mubr.bf16.gmra.mxu1 %v4215_v43  ;;  %1775 = vmatprep.mubr.bf16.mxu0 %v4216_v44  ;;  %v2362_v43 = vld [vmem:[%s4685_s18 + $0x140] sm:$0xff]  ;;  %v2363_v44 = vld [vmem:[%s4685_s18 + $0x148] sm:$0xff] }
  0xa6   : > { %2000 = vmatprep.mubr.bf16.mxu1 %v4218_v45  ;;  %2552 = vperm.xlu0 %4102, %v2358_v31   ;;  %v4274_v45 = vld [vmem:[%s4505_s14 + $0x3c0] ss:$24 sps:$4 sm:$0xff]   ;;  %v3709_v31 = vunpack.c.h.bf16 %v3918_v15 }
  0xa8   : > { %2557 = vperm.xlu1 %4103, %v2359_v32  }
  0xaa   : > { %2562 = vperm.xlu0 %4102, %v2360_v37   ;;  %v4312_v37 = vld [vmem:[%s4505_s14 + $0x70] ss:$24 sps:$4 sm:$0xff]  }
  0xac   : > { %1776 = vmatmul.mubr.bf16.gmra.mxu0 %v4220_v50  ;;  %2567 = vperm.xlu1 %4103, %v2361_v38   ;;  %v2365_v50 = vld [vmem:[%s4685_s18 + $0x158] sm:$0xff] }
  0xad   : > { %2001 = vmatmul.mubr.bf16.gmra.mxu1 %v4221_v51  ;;  %1783 = vmatprep.mubr.bf16.mxu0 %v4223_v52  ;;  %v4280_v51 = vld [vmem:[%s4505_s14 + $0x3f0] ss:$24 sps:$4 sm:$0xff]  }
  0xae   : > { %2008 = vmatprep.mubr.bf16.mxu1 %v4225_v53  ;;  %2572 = vperm.xlu0 %4102, %v2362_v43   ;;  %v4281_v52 = vld [vmem:[%s4505_s14 + $0x3f8] ss:$24 sps:$4 sm:$0xff]   ;;  %v4283_v53 = vld [vmem:[%s4505_s14 + $0x424] ss:$24 sps:$4 sm:$0xff]  }
  0xb0   : > { %2577 = vperm.xlu1 %4103, %v2363_v44   ;;  %v4316_v44 = vld [vmem:[%s4505_s14 + $0x404] ss:$24 sps:$4 sm:$0xff]  }
  0xb2   : > { %2582 = vperm.xlu0 %4102, %v2364_v49  }
  0xb4   : > { %1784 = vmatmul.mubr.bf16.gmra.mxu0 %v4227_v58  ;;  %2587 = vperm.xlu1 %4103, %v2365_v50   ;;  %v4288_v58 = vld [vmem:[%s4505_s14 + $0x428] ss:$24 sps:$4 sm:$0xff]  }
  0xb5   : > { %2009 = vmatmul.mubr.bf16.gmra.mxu1 %v4228_v59  ;;  %1791 = vmatprep.mubr.bf16.mxu0 %v4230_v60  ;;  %v4290_v59 = vld [vmem:[%s4505_s14 + $0x454] ss:$24 sps:$4 sm:$0xff]  }
  0xb6   : > { %2016 = vmatprep.mubr.bf16.mxu1 %v4232_v61  ;;  %2592 = vperm.xlu0 %4102, %v2366_v55   ;;  %v4292_v60 = vld [vmem:[%s4505_s14 + $0x45c] ss:$24 sps:$4 sm:$0xff]  }
  0xb7   : > { %v2368_v61 = vld [vmem:[%s4685_s18 + $0x170] sm:$0xff] }
  0xb8   : > { %2597 = vperm.xlu1 %4103, %v2367_v56   ;;  %v4318_v56 = vld [vmem:[%s4505_s14 + $0xa0] ss:$24 sps:$4 sm:$0xff]  }
  0xba   : > { %2602 = vperm.xlu0 %4102, %v2368_v61   ;;  %v4322_v61 = vld [vmem:[%s4505_s14 + $0xd4] ss:$24 sps:$4 sm:$0xff]  }
  0xbc   : > { %1792 = vmatmul.mubr.bf16.gmra.mxu0 %v4234_v3  ;;  %2607 = vperm.xlu1 %4103, %v2369_v62   ;;  %v4301_v3 = vld [vmem:[%s4505_s14 + $0x374] ss:$24 sps:$4 sm:$0xff]  }
  0xbd   : > { %2017 = vmatmul.mubr.bf16.gmra.mxu1 %v4235_v4  ;;  %1799 = vmatprep.mubr.bf16.mxu0 %v4236_v5  ;;  %v3703_v4 = vld [vmem:[%s4806_s24] sm:$0xff]   ;;  %v4296_v5 = vld [vmem:[%s4505_s14 + $0x10] ss:$24 sps:$4 sm:$0xff]  }
  0xbe   : > { %2024 = vmatprep.mubr.bf16.mxu1 %v4238_v6  ;;  %v4299_v6 = vld [vmem:[%s4505_s14 + $0x370] ss:$24 sps:$4 sm:$0xff]   ;;  %v3704_v7 = vunpack.c.l.bf16 %v3703_v4 }
  0xc4   : > { %1800 = vmatmul.mubr.bf16.gmra.mxu0 %v4240_v11 }
  0xc5   : > { %2025 = vmatmul.mubr.bf16.gmra.mxu1 %v4241_v12  ;;  %1807 = vmatprep.mubr.bf16.mxu0 %v4243_v13  ;;  %v3705_v13 = vunpack.c.h.bf16 %v3703_v4 }
  0xc6   : > { %2032 = vmatprep.mubr.bf16.mxu1 %v4245_v14 }
  0xcc   : > { %1808 = vmatmul.mubr.bf16.gmra.mxu0 %v4247_v19  ;;  %v4306_v19 = vld [vmem:[%s4505_s14 + $0x40] ss:$24 sps:$4 sm:$0xff]  }
  0xcd   : > { %2033 = vmatmul.mubr.bf16.gmra.mxu1 %v4248_v20  ;;  %1815 = vmatprep.mubr.bf16.mxu0 %v4250_v21 }
  0xce   : > { %2040 = vmatprep.mubr.bf16.mxu1 %v4252_v22  ;;  %v3708_v22 = vunpack.c.l.bf16 %v3918_v15  ;;  %v4323_v15 = vld [vmem:[%s4505_s14 + $0x430] ss:$24 sps:$4 sm:$0xff]  }
  0xd4   : > { %1816 = vmatmul.mubr.bf16.gmra.mxu0 %v4254_v27 }
  0xd5   : > { %2041 = vmatmul.mubr.bf16.gmra.mxu1 %v4255_v28  ;;  %1823 = vmatprep.mubr.bf16.mxu0 %v4256_v29 }
  0xd6   : > { %2048 = vmatprep.mubr.bf16.mxu1 %v4258_v1 }
  0xdc   : > { %1824 = vmatmul.mubr.bf16.gmra.mxu0 %v4260_v33  ;;  %v3919_v33 = vld [vmem:[%s4806_s24 + $0x10] sm:$0xff]  }
  0xdd   : > { %2049 = vmatmul.mubr.bf16.gmra.mxu1 %v4261_v34  ;;  %1831 = vmatprep.mubr.bf16.mxu0 %v4263_v35  ;;  %v3713_v50 = vunpack.c.h.bf16 %v3919_v33 }
  0xde   : > { %2056 = vmatprep.mubr.bf16.mxu1 %v4265_v36 }
  0xe4   : > { %1832 = vmatmul.mubr.bf16.gmra.mxu0 %v4267_v39 }
  0xe5   : > { %2057 = vmatmul.mubr.bf16.gmra.mxu1 %v4268_v40  ;;  %1839 = vmatprep.mubr.bf16.mxu0 %v4270_v41  ;;  %v3712_v40 = vunpack.c.l.bf16 %v3919_v33  ;;  %v4313_v41 = vld [vmem:[%s4505_s14 + $0x3d0] ss:$24 sps:$4 sm:$0xff]  }
  0xe6   : > { %2064 = vmatprep.mubr.bf16.mxu1 %v4272_v42  ;;  %v4314_v42 = vld [vmem:[%s4505_s14 + $0xa4] ss:$24 sps:$4 sm:$0xff]  }
  0xec   : > { %1840 = vmatmul.mubr.bf16.gmra.mxu0 %v4274_v45 }
  0xed   : > { %2065 = vmatmul.mubr.bf16.gmra.mxu1 %v4275_v46  ;;  %1847 = vmatprep.mubr.bf16.mxu0 %v4276_v47 }
  0xee   : > { %2072 = vmatprep.mubr.bf16.mxu1 %v4278_v48 }
  0xf4   : > { %1848 = vmatmul.mubr.bf16.gmra.mxu0 %v4280_v51 }
  0xf5   : > { %2073 = vmatmul.mubr.bf16.gmra.mxu1 %v4281_v52  ;;  %1855 = vmatprep.mubr.bf16.mxu0 %v4283_v53  ;;  %v3920_v52 = vld [vmem:[%s4806_s24 + $0x18] sm:$0xff]  }
  0xf6   : > { %2080 = vmatprep.mubr.bf16.mxu1 %v4285_v54 }
  0xfc   : > { %1856 = vmatmul.mubr.bf16.gmra.mxu0 %v4287_v57 }
  0xfd   : > { %2081 = vmatmul.mubr.bf16.gmra.mxu1 %v4288_v58  ;;  %1863 = vmatprep.mubr.bf16.mxu0 %v4290_v59  ;;  %v3716_v59 = vunpack.c.l.bf16 %v3920_v52 }
  0xfe   : > { %2088 = vmatprep.mubr.bf16.mxu1 %v4292_v60  ;;  %v4319_v60 = vld [vmem:[%s4505_s14 + $0x400] ss:$24 sps:$4 sm:$0xff]  }
 0x104   : > { %1864 = vmatmul.mubr.bf16.gmra.mxu0 %v4294_v63  ;;  %v4325_v63 = vld [vmem:[%s4505_s14 + $0x434] ss:$24 sps:$4 sm:$0xff]  }
 0x105   : > { %2089 = vmatmul.mubr.bf16.gmra.mxu1 %v4295_v0  ;;  %2129 = vmatprep.mubr.bf16.mxu0 %v4298_v2 }
 0x106   : > { %2273 = vmatprep.mubr.bf16.mxu1 %v4301_v3 }
 0x10c   : > { %v1681_v10 = vpop.f32.mrf.mxu0  ;;  %2130 = vmatmul.mubr.bf16.vlgmr.msra.gmra.mxu0 %v4296_v5 }
 0x10d   : > { %v1682_v11 = vadd.f32 %v3704_v7, %v1681_v10  ;;  %v1906_v12 = vpop.f32.mrf.mxu1  ;;  %2274 = vmatmul.mubr.bf16.vlgmr.msra.gmra.mxu1 %v4299_v6  ;;  %2137 = vmatprep.mubr.bf16.mxu0 %v4302_v8  ;;  %v3717_v6 = vunpack.c.h.bf16 %v3920_v52  ;;  %v3921_v8 = vld [vmem:[%s4806_s24 + $0x20] sm:$0xff]   ;;  %v4332_v52 = vld [vmem:[%s4505_s14 + $0x130] ss:$24 sps:$4 sm:$0xff]  }
 0x10e   : > { %v1683_v14 = vpop.f32.mrf.mxu0  ;;  %2281 = vmatprep.mubr.bf16.mxu1 %v4304_v9 }
 0x10f   : > { %v4814_v16 = vadd.f32 %v1906_v12, %v1682_v11  ;;  %v1908_v17 = vpop.f32.mrf.mxu1  ;;  %v4320_v12 = vld [vmem:[%s4505_s14 + $0xd0] ss:$24 sps:$4 sm:$0xff]  }
 0x110   : > { %v1684_v18 = vpop.f32.mrf.mxu0  ;;  %v3720_v17 = vunpack.c.l.bf16 %v3921_v8 }
 0x111   : > { %v1685_v20 = vadd.f32 %v3705_v13, %v1684_v18  ;;  %v1909_v21 = vpop.f32.mrf.mxu1  ;;  %v4328_v18 = vld [vmem:[%s4505_s14 + $0x104] ss:$24 sps:$4 sm:$0xff]  }
 0x112   : > { %v1686_v25 = vpop.f32.mrf.mxu0 }
 0x113   : > { %v4820_v27 = vadd.f32 %v1909_v21, %v1685_v20  ;;  %v1911_v28 = vpop.f32.mrf.mxu1  ;;  %v4331_v20 = vld [vmem:[%s4505_s14 + $0x464] ss:$24 sps:$4 sm:$0xff]  }
 0x114   : > { %v1689_v29 = vpop.f32.mrf.mxu0  ;;  %2138 = vmatmul.mubr.bf16.gmra.mxu0 %v4306_v19 }
 0x115   : > { %v1690_v1 = vadd.f32 %v3708_v22, %v1689_v29  ;;  %v1914_v30 = vpop.f32.mrf.mxu1  ;;  %2282 = vmatmul.mubr.bf16.gmra.mxu1 %v4307_v23  ;;  %2145 = vmatprep.mubr.bf16.mxu0 %v4308_v24  ;;  %v3922_v29 = vld [vmem:[%s4806_s24 + $0x28] sm:$0xff]  }
 0x116   : > { %v1691_v32 = vpop.f32.mrf.mxu0  ;;  %2289 = vmatprep.mubr.bf16.mxu1 %v4310_v26  ;;  %v3721_v26 = vunpack.c.h.bf16 %v3921_v8  ;;  %v4335_v8 = vld [vmem:[%s4505_s14 + $0x160] ss:$24 sps:$4 sm:$0xff]  }
 0x117   : > { %v4823_v34 = vadd.f32 %v1914_v30, %v1690_v1  ;;  %v1916_v35 = vpop.f32.mrf.mxu1  ;;  %v4326_v32 = vld [vmem:[%s4505_s14 + $0x100] ss:$24 sps:$4 sm:$0xff]  }
 0x118   : > { %v1692_v36 = vpop.f32.mrf.mxu0 }
 0x119   : > { %v1693_v38 = vadd.f32 %v3709_v31, %v1692_v36  ;;  %v1917_v39 = vpop.f32.mrf.mxu1  ;;  %v4329_v36 = vld [vmem:[%s4505_s14 + $0x460] ss:$24 sps:$4 sm:$0xff]  }
 0x11a   : > { %v1694_v43 = vpop.f32.mrf.mxu0 }
 0x11b   : > { %v4829_v45 = vadd.f32 %v1917_v39, %v1693_v38  ;;  %v1919_v46 = vpop.f32.mrf.mxu1  ;;  %v4334_v38 = vld [vmem:[%s4505_s14 + $0x134] ss:$24 sps:$4 sm:$0xff]  }
 0x11c   : > { %v1697_v47 = vpop.f32.mrf.mxu0  ;;  %2146 = vmatmul.mubr.bf16.gmra.mxu0 %v4312_v37  ;;  %v3724_v37 = vunpack.c.l.bf16 %v3922_v29  ;;  %v3725_v46 = vunpack.c.h.bf16 %v3922_v29 }
 0x11d   : > { %v1698_v48 = vadd.f32 %v3712_v40, %v1697_v47  ;;  %v1922_v49 = vpop.f32.mrf.mxu1  ;;  %2290 = vmatmul.mubr.bf16.gmra.mxu1 %v4313_v41  ;;  %2153 = vmatprep.mubr.bf16.mxu0 %v4314_v42 }
 0x11e   : > { %v1699_v51 = vpop.f32.mrf.mxu0  ;;  %2297 = vmatprep.mubr.bf16.mxu1 %v4316_v44 }
 0x11f   : > { %v4832_v53 = vadd.f32 %v1922_v49, %v1698_v48  ;;  %v1924_v54 = vpop.f32.mrf.mxu1  ;;  %v3923_v48 = vld [vmem:[%s4806_s24 + $0x30] sm:$0xff]  }
 0x120   : > { %v1700_v55 = vpop.f32.mrf.mxu0 }
 0x121   : > { %v1701_v57 = vadd.f32 %v3713_v50, %v1700_v55  ;;  %v1925_v58 = vpop.f32.mrf.mxu1 }
 0x122   : > { %v1702_v62 = vpop.f32.mrf.mxu0 }
 0x123   : > { %v4838_v0 = vadd.f32 %v1925_v58, %v1701_v57  ;;  %v1927_v2 = vpop.f32.mrf.mxu1  ;;  %v4337_v57 = vld [vmem:[%s4505_s14 + $0x164] ss:$24 sps:$4 sm:$0xff]  }
 0x124   : > { %v1705_v3 = vpop.f32.mrf.mxu0  ;;  %2154 = vmatmul.mubr.bf16.gmra.mxu0 %v4318_v56  ;;  %v3728_v56 = vunpack.c.l.bf16 %v3923_v48  ;;  %v3729_v2 = vunpack.c.h.bf16 %v3923_v48  ;;  %v3926_v48 = vld [vmem:[%s4806_s24 + $0x48] sm:$0xff]  }
 0x125   : > { %v1706_v4 = vadd.f32 %v3716_v59, %v1705_v3  ;;  %v1930_v5 = vpop.f32.mrf.mxu1  ;;  %2298 = vmatmul.mubr.bf16.gmra.mxu1 %v4319_v60  ;;  %2161 = vmatprep.mubr.bf16.mxu0 %v4322_v61 }
 0x126   : > { %v1707_v7 = vpop.f32.mrf.mxu0  ;;  %2305 = vmatprep.mubr.bf16.mxu1 %v4325_v63 }
 0x127   : > { %v4841_v9 = vadd.f32 %v1930_v5, %v1706_v4  ;;  %v1932_v10 = vpop.f32.mrf.mxu1  ;;  %v3924_v4 = vld [vmem:[%s4806_s24 + $0x38] sm:$0xff]  }
 0x128   : > { %v1708_v11 = vpop.f32.mrf.mxu0 }
 0x129   : > { %v1709_v13 = vadd.f32 %v3717_v6, %v1708_v11  ;;  %v1933_v14 = vpop.f32.mrf.mxu1 }
 0x12a   : > { %v1710_v19 = vpop.f32.mrf.mxu0 }
 0x12b   : > { %v4847_v21 = vadd.f32 %v1933_v14, %v1709_v13  ;;  %v1935_v22 = vpop.f32.mrf.mxu1  ;;  %v4340_v13 = vld [vmem:[%s4505_s14 + $0x194] ss:$24 sps:$4 sm:$0xff]  }
 0x12c   : > { %v1713_v23 = vpop.f32.mrf.mxu0  ;;  %2162 = vmatmul.mubr.bf16.gmra.mxu0 %v4320_v12  ;;  %v3732_v12 = vunpack.c.l.bf16 %v3924_v4 }
 0x12d   : > { %v1714_v24 = vadd.f32 %v3720_v17, %v1713_v23  ;;  %v1938_v25 = vpop.f32.mrf.mxu1  ;;  %2306 = vmatmul.mubr.bf16.gmra.mxu1 %v4323_v15  ;;  %2169 = vmatprep.mubr.bf16.mxu0 %v4328_v18  ;;  %v4368_v15 = vld [vmem:[%s5264_s5 + $0x38] sm:$0xff]   ;;  %v3733_v23 = vunpack.c.h.bf16 %v3924_v4 }
 0x12e   : > { %v1715_v28 = vpop.f32.mrf.mxu0  ;;  %2313 = vmatprep.mubr.bf16.mxu1 %v4331_v20  ;;  %3996 = vmatprep.subr.bf16.mxu1 %v4368_v15 }
 0x12f   : > { %v4850_v1 = vadd.f32 %v1938_v25, %v1714_v24  ;;  %v1940_v30 = vpop.f32.mrf.mxu1  ;;  %3997 = vmatpush3.bf16.msra.mxu1 %v4368_v15  ;;  %v3925_v25 = vld [vmem:[%s4806_s24 + $0x40] sm:$0xff]   ;;  %v4344_v15 = vld [vmem:[%s4505_s14 + $0x1f0] ss:$24 sps:$4 sm:$0xff]  }
 0x130   : > { %v1716_v31 = vpop.f32.mrf.mxu0 }
 0x131   : > { %v1717_v33 = vadd.f32 %v3721_v26, %v1716_v31  ;;  %v1941_v35 = vpop.f32.mrf.mxu1  ;;  %v4369_v26 = vld [vmem:[%s5264_s5 + $0x30] sm:$0xff]  }
 0x132   : > { %v1718_v39 = vpop.f32.mrf.mxu0  ;;  %v4338_v31 = vld [vmem:[%s4505_s14 + $0x190] ss:$24 sps:$4 sm:$0xff]   ;;  %3998 = vmatprep.subr.bf16.mxu1 %v4369_v26 }
 0x133   : > { %v4855_v40 = vadd.f32 %v1941_v35, %v1717_v33  ;;  %v1943_v41 = vpop.f32.mrf.mxu1  ;;  %v3736_v35 = vunpack.c.l.bf16 %v3925_v25  ;;  %3999 = vmatpush3.bf16.msra.mxu1 %v4369_v26 }
 0x134   : > { %v1721_v42 = vpop.f32.mrf.mxu0  ;;  %2170 = vmatmul.mubr.bf16.gmra.mxu0 %v4326_v32 }
 0x135   : > { %v1722_v43 = vadd.f32 %v3724_v37, %v1721_v42  ;;  %v1946_v44 = vpop.f32.mrf.mxu1  ;;  %2314 = vmatmul.mubr.bf16.gmra.mxu1 %v4329_v36  ;;  %2177 = vmatprep.mubr.bf16.mxu0 %v4334_v38  ;;  %v4343_v36 = vld [vmem:[%s4505_s14 + $0x1c4] ss:$24 sps:$4 sm:$0xff]   ;;  %v4370_v38 = vld [vmem:[%s5264_s5 + $0x28] sm:$0xff]  }
 0x136   : > { %v1723_v47 = vpop.f32.mrf.mxu0  ;;  %4000 = vmatprep.subr.bf16.mxu1 %v4370_v38 }
 0x137   : > { %v4858_v49 = vadd.f32 %v1946_v44, %v1722_v43  ;;  %v1948_v50 = vpop.f32.mrf.mxu1  ;;  %4001 = vmatpush3.bf16.msra.mxu1 %v4370_v38 }
 0x138   : > { %v1724_v51 = vpop.f32.mrf.mxu0  ;;  %v4371_v50 = vld [vmem:[%s5264_s5 + $0x20] sm:$0xff]  }
 0x139   : > { %v1725_v54 = vadd.f32 %v3725_v46, %v1724_v51  ;;  %v1949_v55 = vpop.f32.mrf.mxu1  ;;  %v3737_v46 = vunpack.c.h.bf16 %v3925_v25  ;;  %4002 = vmatprep.subr.bf16.mxu1 %v4371_v50 }
 0x13a   : > { %v1726_v58 = vpop.f32.mrf.mxu0 }
 0x13b   : > { %v4862_v59 = vadd.f32 %v1949_v55, %v1725_v54  ;;  %v1951_v60 = vpop.f32.mrf.mxu1  ;;  %v4341_v55 = vld [vmem:[%s4505_s14 + $0x1c0] ss:$24 sps:$4 sm:$0xff]   ;;  %v3740_v58 = vunpack.c.l.bf16 %v3926_v48  ;;  %4003 = vmatpush3.bf16.msra.mxu1 %v4371_v50 }
 0x13c   : > { %v1729_v61 = vpop.f32.mrf.mxu0  ;;  %2178 = vmatmul.mubr.bf16.gmra.mxu0 %v4332_v52  ;;  %v4346_v60 = vld [vmem:[%s4505_s14 + $0x1f4] ss:$24 sps:$4 sm:$0xff]  }
 0x13d   : > { %v1730_v62 = vadd.f32 %v3728_v56, %v1729_v61  ;;  %v1954_v63 = vpop.f32.mrf.mxu1  ;;  %2185 = vmatprep.mubr.bf16.mxu0 %v4337_v57 }
 0x13e   : > { %v1731_v3 = vpop.f32.mrf.mxu0 }
 0x13f   : > { %v4865_v5 = vadd.f32 %v1954_v63, %v1730_v62  ;;  %v1956_v6 = vpop.f32.mrf.mxu1  ;;  %v4372_v62 = vld [vmem:[%s5264_s5 + $0x18] sm:$0xff]  }
 0x140   : > { %v1732_v7 = vpop.f32.mrf.mxu0  ;;  %4004 = vmatprep.subr.bf16.mxu1 %v4372_v62 }
 0x141   : > { %v1733_v10 = vadd.f32 %v3729_v2, %v1732_v7  ;;  %v1957_v11 = vpop.f32.mrf.mxu1  ;;  %v3741_v7 = vunpack.c.h.bf16 %v3926_v48  ;;  %4005 = vmatpush3.bf16.msra.mxu1 %v4372_v62  ;;  %v4921_v48 = vpop.permute.xlu0 %2372  ;;  %v3929_v62 = vld [vmem:[%s4806_s24 + $0x60] sm:$0xff]  }
 0x142   : > { %v1734_v14 = vpop.f32.mrf.mxu0 }
 0x143   : > { %v4872_v17 = vadd.f32 %v1957_v11, %v1733_v10  ;;  %v1959_v18 = vpop.f32.mrf.mxu1  ;;  %v3927_v10 = vld [vmem:[%s4806_s24 + $0x50] sm:$0xff]  }
 0x144   : > { %v1737_v19 = vpop.f32.mrf.mxu0  ;;  %2186 = vmatmul.mubr.bf16.gmra.mxu0 %v4335_v8  ;;  %v4373_v11 = vld [vmem:[%s5264_s5 + $0x10] sm:$0xff]  }
 0x145   : > { %v1738_v20 = vadd.f32 %v3732_v12, %v1737_v19  ;;  %v1962_v22 = vpop.f32.mrf.mxu1  ;;  %2193 = vmatprep.mubr.bf16.mxu0 %v4340_v13  ;;  %4006 = vmatprep.subr.bf16.mxu1 %v4373_v11 }
 0x146   : > { %v1739_v24 = vpop.f32.mrf.mxu0  ;;  %4007 = vmatpush3.bf16.msra.mxu1 %v4373_v11  ;;  %v3752_v11 = vunpack.c.l.bf16 %v3929_v62 }
 0x147   : > { %v4878_v28 = vadd.f32 %v1962_v22, %v1738_v20  ;;  %v1964_v29 = vpop.f32.mrf.mxu1  ;;  %v3744_v20 = vunpack.c.l.bf16 %v3927_v10  ;;  %v4349_v22 = vld [vmem:[%s4505_s14 + $0x224] ss:$24 sps:$4 sm:$0xff]   ;;  %v4374_v24 = vld [vmem:[%s5264_s5 + $0x8] sm:$0xff]  }
 0x148   : > { %v1740_v30 = vpop.f32.mrf.mxu0  ;;  %4008 = vmatprep.subr.bf16.mxu1 %v4374_v24 }
 0x149   : > { %v1741_v32 = vadd.f32 %v3733_v23, %v1740_v30  ;;  %v1965_v33 = vpop.f32.mrf.mxu1 }
 0x14a   : > { %v1742_v37 = vpop.f32.mrf.mxu0  ;;  %4009 = vmatpush3.bf16.msra.mxu1 %v4374_v24  ;;  %v3753_v24 = vunpack.c.h.bf16 %v3929_v62 }
 0x14b   : > { %v4885_v39 = vadd.f32 %v1965_v33, %v1741_v32  ;;  %v1967_v41 = vpop.f32.mrf.mxu1  ;;  %v3745_v32 = vunpack.c.h.bf16 %v3927_v10 }
 0x14c   : > { %v1745_v42 = vpop.f32.mrf.mxu0  ;;  %2194 = vmatmul.mubr.bf16.gmra.mxu0 %v4338_v31 }
 0x14d   : > { %v1746_v43 = vadd.f32 %v3736_v35, %v1745_v42  ;;  %v1970_v44 = vpop.f32.mrf.mxu1  ;;  %2201 = vmatprep.mubr.bf16.mxu0 %v4343_v36  ;;  %v3928_v35 = vld [vmem:[%s4806_s24 + $0x58] sm:$0xff]   ;;  %v4375_v36 = vld [vmem:[%s5264_s5] sm:$0xff]  }
 0x14e   : > { %v1747_v47 = vpop.f32.mrf.mxu0  ;;  %v4347_v42 = vld [vmem:[%s4505_s14 + $0x220] ss:$24 sps:$4 sm:$0xff]   ;;  %4010 = vmatprep.subr.bf16.mxu1 %v4375_v36 }
 0x14f   : > { %v4891_v51 = vadd.f32 %v1970_v44, %v1746_v43  ;;  %v1972_v52 = vpop.f32.mrf.mxu1  ;;  %v4352_v47 = vld [vmem:[%s4505_s14 + $0x254] ss:$24 sps:$4 sm:$0xff]   ;;  %4011 = vmatpush3.bf16.msra.mxu1 %v4375_v36 }
 0x150   : > { %v1748_v54 = vpop.f32.mrf.mxu0 }
 0x151   : > { %v1749_v56 = vadd.f32 %v3737_v46, %v1748_v54  ;;  %v1973_v57 = vpop.f32.mrf.mxu1  ;;  %v3748_v46 = vunpack.c.l.bf16 %v3928_v35 }
 0x152   : > { %v1750_v61 = vpop.f32.mrf.mxu0 }
 0x153   : > { %v4898_v63 = vadd.f32 %v1973_v57, %v1749_v56  ;;  %v1975_v2 = vpop.f32.mrf.mxu1 }
 0x154   : > { %v1753_v3 = vpop.f32.mrf.mxu0  ;;  %2202 = vmatmul.mubr.bf16.gmra.mxu0 %v4341_v55 }
 0x155   : > { %5266 = vst [vmem:[#allocation2_spill] sm:$0xff] %v4898_v63  ;;  %v1754_v4 = vadd.f32 %v3740_v58, %v1753_v3  ;;  %v1978_v6 = vpop.f32.mrf.mxu1  ;;  %2209 = vmatprep.mubr.bf16.mxu0 %v4346_v60  ;;  %v3749_v58 = vunpack.c.h.bf16 %v3928_v35  ;;  %v4925_v60 = vpop.permute.xlu1 %2382  ;;  %v4353_v35 = vld [vmem:[%s4505_s14 + $0x280] ss:$24 sps:$4 sm:$0xff]  }
 0x156   : > { %v1755_v8 = vpop.f32.mrf.mxu0 }
 0x157   : > { %v4904_v12 = vadd.f32 %v1978_v6, %v1754_v4  ;;  %v1980_v13 = vpop.f32.mrf.mxu1  ;;  %v4930_v4 = vpop.permute.xlu0 %2377 }
 0x158   : > { %v1756_v14 = vpop.f32.mrf.mxu0  ;;  %v4355_v13 = vld [vmem:[%s4505_s14 + $0x284] ss:$24 sps:$4 sm:$0xff]  }
 0x159   : > { %5267 = vst [vmem:[#allocation3_spill] sm:$0xff] %v4904_v12  ;;  %v1757_v18 = vadd.f32 %v3741_v7, %v1756_v14  ;;  %v1981_v19 = vpop.f32.mrf.mxu1  ;;  %v4350_v7 = vld [vmem:[%s4505_s14 + $0x250] ss:$24 sps:$4 sm:$0xff]  }
 0x15a   : > { %v1758_v23 = vpop.f32.mrf.mxu0 }
 0x15b   : > { %v4911_v25 = vadd.f32 %v1981_v19, %v1757_v18  ;;  %v1983_v26 = vpop.f32.mrf.mxu1  ;;  %v4936_v19 = vpop.permute.xlu1 %2387 }
 0x15c   : > { %v1761_v29 = vpop.f32.mrf.mxu0  ;;  %2210 = vmatmul.mubr.bf16.gmra.mxu0 %v4344_v15  ;;  %v4938_v26 = vpop.permute.xlu0 %2392 }
 0x15d   : > { %5268 = vst [vmem:[#allocation4_spill] sm:$0xff] %v4911_v25  ;;  %v1762_v30 = vadd.f32 %v3744_v20, %v1761_v29  ;;  %v1986_v31 = vpop.f32.mrf.mxu1  ;;  %2217 = vmatprep.mubr.bf16.mxu0 %v4349_v22 }
 0x15e   : > { %v1763_v33 = vpop.f32.mrf.mxu0 }
 0x15f   : > { %v4917_v37 = vadd.f32 %v1986_v31, %v1762_v30  ;;  %v1988_v38 = vpop.f32.mrf.mxu1  ;;  %v3930_v30 = vld [vmem:[%s4806_s24 + $0x68] sm:$0xff]  }
 0x160   : > { %v1764_v41 = vpop.f32.mrf.mxu0 }
 0x161   : > { %5269 = vst [vmem:[#allocation5_spill] sm:$0xff] %v4917_v37  ;;  %v1765_v43 = vadd.f32 %v3745_v32, %v1764_v41  ;;  %v1989_v44 = vpop.f32.mrf.mxu1  ;;  %v3756_v41 = vunpack.c.l.bf16 %v3930_v30 }
 0x162   : > { %v1766_v50 = vpop.f32.mrf.mxu0 }
 0x163   : > { %v4923_v52 = vadd.f32 %v1989_v44, %v1765_v43  ;;  %v1991_v54 = vpop.f32.mrf.mxu1  ;;  %v4945_v43 = vpop.permute.xlu1 %2397 }
 0x164   : > { %v1769_v55 = vpop.f32.mrf.mxu0  ;;  %2218 = vmatmul.mubr.bf16.gmra.mxu0 %v4347_v42  ;;  %v4358_v42 = vld [vmem:[%s4505_s14 + $0x2b4] ss:$24 sps:$4 sm:$0xff]   ;;  %v4949_v50 = vpop.permute.xlu0 %2402 }
 0x165   : > { %5270 = vst [vmem:[#allocation6_spill] sm:$0xff] %v4923_v52  ;;  %v1770_v56 = vadd.f32 %v3748_v46, %v1769_v55  ;;  %v1994_v57 = vpop.f32.mrf.mxu1  ;;  %2225 = vmatprep.mubr.bf16.mxu0 %v4352_v47 }
 0x166   : > { %v1771_v61 = vpop.f32.mrf.mxu0 }
 0x167   : > { %v4928_v2 = vadd.f32 %v1994_v57, %v1770_v56  ;;  %v1996_v3 = vpop.f32.mrf.mxu1  ;;  %v3757_v57 = vunpack.c.h.bf16 %v3930_v30  ;;  %v3931_v61 = vld [vmem:[%s4806_s24 + $0x70] sm:$0xff]  }
 0x168   : > { %v1772_v6 = vpop.f32.mrf.mxu0 }
 0x169   : > { %5271 = vst [vmem:[#allocation7_spill] sm:$0xff] %v4928_v2  ;;  %v1773_v8 = vadd.f32 %v3749_v58, %v1772_v6  ;;  %v1997_v10 = vpop.f32.mrf.mxu1  ;;  %v4954_v6 = vpop.permute.xlu1 %2407 }
 0x16a   : > { %v1774_v14 = vpop.f32.mrf.mxu0 }
 0x16b   : > { %v4934_v15 = vadd.f32 %v1997_v10, %v1773_v8  ;;  %v1999_v18 = vpop.f32.mrf.mxu1  ;;  %v4356_v8 = vld [vmem:[%s4505_s14 + $0x2b0] ss:$24 sps:$4 sm:$0xff]   ;;  %v4361_v14 = vld [vmem:[%s4505_s14 + $0x2e4] ss:$24 sps:$4 sm:$0xff]  }
 0x16c   : > { %v1777_v20 = vpop.f32.mrf.mxu0  ;;  %2226 = vmatmul.mubr.bf16.gmra.mxu0 %v4350_v7  ;;  %v4958_v18 = vpop.permute.xlu0 %2412 }
 0x16d   : > { %5272 = vst [vmem:[#allocation8_spill] sm:$0xff] %v4934_v15  ;;  %v1778_v22 = vadd.f32 %v3752_v11, %v1777_v20  ;;  %v2002_v23 = vpop.f32.mrf.mxu1  ;;  %2233 = vmatprep.mubr.bf16.mxu0 %v4355_v13  ;;  %v3760_v13 = vunpack.c.l.bf16 %v3931_v61 }
 0x16e   : > { %v1779_v29 = vpop.f32.mrf.mxu0 }
 0x16f   : > { %v4941_v31 = vadd.f32 %v2002_v23, %v1778_v22  ;;  %v2004_v32 = vpop.f32.mrf.mxu1 }
 0x170   : > { %v1780_v33 = vpop.f32.mrf.mxu0  ;;  %v3761_v32 = vunpack.c.h.bf16 %v3931_v61 }
 0x171   : > { %5273 = vst [vmem:[#allocation9_spill] sm:$0xff] %v4941_v31  ;;  %v1781_v36 = vadd.f32 %v3753_v24, %v1780_v33  ;;  %v2005_v38 = vpop.f32.mrf.mxu1  ;;  %v4962_v33 = vpop.permute.xlu1 %2417 }
 0x172   : > { %v1782_v44 = vpop.f32.mrf.mxu0 }
 0x173   : > { %v4947_v46 = vadd.f32 %v2005_v38, %v1781_v36  ;;  %v2007_v47 = vpop.f32.mrf.mxu1  ;;  %v3932_v36 = vld [vmem:[%s4806_s24 + $0x78] sm:$0xff]  }
 0x174   : > { %v1785_v54 = vpop.f32.mrf.mxu0  ;;  %2234 = vmatmul.mubr.bf16.gmra.mxu0 %v4353_v35  ;;  %v4359_v47 = vld [vmem:[%s4505_s14 + $0x2e0] ss:$24 sps:$4 sm:$0xff]  }
 0x175   : > { %5274 = vst [vmem:[#allocation10_spill] sm:$0xff] %v4947_v46  ;;  %v1786_v55 = vadd.f32 %v3756_v41, %v1785_v54  ;;  %v2010_v56 = vpop.f32.mrf.mxu1  ;;  %2241 = vmatprep.mubr.bf16.mxu0 %v4358_v42  ;;  %v4967_v42 = vpop.permute.xlu0 %2422 }
 0x176   : > { %v1787_v58 = vpop.f32.mrf.mxu0 }
 0x177   : > { %v4952_v62 = vadd.f32 %v2010_v56, %v1786_v55  ;;  %v2012_v3 = vpop.f32.mrf.mxu1  ;;  %v3764_v56 = vunpack.c.l.bf16 %v3932_v36 }
 0x178   : > { %v1788_v7 = vpop.f32.mrf.mxu0 }
 0x179   : > { %5275 = vst [vmem:[#allocation11_spill] sm:$0xff] %v4952_v62  ;;  %v1789_v10 = vadd.f32 %v3757_v57, %v1788_v7  ;;  %v2013_v11 = vpop.f32.mrf.mxu1  ;;  %v4364_v57 = vld [vmem:[%s4505_s14 + $0x314] ss:$24 sps:$4 sm:$0xff]   ;;  %v4973_v7 = vpop.permute.xlu1 %2427 }
 0x17a   : > { %v1790_v20 = vpop.f32.mrf.mxu0 }
 0x17b   : > { %v4960_v22 = vadd.f32 %v2013_v11, %v1789_v10  ;;  %v2015_v23 = vpop.f32.mrf.mxu1 }
 0x17c   : > { %v1793_v24 = vpop.f32.mrf.mxu0  ;;  %2242 = vmatmul.mubr.bf16.gmra.mxu0 %v4356_v8  ;;  %v3933_v23 = vld [vmem:[%s4806_s24 + $0x80] sm:$0xff]  }
 0x17d   : > { %5276 = vst [vmem:[#allocation12_spill] sm:$0xff] %v4960_v22  ;;  %v1794_v29 = vadd.f32 %v3760_v13, %v1793_v24  ;;  %v2018_v30 = vpop.f32.mrf.mxu1  ;;  %2249 = vmatprep.mubr.bf16.mxu0 %v4361_v14  ;;  %v3765_v13 = vunpack.c.h.bf16 %v3932_v36  ;;  %v4975_v14 = vpop.permute.xlu0 %2432 }
 0x17e   : > { %v1795_v35 = vpop.f32.mrf.mxu0 }
 0x17f   : > { %v4965_v38 = vadd.f32 %v2018_v30, %v1794_v29  ;;  %v2020_v41 = vpop.f32.mrf.mxu1 }
 0x180   : > { %v1796_v44 = vpop.f32.mrf.mxu0 }
 0x181   : > { %5277 = vst [vmem:[#allocation13_spill] sm:$0xff] %v4965_v38  ;;  %v1797_v54 = vadd.f32 %v3761_v32, %v1796_v44  ;;  %v2021_v55 = vpop.f32.mrf.mxu1  ;;  %v4362_v32 = vld [vmem:[%s4505_s14 + $0x310] ss:$24 sps:$4 sm:$0xff]   ;;  %v3768_v44 = vunpack.c.l.bf16 %v3933_v23 }
 0x182   : > { %v1798_v58 = vpop.f32.mrf.mxu0 }
 0x183   : > { %v4971_v61 = vadd.f32 %v2021_v55, %v1797_v54  ;;  %v2023_v3 = vpop.f32.mrf.mxu1  ;;  %v4367_v54 = vld [vmem:[%s4505_s14 + $0x344] ss:$24 sps:$4 sm:$0xff]   ;;  %v4982_v55 = vpop.permute.xlu1 %2437 }
 0x184   : > { %v1801_v8 = vpop.f32.mrf.mxu0  ;;  %2250 = vmatmul.mubr.bf16.gmra.mxu0 %v4359_v47 }
 0x185   : > { %5278 = vst [vmem:[#allocation14_spill] sm:$0xff] %v4971_v61  ;;  %v1802_v10 = vadd.f32 %v3764_v56, %v1801_v8  ;;  %v2026_v11 = vpop.f32.mrf.mxu1  ;;  %2257 = vmatprep.mubr.bf16.mxu0 %v4364_v57  ;;  %v4986_v57 = vpop.permute.xlu0 %2442 }
 0x186   : > { %v1803_v20 = vpop.f32.mrf.mxu0 }
 0x187   : > { %v4978_v24 = vadd.f32 %v2026_v11, %v1802_v10  ;;  %v2028_v29 = vpop.f32.mrf.mxu1  ;;  %v3769_v10 = vunpack.c.h.bf16 %v3933_v23 }
 0x188   : > { %v1804_v30 = vpop.f32.mrf.mxu0 }
 0x189   : > { %5279 = vst [vmem:[#allocation15_spill] sm:$0xff] %v4978_v24  ;;  %v1805_v35 = vadd.f32 %v3765_v13, %v1804_v30  ;;  %v2029_v41 = vpop.f32.mrf.mxu1  ;;  %v3934_v13 = vld [vmem:[%s4806_s24 + $0x88] sm:$0xff]   ;;  %v4991_v30 = vpop.permute.xlu1 %2447 }
 0x18a   : > { %v1806_v47 = vpop.f32.mrf.mxu0  ;;  %v4994_v24 = vpop.permute.xlu0 %2452 }
 0x18b   : > { %v4984_v36 = vadd.f32 %v2029_v41, %v1805_v35  ;;  %v2031_v56 = vpop.f32.mrf.mxu1  ;;  %v4365_v35 = vld [vmem:[%s4505_s14 + $0x340] ss:$24 sps:$4 sm:$0xff]  }
 0x18c   : > { %v1809_v58 = vpop.f32.mrf.mxu0  ;;  %2258 = vmatmul.mubr.bf16.gmra.mxu0 %v4362_v32 }
 0x18d   : > { %5280 = vst [vmem:[#allocation16_spill] sm:$0xff] %v4984_v36  ;;  %v1810_v3 = vadd.f32 %v3768_v44, %v1809_v58  ;;  %v2034_v8 = vpop.f32.mrf.mxu1  ;;  %2265 = vmatprep.mubr.bf16.mxu0 %v4367_v54  ;;  %v3772_v36 = vunpack.c.l.bf16 %v3934_v13 }
 0x18e   : > { %v1811_v11 = vpop.f32.mrf.mxu0 }
 0x18f   : > { %v4989_v20 = vadd.f32 %v2034_v8, %v1810_v3  ;;  %v2036_v29 = vpop.f32.mrf.mxu1  ;;  %v3773_v8 = vunpack.c.h.bf16 %v3934_v13  ;;  %v4998_v11 = vpop.permute.xlu1 %2457 }
 0x190   : > { %v1812_v47 = vpop.f32.mrf.mxu0  ;;  %5283 = vst [vmem:[#allocation19_spill] sm:$0xff] %v4998_v11 }
 0x191   : > { %5281 = vst [vmem:[#allocation17_spill] sm:$0xff] %v4989_v20  ;;  %v1813_v41 = vadd.f32 %v3769_v10, %v1812_v47  ;;  %v2037_v56 = vpop.f32.mrf.mxu1  ;;  %v3935_v20 = vld [vmem:[%s4806_s24 + $0x90] sm:$0xff]   ;;  %v5003_v47 = vpop.permute.xlu0 %2462 }
 0x192   : > { %v1814_v32 = vpop.f32.mrf.mxu0  ;;  %5285 = vst [vmem:[#allocation21_spill] sm:$0xff] %v5003_v47  ;;  %v3777_v22 = vunpack.c.h.bf16 %v3935_v20 }
 0x193   : > { %v4996_v44 = vadd.f32 %v2037_v56, %v1813_v41  ;;  %v2039_v23 = vpop.f32.mrf.mxu1  ;;  %v3776_v56 = vunpack.c.l.bf16 %v3935_v20 }
 0x194   : > { %v1817_v54 = vpop.f32.mrf.mxu0  ;;  %2266 = vmatmul.mubr.bf16.gmra.mxu0 %v4365_v35  ;;  %v5007_v35 = vpop.permute.xlu1 %2467 }
 0x195   : > { %5282 = vst [vmem:[#allocation18_spill] sm:$0xff] %v4996_v44  ;;  %v1818_v58 = vadd.f32 %v3772_v36, %v1817_v54  ;;  %v2042_v3 = vpop.f32.mrf.mxu1  ;;  %5287 = vst [vmem:[#allocation23_spill] sm:$0xff] %v5007_v35 }
 0x196   : > { %v1819_v29 = vpop.f32.mrf.mxu0 }
 0x197   : > { %v5001_v61 = vadd.f32 %v2042_v3, %v1818_v58  ;;  %v2044_v10 = vpop.f32.mrf.mxu1  ;;  %v5009_v58 = vpop.permute.xlu0 %2472 }
 0x198   : > { %v1820_v38 = vpop.f32.mrf.mxu0  ;;  %5288 = vst [vmem:[#allocation24_spill] sm:$0xff] %v5009_v58  ;;  %v3936_v10 = vld [vmem:[%s4806_s24 + $0x98] sm:$0xff]  }
 0x199   : > { %5284 = vst [vmem:[#allocation20_spill] sm:$0xff] %v5001_v61  ;;  %v1821_v32 = vadd.f32 %v3773_v8, %v1820_v38  ;;  %v2045_v41 = vpop.f32.mrf.mxu1  ;;  %v3781_v31 = vunpack.c.h.bf16 %v3936_v10 }
 0x19a   : > { %v1822_v23 = vpop.f32.mrf.mxu0 }
 0x19b   : > { %v5005_v44 = vadd.f32 %v2045_v41, %v1821_v32  ;;  %v2047_v36 = vpop.f32.mrf.mxu1  ;;  %v3780_v32 = vunpack.c.l.bf16 %v3936_v10  ;;  %v5014_v41 = vpop.permute.xlu1 %2477 }
 0x19c   : > { %v1825_v13 = vpop.f32.mrf.mxu0  ;;  %5289 = vst [vmem:[#allocation25_spill] sm:$0xff] %v5014_v41 }
 0x19d   : > { %5286 = vst [vmem:[#allocation22_spill] sm:$0xff] %v5005_v44  ;;  %v1826_v54 = vadd.f32 %v3776_v56, %v1825_v13  ;;  %v2050_v29 = vpop.f32.mrf.mxu1  ;;  %v5018_v13 = vpop.permute.xlu0 %2482 }
 0x19e   : > { %v1827_v3 = vpop.f32.mrf.mxu0  ;;  %5290 = vst [vmem:[#allocation26_spill] sm:$0xff] %v5018_v13 }
 0x19f   : > { %v5012_v61 = vadd.f32 %v2050_v29, %v1826_v54  ;;  %v2052_v38 = vpop.f32.mrf.mxu1  ;;  %v3937_v29 = vld [vmem:[%s4806_s24 + $0xa0] sm:$0xff]  }
 0x1a0   : > { %v1828_v8 = vpop.f32.mrf.mxu0  ;;  %v3785_v41 = vunpack.c.h.bf16 %v3937_v29 }
 0x1a1   : > { %v1829_v62 = vadd.f32 %v3777_v22, %v1828_v8  ;;  %v2053_v23 = vpop.f32.mrf.mxu1  ;;  %v5023_v22 = vpop.permute.xlu1 %2487 }
 0x1a2   : > { %v1830_v36 = vpop.f32.mrf.mxu0  ;;  %5291 = vst [vmem:[#allocation27_spill] sm:$0xff] %v5023_v22 }
 0x1a3   : > { %v5016_v44 = vadd.f32 %v2053_v23, %v1829_v62  ;;  %v2055_v56 = vpop.f32.mrf.mxu1  ;;  %v3784_v62 = vunpack.c.l.bf16 %v3937_v29  ;;  %v5025_v23 = vpop.permute.xlu0 %2492 }
 0x1a4   : > { %v1833_v20 = vpop.f32.mrf.mxu0  ;;  %5292 = vst [vmem:[#allocation28_spill] sm:$0xff] %v5025_v23 }
 0x1a5   : > { %v1834_v46 = vadd.f32 %v3780_v32, %v1833_v20  ;;  %v2058_v3 = vpop.f32.mrf.mxu1 }
 0x1a6   : > { %v1835_v54 = vpop.f32.mrf.mxu0 }
 0x1a7   : > { %v5021_v15 = vadd.f32 %v2058_v3, %v1834_v46  ;;  %v2060_v38 = vpop.f32.mrf.mxu1  ;;  %v5029_v46 = vpop.permute.xlu1 %2497 }
 0x1a8   : > { %v1836_v8 = vpop.f32.mrf.mxu0  ;;  %5293 = vst [vmem:[#allocation29_spill] sm:$0xff] %v5029_v46  ;;  %v3938_v38 = vld [vmem:[%s4806_s24 + $0xa8] sm:$0xff]  }
 0x1a9   : > { %v1837_v2 = vadd.f32 %v3781_v31, %v1836_v8  ;;  %v2061_v36 = vpop.f32.mrf.mxu1  ;;  %v5034_v31 = vpop.permute.xlu0 %2502  ;;  %v3789_v58 = vunpack.c.h.bf16 %v3938_v38 }
 0x1aa   : > { %v1838_v56 = vpop.f32.mrf.mxu0  ;;  %5294 = vst [vmem:[#allocation30_spill] sm:$0xff] %v5034_v31 }
 0x1ab   : > { %v5027_v13 = vadd.f32 %v2061_v36, %v1837_v2  ;;  %v2063_v32 = vpop.f32.mrf.mxu1  ;;  %v3788_v2 = vunpack.c.l.bf16 %v3938_v38 }
 0x1ac   : > { %v1841_v20 = vpop.f32.mrf.mxu0 }
 0x1ad   : > { %v1842_v10 = vadd.f32 %v3784_v62, %v1841_v20  ;;  %v2066_v54 = vpop.f32.mrf.mxu1  ;;  %v5038_v20 = vpop.permute.xlu1 %2507 }
 0x1ae   : > { %v1843_v3 = vpop.f32.mrf.mxu0  ;;  %5295 = vst [vmem:[#allocation31_spill] sm:$0xff] %v5038_v20 }
 0x1af   : > { %v5032_v52 = vadd.f32 %v2066_v54, %v1842_v10  ;;  %v2068_v22 = vpop.f32.mrf.mxu1  ;;  %v5040_v10 = vpop.permute.xlu0 %2512  ;;  %v3939_v54 = vld [vmem:[%s4806_s24 + $0xb0] sm:$0xff]  }
 0x1b0   : > { %v1844_v8 = vpop.f32.mrf.mxu0  ;;  %5296 = vst [vmem:[#allocation32_spill] sm:$0xff] %v5040_v10  ;;  %v3793_v35 = vunpack.c.h.bf16 %v3939_v54 }
 0x1b1   : > { %v1845_v23 = vadd.f32 %v3785_v41, %v1844_v8  ;;  %v2069_v56 = vpop.f32.mrf.mxu1 }
 0x1b2   : > { %v1846_v36 = vpop.f32.mrf.mxu0 }
 0x1b3   : > { %v5036_v32 = vadd.f32 %v2069_v56, %v1845_v23  ;;  %v2071_v62 = vpop.f32.mrf.mxu1  ;;  %v3792_v23 = vunpack.c.l.bf16 %v3939_v54  ;;  %v5045_v56 = vpop.permute.xlu1 %2517 }
 0x1b4   : > { %v1849_v29 = vpop.f32.mrf.mxu0  ;;  %5297 = vst [vmem:[#allocation33_spill] sm:$0xff] %v5045_v56 }
 0x1b5   : > { %v1850_v46 = vadd.f32 %v3788_v2, %v1849_v29  ;;  %v2074_v3 = vpop.f32.mrf.mxu1  ;;  %v5049_v29 = vpop.permute.xlu0 %2522 }
 0x1b6   : > { %v1851_v22 = vpop.f32.mrf.mxu0  ;;  %5298 = vst [vmem:[#allocation34_spill] sm:$0xff] %v5049_v29 }
 0x1b7   : > { %v5043_v37 = vadd.f32 %v2074_v3, %v1850_v46  ;;  %v2076_v41 = vpop.f32.mrf.mxu1  ;;  %v3940_v3 = vld [vmem:[%s4806_s24 + $0xb8] sm:$0xff]   ;;  %s5230_s24 = scalar_lea.vmem %s5265_s6, %s3400_s19 }
 0x1b8   : > { %v1852_v8 = vpop.f32.mrf.mxu0 }
 0x1b9   : > { %v1853_v31 = vadd.f32 %v3789_v58, %v1852_v8  ;;  %v2077_v36 = vpop.f32.mrf.mxu1  ;;  %v5054_v58 = vpop.permute.xlu1 %2527 }
 0x1ba   : > { %v1854_v62 = vpop.f32.mrf.mxu0  ;;  %5299 = vst [vmem:[#allocation35_spill] sm:$0xff] %v5054_v58 }
 0x1bb   : > { %v5047_v20 = vadd.f32 %v2077_v36, %v1853_v31  ;;  %v2079_v2 = vpop.f32.mrf.mxu1  ;;  %v3796_v62 = vunpack.c.l.bf16 %v3940_v3  ;;  %v5056_v31 = vpop.permute.xlu0 %2532 }
 0x1bc   : > { %v1857_v38 = vpop.f32.mrf.mxu0  ;;  %5300 = vst [vmem:[#allocation36_spill] sm:$0xff] %v5056_v31 }
 0x1bd   : > { %v1858_v10 = vadd.f32 %v3792_v23, %v1857_v38  ;;  %v2082_v22 = vpop.f32.mrf.mxu1  ;;  %v5060_v12 = vpop.permute.xlu1 %2537 }
 0x1be   : > { %v1859_v46 = vpop.f32.mrf.mxu0  ;;  %5301 = vst [vmem:[#allocation37_spill] sm:$0xff] %v5060_v12 }
 0x1bf   : > { %v5052_v25 = vadd.f32 %v2082_v22, %v1858_v10  ;;  %v2084_v41 = vpop.f32.mrf.mxu1  ;;  %v3797_v46 = vunpack.c.h.bf16 %v3940_v3  ;;  %v5064_v58 = vpop.permute.xlu0 %2542 }
 0x1c0   : > { %v1860_v8 = vpop.f32.mrf.mxu0  ;;  %5302 = vst [vmem:[#allocation38_spill] sm:$0xff] %v5064_v58 }
 0x1c1   : > { %v1861_v47 = vadd.f32 %v3793_v35, %v1860_v8  ;;  %v2085_v56 = vpop.f32.mrf.mxu1 }
 0x1c2   : > { %v1862_v36 = vpop.f32.mrf.mxu0 }
 0x1c3   : > { %v5058_v2 = vadd.f32 %v2085_v56, %v1861_v47  ;;  %v2087_v29 = vpop.f32.mrf.mxu1  ;;  %v5068_v56 = vpop.permute.xlu1 %2547 }
 0x1c4   : > { %v1865_v23 = vpop.f32.mrf.mxu0  ;;  %5303 = vst [vmem:[#allocation39_spill] sm:$0xff] %v5068_v56 }
 0x1c5   : > { %v1866_v38 = vadd.f32 %v3796_v62, %v1865_v23  ;;  %v2090_v54 = vpop.f32.mrf.mxu1  ;;  %v2553_v23 = vpop.permute.xlu0 %2552 }
 0x1c6   : > { %v1867_v10 = vpop.f32.mrf.mxu0 }
 0x1c7   : > { %v5062_v22 = vadd.f32 %v2090_v54, %v1866_v38  ;;  %v2092_v41 = vpop.f32.mrf.mxu1 }
 0x1c8   : > { %v1868_v35 = vpop.f32.mrf.mxu0 }
 0x1c9   : > { %v1869_v8 = vadd.f32 %v3797_v46, %v1868_v35  ;;  %v2093_v11 = vpop.f32.mrf.mxu1 }
 0x1ca   : > { %v1870_v31 = vpop.f32.mrf.mxu0 }
 0x1cb   : > { %v5066_v36 = vadd.f32 %v2093_v11, %v1869_v8  ;;  %v2095_v47 = vpop.f32.mrf.mxu1  ;;  %v5076_v31 = vld [vmem:[%s5263_s4] ss:$0 sm:$0xff] }
 0x1cc   : > { %v2131_v29 = vpop.f32.mrf.mxu0  ;;  %v2558_v47 = vpop.permute.xlu1 %2557 }
 0x1cd   : > { %v2132_v3 = vadd.f32 %v2131_v29, %v4814_v16  ;;  %v2275_v62 = vpop.f32.mrf.mxu1 }
 0x1ce   : > { %v2276_v38 = vadd.f32 %v2275_v62, %v5012_v61  ;;  %v2133_v54 = vpop.f32.mrf.mxu0 }
 0x1cf   : > { %v2610_v10 = vmul.f32 %v4921_v48, %v2132_v3  ;;  %v2277_v41 = vpop.f32.mrf.mxu1 }
 0x1d0   : > { %v2646_v11 = vmul.f32 %v2553_v23, %v2276_v38  ;;  %v2134_v46 = vpop.f32.mrf.mxu0 }
 0x1d1   : > { %v2135_v35 = vadd.f32 %v2134_v46, %v4820_v27  ;;  %v2278_v8 = vpop.f32.mrf.mxu1  ;;  %v2665_v61 = vadd.f32 %v5076_v31, %v2610_v10  ;;  %v2563_v27 = vpop.permute.xlu0 %2562 }
 0x1d2   : > { %v2279_v16 = vadd.f32 %v2278_v8, %v5016_v44  ;;  %v2136_v29 = vpop.f32.mrf.mxu0  ;;  %v2701_v3 = vadd.f32 %v5076_v31, %v2646_v11 }
 0x1d3   : > { %v2611_v62 = vmul.f32 %v4930_v4, %v2135_v35  ;;  %v2280_v48 = vpop.f32.mrf.mxu1  ;;  %v2713_v29 = vmax.f32 %v2665_v61, 0.0 }
 0x1d4   : > { %v2647_v54 = vmul.f32 %v2558_v47, %v2279_v16  ;;  %v2139_v41 = vpop.f32.mrf.mxu0  ;;  %v2749_v48 = vmax.f32 %v2701_v3, 0.0 }
 0x1d5   : > { %v2666_v56 = vadd.f32 %v5076_v31, %v2611_v62  ;;  %v2140_v23 = vadd.f32 %v2139_v41, %v4823_v34  ;;  %v2283_v38 = vpop.f32.mrf.mxu1  ;;  %v2568_v34 = vpop.permute.xlu1 %2567 }
 0x1d6   : > { %v2702_v46 = vadd.f32 %v5076_v31, %v2647_v54  ;;  %v2284_v44 = vadd.f32 %v2283_v38, %v5021_v15  ;;  %v2141_v8 = vpop.f32.mrf.mxu0 }
 0x1d7   : > { %v2714_v10 = vmax.f32 %v2666_v56, 0.0  ;;  %v2612_v4 = vmul.f32 %v4925_v60, %v2140_v23  ;;  %v2285_v35 = vpop.f32.mrf.mxu1 }
 0x1d8   : > { %v2750_v11 = vmax.f32 %v2702_v46, 0.0  ;;  %v2648_v47 = vmul.f32 %v2563_v27, %v2284_v44  ;;  %v2142_v16 = vpop.f32.mrf.mxu0  ;;  %v2573_v46 = vpop.permute.xlu0 %2572 }
 0x1d9   : > { %v2143_v62 = vadd.f32 %v2142_v16, %v4829_v45  ;;  %v2286_v58 = vpop.f32.mrf.mxu1  ;;  %v2761_v41 = vpack.c.bf16 %v2714_v10, %v2713_v29  ;;  %v2667_v15 = vadd.f32 %v5076_v31, %v2612_v4  ;;  %v2578_v16 = vpop.permute.xlu1 %2577 }
 0x1da   : > { %v2287_v12 = vadd.f32 %v2286_v58, %v5027_v13  ;;  %v2144_v54 = vpop.f32.mrf.mxu0  ;;  %v5090_v63 = vpack.c.bf16 %v2750_v11, %v2749_v48  ;;  %v2703_v61 = vadd.f32 %v5076_v31, %v2648_v47 }
 0x1db   : > { %v2613_v56 = vmul.f32 %v4936_v19, %v2143_v62  ;;  %v2288_v60 = vpop.f32.mrf.mxu1  ;;  %4012 = vmatprep.mubr.bf16.mxu1 %v2761_v41  ;;  %v2715_v8 = vmax.f32 %v2667_v15, 0.0 }
 0x1dc   : > { %v2649_v3 = vmul.f32 %v2568_v34, %v2287_v12  ;;  %v2147_v23 = vpop.f32.mrf.mxu0  ;;  %v2751_v4 = vmax.f32 %v2703_v61, 0.0 }
 0x1dd   : > { %v2668_v45 = vadd.f32 %v5076_v31, %v2613_v56  ;;  %v2148_v38 = vadd.f32 %v2147_v23, %v4832_v53  ;;  %v2291_v27 = vpop.f32.mrf.mxu1  ;;  %v2583_v23 = vpop.permute.xlu0 %2582 }
 0x1de   : > { %v2704_v13 = vadd.f32 %v5076_v31, %v2649_v3  ;;  %v2292_v58 = vadd.f32 %v2291_v27, %v5032_v52  ;;  %v2149_v44 = vpop.f32.mrf.mxu0 }
 0x1df   : > { %v2716_v29 = vmax.f32 %v2668_v45, 0.0  ;;  %v2614_v19 = vmul.f32 %v4938_v26, %v2148_v38  ;;  %v2293_v10 = vpop.f32.mrf.mxu1 }
 0x1e0   : > { %v2752_v35 = vmax.f32 %v2704_v13, 0.0  ;;  %v2650_v12 = vmul.f32 %v2573_v46, %v2292_v58  ;;  %v2150_v48 = vpop.f32.mrf.mxu0 }
 0x1e1   : > { %v2762_v11 = vpack.c.bf16 %v2716_v29, %v2715_v8  ;;  %v2151_v47 = vadd.f32 %v2150_v48, %v4838_v0  ;;  %v2294_v53 = vpop.f32.mrf.mxu1  ;;  %v2669_v41 = vadd.f32 %v5076_v31, %v2614_v19 }
 0x1e2   : > { %v5101_v62 = vpack.c.bf16 %v2752_v35, %v2751_v4  ;;  %v2295_v34 = vadd.f32 %v2294_v53, %v5036_v32  ;;  %v2152_v52 = vpop.f32.mrf.mxu0  ;;  %v2705_v15 = vadd.f32 %v5076_v31, %v2650_v12 }
 0x1e3   : > { %v2615_v54 = vmul.f32 %v4945_v43, %v2151_v47  ;;  %v2296_v26 = vpop.f32.mrf.mxu1  ;;  %4013 = vmatmul.mubr.bf16.vlgmr.msra.gmra.mxu1 %v2762_v11  ;;  %v2717_v27 = vmax.f32 %v2669_v41, 0.0  ;;  %v2593_v41 = vpop.permute.xlu0 %2592 }
 0x1e4   : > { %v2651_v56 = vmul.f32 %v2578_v16, %v2295_v34  ;;  %v2155_v60 = vpop.f32.mrf.mxu0  ;;  %v2753_v58 = vmax.f32 %v2705_v15, 0.0 }
 0x1e5   : > { %v2670_v61 = vadd.f32 %v5076_v31, %v2615_v54  ;;  %v2156_v0 = vadd.f32 %v2155_v60, %v4841_v9  ;;  %v2299_v3 = vpop.f32.mrf.mxu1  ;;  %v2588_v9 = vpop.permute.xlu1 %2587 }
 0x1e6   : > { %v2706_v45 = vadd.f32 %v5076_v31, %v2651_v56  ;;  %v2300_v32 = vadd.f32 %v2299_v3, %v5043_v37  ;;  %v2157_v38 = vpop.f32.mrf.mxu0 }
 0x1e7   : > { %v2718_v46 = vmax.f32 %v2670_v61, 0.0  ;;  %v2616_v43 = vmul.f32 %v4949_v50, %v2156_v0  ;;  %v2301_v13 = vpop.f32.mrf.mxu1 }
 0x1e8   : > { %v2754_v44 = vmax.f32 %v2706_v45, 0.0  ;;  %v2652_v8 = vmul.f32 %v2583_v23, %v2300_v32  ;;  %v2158_v29 = vpop.f32.mrf.mxu0 }
 0x1e9   : > { %v2159_v19 = vadd.f32 %v2158_v29, %v4847_v21  ;;  %v2302_v10 = vpop.f32.mrf.mxu1  ;;  %v2763_v4 = vpack.c.bf16 %v2718_v46, %v2717_v27  ;;  %v2671_v37 = vadd.f32 %v5076_v31, %v2616_v43  ;;  %v2598_v38 = vpop.permute.xlu1 %2597 }
 0x1ea   : > { %v2303_v35 = vadd.f32 %v2302_v10, %v5047_v20  ;;  %v2160_v12 = vpop.f32.mrf.mxu0  ;;  %v5114_v48 = vpack.c.bf16 %v2754_v44, %v2753_v58  ;;  %v2707_v47 = vadd.f32 %v5076_v31, %v2652_v8  ;;  %v2603_v10 = vpop.permute.xlu0 %2602 }
 0x1eb   : > { %v2617_v11 = vmul.f32 %v4954_v6, %v2159_v19  ;;  %v2304_v50 = vpop.f32.mrf.mxu1  ;;  %4016 = vmatprep.mubr.bf16.mxu1 %v2763_v4  ;;  %v2719_v15 = vmax.f32 %v2671_v37, 0.0 }
 0x1ec   : > { %v2653_v53 = vmul.f32 %v2588_v9, %v2303_v35  ;;  %v2163_v16 = vpop.f32.mrf.mxu0  ;;  %v2755_v61 = vmax.f32 %v2707_v47, 0.0 }
 0x1ed   : > { %v2672_v21 = vadd.f32 %v5076_v31, %v2617_v11  ;;  %v2164_v34 = vadd.f32 %v2163_v16, %v4850_v1  ;;  %v2307_v52 = vpop.f32.mrf.mxu1 }
 0x1ee   : > { %v2708_v20 = vadd.f32 %v5076_v31, %v2653_v53  ;;  %v2308_v54 = vadd.f32 %v2307_v52, %v5052_v25  ;;  %v2165_v26 = vpop.f32.mrf.mxu0 }
 0x1ef   : > { %v2720_v56 = vmax.f32 %v2672_v21, 0.0  ;;  %v2618_v6 = vmul.f32 %v4958_v18, %v2164_v34  ;;  %v2309_v60 = vpop.f32.mrf.mxu1 }
 0x1f0   : > { %v2756_v0 = vmax.f32 %v2708_v20, 0.0  ;;  %v2654_v3 = vmul.f32 %v2593_v41, %v2308_v54  ;;  %v2166_v23 = vpop.f32.mrf.mxu0 }
 0x1f1   : > { %v2764_v45 = vpack.c.bf16 %v2720_v56, %v2719_v15  ;;  %v2167_v32 = vadd.f32 %v2166_v23, %v4855_v40  ;;  %v2310_v1 = vpop.f32.mrf.mxu1  ;;  %v2673_v43 = vadd.f32 %v5076_v31, %v2618_v6 }
 0x1f2   : > { %v5125_v27 = vpack.c.bf16 %v2756_v0, %v2755_v61  ;;  %v2311_v46 = vadd.f32 %v2310_v1, %v5058_v2  ;;  %v2168_v25 = vpop.f32.mrf.mxu0  ;;  %v2709_v58 = vadd.f32 %v5076_v31, %v2654_v3 }
 0x1f3   : > { %v2619_v13 = vmul.f32 %v4962_v33, %v2167_v32  ;;  %v2312_v18 = vpop.f32.mrf.mxu1  ;;  %4017 = vmatmul.mubr.bf16.gmra.mxu1 %v2764_v45  ;;  %v2721_v35 = vmax.f32 %v2673_v43, 0.0 }
 0x1f4   : > { %v2655_v44 = vmul.f32 %v2598_v38, %v2311_v46  ;;  %v2171_v8 = vpop.f32.mrf.mxu0  ;;  %v2757_v11 = vmax.f32 %v2709_v58, 0.0 }
 0x1f5   : > { %v2674_v29 = vadd.f32 %v5076_v31, %v2619_v13  ;;  %v2172_v40 = vadd.f32 %v2171_v8, %v4858_v49  ;;  %v2315_v19 = vpop.f32.mrf.mxu1  ;;  %v2608_v49 = vpop.permute.xlu1 %2607 }
 0x1f6   : > { %v2710_v9 = vadd.f32 %v5076_v31, %v2655_v44  ;;  %v2316_v2 = vadd.f32 %v2315_v19, %v5062_v22  ;;  %v2173_v4 = vpop.f32.mrf.mxu0 }
 0x1f7   : > { %v2722_v12 = vmax.f32 %v2674_v29, 0.0  ;;  %v2620_v33 = vmul.f32 %v4967_v42, %v2172_v40  ;;  %v2317_v37 = vpop.f32.mrf.mxu1 }
 0x1f8   : > { %v2758_v50 = vmax.f32 %v2710_v9, 0.0  ;;  %v2656_v47 = vmul.f32 %v2603_v10, %v2316_v2  ;;  %v2174_v53 = vpop.f32.mrf.mxu0 }
 0x1f9   : > { %v2175_v16 = vadd.f32 %v2174_v53, %v4862_v59  ;;  %v2318_v21 = vpop.f32.mrf.mxu1  ;;  %v2765_v34 = vpack.c.bf16 %v2722_v12, %v2721_v35  ;;  %v2675_v22 = vadd.f32 %v5076_v31, %v2620_v33  ;;  %v5305_v53 = vld [vmem:[#allocation19_spill] sm:$0xff] }
 0x1fa   : > { %v2319_v52 = vadd.f32 %v2318_v21, %v5066_v36  ;;  %v2176_v41 = vpop.f32.mrf.mxu0  ;;  %v5138_v20 = vpack.c.bf16 %v2758_v50, %v2757_v11  ;;  %v2711_v26 = vadd.f32 %v5076_v31, %v2656_v47 }
 0x1fb   : > { %v2621_v54 = vmul.f32 %v4973_v7, %v2175_v16  ;;  %4020 = vmatprep.mubr.bf16.mxu1 %v2765_v34  ;;  %v2320_v42 = vpop.f32.mrf.mxu1  ;;  %v2723_v61 = vmax.f32 %v2675_v22, 0.0  ;;  %v5307_v22 = vld [vmem:[#allocation21_spill] sm:$0xff] }
 0x1fc   : > { %v2657_v15 = vmul.f32 %v2608_v49, %v2319_v52  ;;  %v2179_v56 = vpop.f32.mrf.mxu0  ;;  %v2759_v23 = vmax.f32 %v2711_v26, 0.0  ;;  %v5306_v49 = vld [vmem:[#allocation3_spill] sm:$0xff]  ;;  %v5308_v42 = vld [vmem:[#allocation4_spill] sm:$0xff] }
 0x1fd   : > { %v2676_v59 = vadd.f32 %v5076_v31, %v2621_v54  ;;  %v2180_v6 = vadd.f32 %v2179_v56, %v4865_v5 }
 0x1fe   : > { %v2712_v60 = vadd.f32 %v5076_v31, %v2657_v15  ;;  %v2181_v36 = vpop.f32.mrf.mxu0 }
 0x1ff   : > { %v2724_v0 = vmax.f32 %v2676_v59, 0.0  ;;  %v2622_v3 = vmul.f32 %v4975_v14, %v2180_v6  ;;  %v5309_v6 = vld [vmem:[#allocation23_spill] sm:$0xff] }
 0x200   : > { %v2760_v45 = vmax.f32 %v2712_v60, 0.0  ;;  %v2182_v7 = vpop.f32.mrf.mxu0 }
 0x201   : > { %v2766_v32 = vpack.c.bf16 %v2724_v0, %v2723_v61  ;;  %v2183_v1 = vadd.f32 %v2182_v7, %v4872_v17  ;;  %v2677_v25 = vadd.f32 %v5076_v31, %v2622_v3  ;;  %v5310_v0 = vld [vmem:[#allocation5_spill] sm:$0xff] }
 0x202   : > { %v5148_v38 = vpack.c.bf16 %v2760_v45, %v2759_v23  ;;  %v2184_v46 = vpop.f32.mrf.mxu0 }
 0x203   : > { %v2623_v5 = vmul.f32 %v4982_v55, %v2183_v1  ;;  %4021 = vmatmul.mubr.bf16.gmra.mxu1 %v2766_v32  ;;  %v2725_v58 = vmax.f32 %v2677_v25, 0.0  ;;  %v5311_v32 = vld [vmem:[#allocation24_spill] sm:$0xff] }
 0x204   : > { %v2187_v43 = vpop.f32.mrf.mxu0 }
 0x205   : > { %v2678_v13 = vadd.f32 %v5076_v31, %v2623_v5  ;;  %v2188_v18 = vadd.f32 %v2187_v43, %v4878_v28  ;;  %v5312_v5 = vld [vmem:[#allocation6_spill] sm:$0xff] }
 0x206   : > { %v2189_v14 = vpop.f32.mrf.mxu0 }
 0x207   : > { %v2726_v44 = vmax.f32 %v2678_v13, 0.0  ;;  %v2624_v8 = vmul.f32 %v4986_v57, %v2188_v18  ;;  %v5313_v14 = vld [vmem:[#allocation25_spill] sm:$0xff] }
 0x208   : > { %v2190_v29 = vpop.f32.mrf.mxu0 }
 0x209   : > { %v2191_v17 = vadd.f32 %v2190_v29, %v4885_v39  ;;  %v2767_v40 = vpack.c.bf16 %v2726_v44, %v2725_v58  ;;  %v2679_v10 = vadd.f32 %v5076_v31, %v2624_v8  ;;  %v5304_v39 = vld [vmem:[#allocation2_spill] sm:$0xff]  ;;  %v5314_v29 = vld [vmem:[#allocation7_spill] sm:$0xff] }
 0x20a   : > { %v2192_v19 = vpop.f32.mrf.mxu0 }
 0x20b   : > { %v2625_v55 = vmul.f32 %v4991_v30, %v2191_v17  ;;  %4024 = vmatprep.mubr.bf16.mxu1 %v2767_v40  ;;  %v2727_v35 = vmax.f32 %v2679_v10, 0.0 }
 0x20c   : > { %v2195_v9 = vpop.f32.mrf.mxu0 }
 0x20d   : > { %v2680_v2 = vadd.f32 %v5076_v31, %v2625_v55  ;;  %v2196_v28 = vadd.f32 %v2195_v9, %v4891_v51  ;;  %v5315_v55 = vld [vmem:[#allocation26_spill] sm:$0xff] }
 0x20e   : > { %v2197_v4 = vpop.f32.mrf.mxu0 }
 0x20f   : > { %v2728_v12 = vmax.f32 %v2680_v2, 0.0  ;;  %v2626_v57 = vmul.f32 %v4994_v24, %v2196_v28  ;;  %v5316_v28 = vld [vmem:[#allocation8_spill] sm:$0xff] }
 0x210   : > { %v2198_v33 = vpop.f32.mrf.mxu0 }
 0x211   : > { %v2768_v37 = vpack.c.bf16 %v2728_v12, %v2727_v35  ;;  %v2199_v11 = vadd.f32 %v2198_v33, %v5304_v39  ;;  %v2681_v47 = vadd.f32 %v5076_v31, %v2626_v57  ;;  %v5317_v33 = vld [vmem:[#allocation27_spill] sm:$0xff] }
 0x212   : > { %v2200_v50 = vpop.f32.mrf.mxu0 }
 0x213   : > { %v2627_v30 = vmul.f32 %v5305_v53, %v2199_v11  ;;  %4025 = vmatmul.mubr.bf16.gmra.mxu1 %v2768_v37  ;;  %v2729_v52 = vmax.f32 %v2681_v47, 0.0  ;;  %v5318_v50 = vld [vmem:[#allocation9_spill] sm:$0xff] }
 0x214   : > { %v2203_v16 = vpop.f32.mrf.mxu0 }
 0x215   : > { %v2682_v21 = vadd.f32 %v5076_v31, %v2627_v30  ;;  %v2204_v51 = vadd.f32 %v2203_v16, %v5306_v49 }
 0x216   : > { %v2205_v34 = vpop.f32.mrf.mxu0 }
 0x217   : > { %v2730_v41 = vmax.f32 %v2682_v21, 0.0  ;;  %v2628_v24 = vmul.f32 %v5307_v22, %v2204_v51  ;;  %v5319_v21 = vld [vmem:[#allocation28_spill] sm:$0xff] }
 0x218   : > { %v2206_v54 = vpop.f32.mrf.mxu0 }
 0x219   : > { %v2207_v26 = vadd.f32 %v2206_v54, %v5308_v42  ;;  %v2769_v15 = vpack.c.bf16 %v2730_v41, %v2729_v52  ;;  %v2683_v59 = vadd.f32 %v5076_v31, %v2628_v24  ;;  %v5320_v52 = vld [vmem:[#allocation10_spill] sm:$0xff]  ;;  %v5321_v54 = vld [vmem:[#allocation29_spill] sm:$0xff] }
 0x21a   : > { %v2208_v56 = vpop.f32.mrf.mxu0 }
 0x21b   : > { %v2629_v60 = vmul.f32 %v5309_v6, %v2207_v26  ;;  %4028 = vmatprep.mubr.bf16.mxu1 %v2769_v15  ;;  %v2731_v45 = vmax.f32 %v2683_v59, 0.0  ;;  %v5322_v56 = vld [vmem:[#allocation11_spill] sm:$0xff] }
 0x21c   : > { %v2211_v36 = vpop.f32.mrf.mxu0 }
 0x21d   : > { %v2684_v61 = vadd.f32 %v5076_v31, %v2629_v60  ;;  %v2212_v3 = vadd.f32 %v2211_v36, %v5310_v0 }
 0x21e   : > { %v2213_v23 = vpop.f32.mrf.mxu0 }
 0x21f   : > { %v2732_v7 = vmax.f32 %v2684_v61, 0.0  ;;  %v2630_v1 = vmul.f32 %v5311_v32, %v2212_v3  ;;  %v5323_v61 = vld [vmem:[#allocation30_spill] sm:$0xff]  ;;  %v5324_v23 = vld [vmem:[#allocation12_spill] sm:$0xff] }
 0x220   : > { %v2214_v46 = vpop.f32.mrf.mxu0 }
 0x221   : > { %v2770_v25 = vpack.c.bf16 %v2732_v7, %v2731_v45  ;;  %v2215_v43 = vadd.f32 %v2214_v46, %v5312_v5  ;;  %v2685_v18 = vadd.f32 %v5076_v31, %v2630_v1  ;;  %v5325_v46 = vld [vmem:[#allocation31_spill] sm:$0xff] }
 0x222   : > { %v2216_v13 = vpop.f32.mrf.mxu0 }
 0x223   : > { %v2631_v58 = vmul.f32 %v5313_v14, %v2215_v43  ;;  %4029 = vmatmul.mubr.bf16.gmra.mxu1 %v2770_v25  ;;  %v2733_v19 = vmax.f32 %v2685_v18, 0.0  ;;  %v5326_v13 = vld [vmem:[#allocation13_spill] sm:$0xff] }
 0x224   : > { %v2219_v44 = vpop.f32.mrf.mxu0 }
 0x225   : > { %v2686_v8 = vadd.f32 %v5076_v31, %v2631_v58  ;;  %v2220_v17 = vadd.f32 %v2219_v44, %v5314_v29 }
 0x226   : > { %v2221_v40 = vpop.f32.mrf.mxu0 }
 0x227   : > { %v2734_v10 = vmax.f32 %v2686_v8, 0.0  ;;  %v2632_v9 = vmul.f32 %v5315_v55, %v2220_v17  ;;  %v5327_v8 = vld [vmem:[#allocation32_spill] sm:$0xff] }
 0x228   : > { %v2222_v2 = vpop.f32.mrf.mxu0 }
 0x229   : > { %v2223_v4 = vadd.f32 %v2222_v2, %v5316_v28  ;;  %v2771_v35 = vpack.c.bf16 %v2734_v10, %v2733_v19  ;;  %v2687_v57 = vadd.f32 %v5076_v31, %v2632_v9  ;;  %v5328_v19 = vld [vmem:[#allocation14_spill] sm:$0xff]  ;;  %v5329_v2 = vld [vmem:[#allocation33_spill] sm:$0xff] }
 0x22a   : > { %v2224_v12 = vpop.f32.mrf.mxu0 }
 0x22b   : > { %v2633_v37 = vmul.f32 %v5317_v33, %v2223_v4  ;;  %4032 = vmatprep.mubr.bf16.mxu1 %v2771_v35  ;;  %v2735_v30 = vmax.f32 %v2687_v57, 0.0  ;;  %v5330_v12 = vld [vmem:[#allocation15_spill] sm:$0xff] }
 0x22c   : > { %v2227_v39 = vpop.f32.mrf.mxu0 }
 0x22d   : > { %v2688_v11 = vadd.f32 %v5076_v31, %v2633_v37  ;;  %v2228_v47 = vadd.f32 %v2227_v39, %v5318_v50 }
 0x22e   : > { %v2229_v53 = vpop.f32.mrf.mxu0 }
 0x22f   : > { %v2736_v16 = vmax.f32 %v2688_v11, 0.0  ;;  %v2634_v49 = vmul.f32 %v5319_v21, %v2228_v47  ;;  %v5331_v11 = vld [vmem:[#allocation34_spill] sm:$0xff]  ;;  %v5332_v53 = vld [vmem:[#allocation16_spill] sm:$0xff] }
 0x230   : > { %v2230_v51 = vpop.f32.mrf.mxu0 }
 0x231   : > { %v2772_v34 = vpack.c.bf16 %v2736_v16, %v2735_v30  ;;  %v2231_v41 = vadd.f32 %v2230_v51, %v5320_v52  ;;  %v2689_v24 = vadd.f32 %v5076_v31, %v2634_v49  ;;  %v5333_v51 = vld [vmem:[#allocation35_spill] sm:$0xff] }
 0x232   : > { %v2232_v22 = vpop.f32.mrf.mxu0 }
 0x233   : > { %v2635_v42 = vmul.f32 %v5321_v54, %v2231_v41  ;;  %4033 = vmatmul.mubr.bf16.gmra.mxu1 %v2772_v34  ;;  %v2737_v60 = vmax.f32 %v2689_v24, 0.0  ;;  %v5334_v22 = vld [vmem:[#allocation17_spill] sm:$0xff] }
 0x234   : > { %v2235_v26 = vpop.f32.mrf.mxu0 }
 0x235   : > { %v2690_v15 = vadd.f32 %v5076_v31, %v2635_v42  ;;  %v2236_v59 = vadd.f32 %v2235_v26, %v5322_v56 }
 0x236   : > { %v2237_v6 = vpop.f32.mrf.mxu0 }
 0x237   : > { %v2738_v36 = vmax.f32 %v2690_v15, 0.0  ;;  %v2636_v0 = vmul.f32 %v5323_v61, %v2236_v59  ;;  %v5335_v15 = vld [vmem:[#allocation36_spill] sm:$0xff] }
 0x238   : > { %v2238_v3 = vpop.f32.mrf.mxu0 }
 0x239   : > { %v2239_v45 = vadd.f32 %v2238_v3, %v5324_v23  ;;  %v2773_v7 = vpack.c.bf16 %v2738_v36, %v2737_v60  ;;  %v2691_v1 = vadd.f32 %v5076_v31, %v2636_v0  ;;  %v5336_v60 = vld [vmem:[#allocation18_spill] sm:$0xff]  ;;  %v5337_v3 = vld [vmem:[#allocation37_spill] sm:$0xff] }
 0x23a   : > { %v2240_v32 = vpop.f32.mrf.mxu0 }
 0x23b   : > { %v2637_v25 = vmul.f32 %v5325_v46, %v2239_v45  ;;  %4036 = vmatprep.mubr.bf16.mxu1 %v2773_v7  ;;  %v2739_v58 = vmax.f32 %v2691_v1, 0.0  ;;  %v5338_v32 = vld [vmem:[#allocation20_spill] sm:$0xff] }
 0x23c   : > { %v2243_v5 = vpop.f32.mrf.mxu0 }
 0x23d   : > { %v2692_v43 = vadd.f32 %v5076_v31, %v2637_v25  ;;  %v2244_v18 = vadd.f32 %v2243_v5, %v5326_v13 }
 0x23e   : > { %v2245_v14 = vpop.f32.mrf.mxu0 }
 0x23f   : > { %v2740_v44 = vmax.f32 %v2692_v43, 0.0  ;;  %v2638_v29 = vmul.f32 %v5327_v8, %v2244_v18  ;;  %v5339_v43 = vld [vmem:[#allocation38_spill] sm:$0xff] }
 0x240   : > { %v2246_v17 = vpop.f32.mrf.mxu0  ;;  %v5340_v14 = vld [vmem:[#allocation22_spill] sm:$0xff] }
 0x241   : > { %v2774_v40 = vpack.c.bf16 %v2740_v44, %v2739_v58  ;;  %v2247_v10 = vadd.f32 %v2246_v17, %v5328_v19  ;;  %v2693_v9 = vadd.f32 %v5076_v31, %v2638_v29  ;;  %v5341_v17 = vld [vmem:[#allocation39_spill] sm:$0xff] }
 0x242   : > { %v2248_v55 = vpop.f32.mrf.mxu0 }
 0x243   : > { %v2639_v28 = vmul.f32 %v5329_v2, %v2247_v10  ;;  %4037 = vmatmul.mubr.bf16.gmra.mxu1 %v2774_v40  ;;  %v2741_v37 = vmax.f32 %v2693_v9, 0.0 }
 0x244   : > { %v2251_v4 = vpop.f32.mrf.mxu0 }
 0x245   : > { %v2694_v35 = vadd.f32 %v5076_v31, %v2639_v28  ;;  %v2252_v57 = vadd.f32 %v2251_v4, %v5330_v12 }
 0x246   : > { %v2253_v33 = vpop.f32.mrf.mxu0 }
 0x247   : > { %v2742_v39 = vmax.f32 %v2694_v35, 0.0  ;;  %v2640_v50 = vmul.f32 %v5331_v11, %v2252_v57 }
 0x248   : > { %v2254_v47 = vpop.f32.mrf.mxu0 }
 0x249   : > { %v2255_v30 = vadd.f32 %v2254_v47, %v5332_v53  ;;  %v2775_v16 = vpack.c.bf16 %v2742_v39, %v2741_v37  ;;  %v2695_v49 = vadd.f32 %v5076_v31, %v2640_v50 }
 0x24a   : > { %v2256_v21 = vpop.f32.mrf.mxu0 }
 0x24b   : > { %v2641_v34 = vmul.f32 %v5333_v51, %v2255_v30  ;;  %4040 = vmatprep.mubr.bf16.mxu1 %v2775_v16  ;;  %v2743_v42 = vmax.f32 %v2695_v49, 0.0 }
 0x24c   : > { %v2259_v52 = vpop.f32.mrf.mxu0 }
 0x24d   : > { %v2696_v41 = vadd.f32 %v5076_v31, %v2641_v34  ;;  %v2260_v24 = vadd.f32 %v2259_v52, %v5334_v22 }
 0x24e   : > { %v2261_v54 = vpop.f32.mrf.mxu0 }
 0x24f   : > { %v2744_v26 = vmax.f32 %v2696_v41, 0.0  ;;  %v2642_v56 = vmul.f32 %v5335_v15, %v2260_v24 }
 0x250   : > { %v2262_v59 = vpop.f32.mrf.mxu0 }
 0x251   : > { %v2776_v6 = vpack.c.bf16 %v2744_v26, %v2743_v42  ;;  %v2263_v36 = vadd.f32 %v2262_v59, %v5336_v60  ;;  %v2697_v0 = vadd.f32 %v5076_v31, %v2642_v56 }
 0x252   : > { %v2264_v61 = vpop.f32.mrf.mxu0 }
 0x253   : > { %v2643_v23 = vmul.f32 %v5337_v3, %v2263_v36  ;;  %4041 = vmatmul.mubr.bf16.gmra.mxu1 %v2776_v6  ;;  %v2745_v25 = vmax.f32 %v2697_v0, 0.0 }
 0x254   : > { %v2267_v45 = vpop.f32.mrf.mxu0 }
 0x255   : > { %v2698_v7 = vadd.f32 %v5076_v31, %v2643_v23  ;;  %v2268_v1 = vadd.f32 %v2267_v45, %v5338_v32 }
 0x256   : > { %v2269_v46 = vpop.f32.mrf.mxu0 }
 0x257   : > { %v2746_v5 = vmax.f32 %v2698_v7, 0.0  ;;  %v2644_v13 = vmul.f32 %v5339_v43, %v2268_v1 }
 0x258   : > { %v2270_v18 = vpop.f32.mrf.mxu0 }
 0x259   : > { %v2271_v58 = vadd.f32 %v2270_v18, %v5340_v14  ;;  %v2777_v44 = vpack.c.bf16 %v2746_v5, %v2745_v25  ;;  %v2699_v29 = vadd.f32 %v5076_v31, %v2644_v13 }
 0x25a   : > { %v2272_v8 = vpop.f32.mrf.mxu0 }
 0x25b   : > { %v2645_v40 = vmul.f32 %v5341_v17, %v2271_v58  ;;  %4044 = vmatprep.mubr.bf16.mxu1 %v2777_v44  ;;  %v2747_v10 = vmax.f32 %v2699_v29, 0.0 }
 0x25d   : > { %v2700_v19 = vadd.f32 %v5076_v31, %v2645_v40 }
 0x25f   : > { %v2748_v55 = vmax.f32 %v2700_v19, 0.0 }
 0x261   : > { %v2778_v9 = vpack.c.bf16 %v2748_v55, %v2747_v10 }
 0x263   : > { %4045 = vmatmul.mubr.bf16.gmra.mxu1 %v2778_v9 }
 0x264   : > { %4048 = vmatprep.mubr.bf16.mxu1 %v5090_v63 }
 0x26b   : > { %4049 = vmatmul.mubr.bf16.gmra.mxu1 %v5101_v62 }
 0x26c   : > { %4052 = vmatprep.mubr.bf16.mxu1 %v5114_v48 }
 0x273   : > { %4053 = vmatmul.mubr.bf16.gmra.mxu1 %v5125_v27 }
 0x274   : > { %4056 = vmatprep.mubr.bf16.mxu1 %v5138_v20 }
 0x27b   : > { %4057 = vmatmul.mubr.bf16.gmra.mxu1 %v5148_v38 }
 0x2a3   : > { %v4014_v2 = vpop.f32.mrf.mxu1 }
 0x2a5   : > { %v2883_v28 = vpop.f32.mrf.mxu1 }
 0x2a7   : > { %v4015_v63 = vpop.f32.mrf.mxu1 }
 0x2a8   : > { %v3806_v31 = vpack.c.bf16 %v4015_v63, %v4014_v2 }
 0x2a9   : > { %v2886_v62 = vpop.f32.mrf.mxu1 }
 0x2aa   : > { %3941 = vst [vmem:[%s5230_s24 + $0x8] sm:$0xff] %v3806_v31   ;;  %v3801_v48 = vpack.c.bf16 %v2886_v62, %v2883_v28 }
 0x2ac   : > { %3802 = vst [vmem:[%s5230_s24] sm:$0xff] %v3801_v48  }
 0x2b3   : > { %v4018_v27 = vpop.f32.mrf.mxu1 }
 0x2b5   : > { %v2899_v20 = vpop.f32.mrf.mxu1 }
 0x2b7   : > { %v4019_v38 = vpop.f32.mrf.mxu1 }
 0x2b8   : > { %v3816_v4 = vpack.c.bf16 %v4019_v38, %v4018_v27 }
 0x2b9   : > { %v2902_v35 = vpop.f32.mrf.mxu1 }
 0x2ba   : > { %3943 = vst [vmem:[%s5230_s24 + $0x18] sm:$0xff] %v3816_v4   ;;  %v3811_v12 = vpack.c.bf16 %v2902_v35, %v2899_v20 }
 0x2bc   : > { %3942 = vst [vmem:[%s5230_s24 + $0x10] sm:$0xff] %v3811_v12  }
 0x2c3   : > { %v4022_v57 = vpop.f32.mrf.mxu1 }
 0x2c5   : > { %v2915_v33 = vpop.f32.mrf.mxu1 }
 0x2c7   : > { %v4023_v37 = vpop.f32.mrf.mxu1 }
 0x2c8   : > { %v3826_v39 = vpack.c.bf16 %v4023_v37, %v4022_v57 }
 0x2c9   : > { %v2918_v11 = vpop.f32.mrf.mxu1 }
 0x2ca   : > { %3945 = vst [vmem:[%s5230_s24 + $0x28] sm:$0xff] %v3826_v39   ;;  %v3821_v50 = vpack.c.bf16 %v2918_v11, %v2915_v33 }
 0x2cc   : > { %3944 = vst [vmem:[%s5230_s24 + $0x20] sm:$0xff] %v3821_v50  }
 0x2d3   : > { %v4026_v47 = vpop.f32.mrf.mxu1 }
 0x2d5   : > { %v2931_v53 = vpop.f32.mrf.mxu1 }
 0x2d7   : > { %v4027_v30 = vpop.f32.mrf.mxu1 }
 0x2d8   : > { %v3836_v16 = vpack.c.bf16 %v4027_v30, %v4026_v47 }
 0x2d9   : > { %v2934_v21 = vpop.f32.mrf.mxu1 }
 0x2da   : > { %3947 = vst [vmem:[%s5230_s24 + $0x38] sm:$0xff] %v3836_v16   ;;  %v3831_v49 = vpack.c.bf16 %v2934_v21, %v2931_v53 }
 0x2dc   : > { %3946 = vst [vmem:[%s5230_s24 + $0x30] sm:$0xff] %v3831_v49  }
 0x2e3   : > { %v4030_v51 = vpop.f32.mrf.mxu1 }
 0x2e5   : > { %v2947_v34 = vpop.f32.mrf.mxu1 }
 0x2e7   : > { %v4031_v52 = vpop.f32.mrf.mxu1 }
 0x2e8   : > { %v3846_v41 = vpack.c.bf16 %v4031_v52, %v4030_v51 }
 0x2e9   : > { %v2950_v22 = vpop.f32.mrf.mxu1 }
 0x2ea   : > { %3949 = vst [vmem:[%s5230_s24 + $0x48] sm:$0xff] %v3846_v41   ;;  %v3841_v24 = vpack.c.bf16 %v2950_v22, %v2947_v34 }
 0x2ec   : > { %3948 = vst [vmem:[%s5230_s24 + $0x40] sm:$0xff] %v3841_v24  }
 0x2f3   : > { %v4034_v54 = vpop.f32.mrf.mxu1 }
 0x2f5   : > { %v2963_v42 = vpop.f32.mrf.mxu1 }
 0x2f7   : > { %v4035_v26 = vpop.f32.mrf.mxu1 }
 0x2f8   : > { %v3856_v15 = vpack.c.bf16 %v4035_v26, %v4034_v54 }
 0x2f9   : > { %v2966_v56 = vpop.f32.mrf.mxu1 }
 0x2fa   : > { %3951 = vst [vmem:[%s5230_s24 + $0x58] sm:$0xff] %v3856_v15   ;;  %v3851_v59 = vpack.c.bf16 %v2966_v56, %v2963_v42 }
 0x2fc   : > { %3950 = vst [vmem:[%s5230_s24 + $0x50] sm:$0xff] %v3851_v59  }
 0x303   : > { %v4038_v6 = vpop.f32.mrf.mxu1 }
 0x305   : > { %v2979_v60 = vpop.f32.mrf.mxu1 }
 0x307   : > { %v4039_v36 = vpop.f32.mrf.mxu1 }
 0x308   : > { %v3866_v61 = vpack.c.bf16 %v4039_v36, %v4038_v6 }
 0x309   : > { %v2982_v0 = vpop.f32.mrf.mxu1 }
 0x30a   : > { %3953 = vst [vmem:[%s5230_s24 + $0x68] sm:$0xff] %v3866_v61   ;;  %v3861_v3 = vpack.c.bf16 %v2982_v0, %v2979_v60 }
 0x30c   : > { %3952 = vst [vmem:[%s5230_s24 + $0x60] sm:$0xff] %v3861_v3  }
 0x313   : > { %v4042_v23 = vpop.f32.mrf.mxu1 }
 0x315   : > { %v2995_v45 = vpop.f32.mrf.mxu1 }
 0x317   : > { %v4043_v7 = vpop.f32.mrf.mxu1 }
 0x318   : > { %v3876_v32 = vpack.c.bf16 %v4043_v7, %v4042_v23 }
 0x319   : > { %v2998_v1 = vpop.f32.mrf.mxu1 }
 0x31a   : > { %3955 = vst [vmem:[%s5230_s24 + $0x78] sm:$0xff] %v3876_v32   ;;  %v3871_v46 = vpack.c.bf16 %v2998_v1, %v2995_v45 }
 0x31c   : > { %3954 = vst [vmem:[%s5230_s24 + $0x70] sm:$0xff] %v3871_v46  }
 0x323   : > { %v4046_v25 = vpop.f32.mrf.mxu1 }
 0x325   : > { %v3011_v5 = vpop.f32.mrf.mxu1 }
 0x327   : > { %v4047_v43 = vpop.f32.mrf.mxu1 }
 0x328   : > { %v3886_v13 = vpack.c.bf16 %v4047_v43, %v4046_v25 }
 0x329   : > { %v3014_v18 = vpop.f32.mrf.mxu1 }
 0x32a   : > { %3957 = vst [vmem:[%s5230_s24 + $0x88] sm:$0xff] %v3886_v13   ;;  %v3881_v14 = vpack.c.bf16 %v3014_v18, %v3011_v5 }
 0x32b   : > { %v4050_v58 = vpop.f32.mrf.mxu1 }
 0x32c   : > { %3956 = vst [vmem:[%s5230_s24 + $0x80] sm:$0xff] %v3881_v14  }
 0x32d   : > { %v3027_v44 = vpop.f32.mrf.mxu1 }
 0x32f   : > { %v4051_v8 = vpop.f32.mrf.mxu1 }
 0x330   : > { %v3896_v29 = vpack.c.bf16 %v4051_v8, %v4050_v58 }
 0x331   : > { %v3030_v17 = vpop.f32.mrf.mxu1 }
 0x332   : > { %3959 = vst [vmem:[%s5230_s24 + $0x98] sm:$0xff] %v3896_v29   ;;  %v3891_v40 = vpack.c.bf16 %v3030_v17, %v3027_v44 }
 0x333   : > { %v4054_v19 = vpop.f32.mrf.mxu1 }
 0x334   : > { %3958 = vst [vmem:[%s5230_s24 + $0x90] sm:$0xff] %v3891_v40  }
 0x335   : > { %v3043_v10 = vpop.f32.mrf.mxu1 }
 0x337   : > { %v4055_v55 = vpop.f32.mrf.mxu1 }
 0x338   : > { %v3906_v9 = vpack.c.bf16 %v4055_v55, %v4054_v19 }
 0x339   : > { %v3046_v2 = vpop.f32.mrf.mxu1 }
 0x33a   : > { %3961 = vst [vmem:[%s5230_s24 + $0xa8] sm:$0xff] %v3906_v9   ;;  %v3901_v28 = vpack.c.bf16 %v3046_v2, %v3043_v10 }
 0x33b   : > { %v4058_v63 = vpop.f32.mrf.mxu1 }
 0x33c   : > { %3960 = vst [vmem:[%s5230_s24 + $0xa0] sm:$0xff] %v3901_v28  }
 0x33d   : > { %v3059_v31 = vpop.f32.mrf.mxu1 }
 0x33f   : > { %v4059_v62 = vpop.f32.mrf.mxu1 }
 0x340   : > { %v3916_v48 = vpack.c.bf16 %v4059_v62, %v4058_v63 }
 0x341   : > { %v3062_v27 = vpop.f32.mrf.mxu1 }
 0x342   : > { %3963 = vst [vmem:[%s5230_s24 + $0xb8] sm:$0xff] %v3916_v48   ;;  %v3911_v20 = vpack.c.bf16 %v3062_v27, %v3059_v31 }
 0x344   : > { %3962 = vst [vmem:[%s5230_s24 + $0xb0] sm:$0xff] %v3911_v20  }
 0x345 PF: > { %s16_s21 = sadd.s32 1, %s4382_s21  }
 0x346   : > { %p13_p4 = scmp.ge.s32.totalorder %s16_s21, 4  }
 0x348   :  { %15 = sbr.rel (!%p13_p4) target bundleno = 1 (0x1), region = 80 }

</bundles_post_ra>
